<compile_context>
chip_gen: v6e
topology: v6e:2x2x1
jax: 0.10.0
libtpu: 0.0.40
codegen_flags: <defaults>
</compile_context>

<pallas_src>
import functools

import jax
import jax.numpy as jnp
from jax.experimental import pallas as pl
from jax.experimental.pallas import tpu as pltpu


# ----------------------------------------------------------------------------
# The fused kernel (runs exactly once; no grid)
# ----------------------------------------------------------------------------
def _dae_kernel(
    # inputs
    xflat_ref, lenscol_ref, lens_s_ref,
    wih_enc_ref, whh_enc_ref, benc_f_ref, benc_b_ref,
    wcat_ref, bcat_ref, emb0_ref,
    wih_att_ref, batt_ref,
    wcapf_ref, bcapf_ref, wcapd_ref, bcapd_ref, wcapfull_ref, bcapfull_ref,
    wih_lang_ref, blang_ref, wfc_ref, bfc_ref,
    # outputs
    scores_ref, ctxh2_ref,
    # scratch
    gx_ref, h_ref, c_ref, outf_ref, outb_ref,
    *, henc, dec, gp, seq_len, batch, rows):
  GP, Hc, B, L, RB = gp, henc, batch, seq_len, rows
  del dec  # gate slicing is done at GP (128-lane) boundaries
  f32, bf16 = jnp.float32, jnp.bfloat16

  # ---------------- preamble (once) -----------------------------------------
  # Hoisted input->gates matmul for the whole sequence, bias folded in, so the
  # recurrence has no per-step X@W_ih matmul and no per-step bias add.
  rowf = jax.lax.broadcasted_iota(jnp.int32, (L * RB, 1), 0) % RB
  bias_flat = jnp.where(rowf < B, benc_f_ref[...], benc_b_ref[...])
  gx_ref[...] = (
      jnp.dot(xflat_ref[...], wih_enc_ref[...], preferred_element_type=f32)
      + bias_flat)

  h_ref[...] = jnp.zeros_like(h_ref)
  c_ref[...] = jnp.zeros_like(c_ref)

  row1 = jax.lax.broadcasted_iota(jnp.int32, (RB, 1), 0)
  is_fwd = row1 < B
  is_bwd = jnp.logical_and(row1 >= B, row1 < 2 * B)
  lens_col = lenscol_ref[...]                                      # (RB, 1) i32
  # Block-diagonal lane mask: fwd rows own lanes [0:GP], bwd rows [GP:2GP].
  row2 = jax.lax.broadcasted_iota(jnp.int32, (RB, 2 * GP), 0)
  lane2 = jax.lax.broadcasted_iota(jnp.int32, (RB, 2 * GP), 1)
  diag = jnp.logical_or(
      jnp.logical_and(row2 < B, lane2 < GP),
      jnp.logical_and(jnp.logical_and(row2 >= B, row2 < 2 * B), lane2 >= GP))

  # ---------------- bidirectional encoder LSTM recurrence --------------------
  # Rows [0:B] run the forward direction (time t = s), rows [B:2B] run the
  # backward direction (time t = L-1-s); rows [2B:RB] are alignment padding.
  def step(s, carry):
    off = pl.multiple_of(s * RB, RB)
    gates = gx_ref[pl.ds(off, RB), :] + jnp.dot(
        h_ref[...].astype(bf16), whh_enc_ref[...],
        preferred_element_type=f32)                                # (RB, 4GP)
    i_g = jax.nn.sigmoid(gates[:, 0 * GP:1 * GP])
    f_g = jax.nn.sigmoid(gates[:, 1 * GP:2 * GP])
    g_g = jnp.tanh(gates[:, 2 * GP:3 * GP])
    o_g = jax.nn.sigmoid(gates[:, 3 * GP:4 * GP])
    # Gate lanes >= Hc are zero in weights/bias, so padded lanes of h/c stay
    # exactly 0 on every step (sigmoid(0)*tanh(0) == 0 with c0 == 0).
    c_new = f_g * c_ref[...] + i_g * g_g                           # (RB, GP)
    h_new = o_g * jnp.tanh(c_new)

    # pack_padded_sequence emulation: freeze the state where t >= length.
    t_row = jnp.where(is_fwd, s, L - 1 - s)                        # (RB, 1)
    valid = t_row < lens_col
    c_ref[...] = jnp.where(valid, c_new, c_ref[...])
    h_dup = jnp.concatenate([h_new, h_new], axis=1)                # (RB, 2GP)
    h_ref[...] = jnp.where(jnp.logical_and(valid, diag), h_dup, h_ref[...])

    # Encoder outputs, packed lane slab: fwd h -> lanes [0:Hc] at time s,
    # bwd h rolled to lanes [Hc:2Hc] at time L-1-s.  Full-tile stores.
    outf_ref[pl.ds(off, RB), :] = jnp.where(
        jnp.logical_and(valid, is_fwd), h_new, 0.0)
    offb = pl.multiple_of((L - 1 - s) * RB, RB)
    h_sh = pltpu.roll(h_new, shift=Hc, axis=1)
    outb_ref[pl.ds(offb, RB), :] = jnp.where(
        jnp.logical_and(valid, is_bwd), h_sh, 0.0)
    return carry

  jax.lax.fori_loop(0, L, step, 0, unroll=True)

  # ---------------- fused decode step (once) ----------------------------------
  # final_hidden = tanh([h_fwd_final | h_bwd_final] @ W_cat + b_cat)
  cat_in = (h_ref[0:B, :] + h_ref[B:2 * B, :]).astype(bf16)        # (B, 2GP)
  final_hidden = jnp.tanh(
      jnp.dot(cat_in, wcat_ref[...], preferred_element_type=f32)
      + bcat_ref[...])                                             # (B, 2Hc)

  # Attention LSTM cell.  h1_prev = c1_prev = h2_prev = 0 for this single
  # decode step, so W_hh terms / f*c_prev vanish and the h2 input rows are
  # dropped from the packed W_ih.
  x1 = jnp.concatenate([final_hidden, emb0_ref[...]], axis=1).astype(bf16)
  g1 = (jnp.dot(x1, wih_att_ref[...], preferred_element_type=f32)
        + batt_ref[...])
  i1 = jax.nn.sigmoid(g1[:, 0 * GP:1 * GP])
  gg1 = jnp.tanh(g1[:, 2 * GP:3 * GP])
  o1 = jax.nn.sigmoid(g1[:, 3 * GP:4 * GP])
  h1 = o1 * jnp.tanh(i1 * gg1)                                     # (B, GP)

  # Caption attention over the packed encoder-output slab.  B is tiny and
  # static, so a per-sample loop keeps every op a simple 2-D tile op.
  att2 = (jnp.dot(h1.astype(bf16), wcapd_ref[...],
                  preferred_element_type=f32) + bcapd_ref[...])    # (B, A)
  t_col = jax.lax.broadcasted_iota(jnp.int32, (L, 1), 0)
  ctx_rows = []
  for b in range(B):
    feat_b = (outf_ref[pl.ds(b, L, RB), :]
              + outb_ref[pl.ds(B + b, L, RB), :])                  # (L, GP)
    att1_b = (jnp.dot(feat_b.astype(bf16), wcapf_ref[...],
                      preferred_element_type=f32) + bcapf_ref[...])  # (L, A)
    e_b = jnp.tanh(att1_b + att2[b:b + 1, :])
    # The (A, 1) projection as a VPU multiply + lane reduction (no degenerate
    # MXU matmul); attention mask derived from the caption length.
    scr_b = (jnp.sum(e_b * wcapfull_ref[...], axis=-1, keepdims=True)
             + bcapfull_ref[0, 0])                                 # (L, 1)
    scr_b = jnp.where(t_col < lens_s_ref[b], scr_b, -1e10)
    mmax = jnp.max(scr_b, axis=0, keepdims=True)
    pexp = jnp.exp(scr_b - mmax)
    alpha_b = pexp * pl.reciprocal(
        jnp.sum(pexp, axis=0, keepdims=True), approx=True)         # (L, 1)
    ctx_rows.append(jnp.sum(feat_b * alpha_b, axis=0, keepdims=True))
  context = jnp.concatenate(ctx_rows, axis=0)                      # (B, GP)

  # Language LSTM cell (h2_prev = c2_prev = 0).
  x2 = jnp.concatenate([context, h1], axis=1).astype(bf16)         # (B, 2GP)
  g2 = (jnp.dot(x2, wih_lang_ref[...], preferred_element_type=f32)
        + blang_ref[...])
  i2 = jax.nn.sigmoid(g2[:, 0 * GP:1 * GP])
  gg2 = jnp.tanh(g2[:, 2 * GP:3 * GP])
  o2 = jax.nn.sigmoid(g2[:, 3 * GP:4 * GP])
  h2 = o2 * jnp.tanh(i2 * gg2)                                     # (B, GP)

  # Lane-dense outputs: padded vocab scores + packed [context | h2] slab.
  scores_ref[...] = (jnp.dot(h2.astype(bf16), wfc_ref[...],
                             preferred_element_type=f32) + bfc_ref[...])
  ctxh2_ref[...] = jnp.concatenate([context, h2], axis=1)


# ----------------------------------------------------------------------------
# Wrapper: minimal XLA glue + one pallas_call
# ----------------------------------------------------------------------------
def dae_forward(packed, tokens, cap_lens, start_tokens, config):
  GP, VP = config["gp"], config["vp"]
  Hc, D, E, V = config["cap"], config["dec"], config["emb"], config["vocab"]
  B, L = tokens.shape
  RB = max(8, ((2 * B + 7) // 8) * 8)   # batch-direction block, 8-row aligned
  lens = cap_lens[:, 0].astype(jnp.int32)                          # (B,)

  # Embedding gather + ReLU (dropout == identity at inference).
  emb_seq = jnp.maximum(packed["emb_table"][tokens], 0.0)          # (B, L, E)
  emb0 = jnp.maximum(packed["emb_table"][start_tokens], 0.0)       # (B, E)

  # Time-major block-diagonal encoder input, padded to RB rows per timestep:
  # rows [0:B] = forward x_t (lanes [0:E]); rows [B:2B] = backward x_{L-1-t}
  # (lanes [E:2E]); rows [2B:RB] = zero padding.
  xt = jnp.transpose(emb_seq, (1, 0, 2))                           # (L, B, E)
  x_bd = jnp.zeros((L, RB, 2 * E), jnp.float32)
  x_bd = x_bd.at[:, :B, :E].set(xt)
  x_bd = x_bd.at[:, B:2 * B, E:].set(xt[::-1])
  x_flat = x_bd.reshape(L * RB, 2 * E).astype(jnp.bfloat16)

  lens_col = jnp.zeros((RB, 1), jnp.int32)
  lens_col = lens_col.at[:B, 0].set(lens).at[B:2 * B, 0].set(lens)

  kern = functools.partial(_dae_kernel, henc=Hc, dec=D, gp=GP,
                           seq_len=L, batch=B, rows=RB)

  vmem = pl.BlockSpec(memory_space=pltpu.MemorySpace.VMEM)
  smem = pl.BlockSpec(memory_space=pltpu.MemorySpace.SMEM)
  in_specs = [vmem, vmem, smem] + [vmem] * 14 + [smem] + [vmem] * 4
  out_specs = (vmem, vmem)
  out_shape = (
      jax.ShapeDtypeStruct((B, VP), jnp.float32),
      jax.ShapeDtypeStruct((B, 2 * GP), jnp.float32),
  )
  # NOTE: at realistic sizes (dec~512, vocab~10k, L~50) set
  # pltpu.CompilerParams(vmem_limit_bytes=...) and tile the fc projection.
  scratch = [
      pltpu.VMEM((L * RB, 4 * GP), jnp.float32),  # hoisted input gates
      pltpu.VMEM((RB, 2 * GP), jnp.float32),      # h (block-diagonal layout)
      pltpu.VMEM((RB, GP), jnp.float32),          # c
      pltpu.VMEM((L * RB, GP), jnp.float32),      # fwd encoder outputs
      pltpu.VMEM((L * RB, GP), jnp.float32),      # bwd encoder outputs (rolled)
  ]

  scores_p, ctxh2 = pl.pallas_call(
      kern,
      out_shape=out_shape,
      in_specs=in_specs,
      out_specs=out_specs,
      scratch_shapes=scratch,
  )(x_flat, lens_col, lens,
    packed["wih_enc"], packed["whh_enc"], packed["b_enc_f"], packed["b_enc_b"],
    packed["w_cat"], packed["b_cat"], emb0,
    packed["wih_att"], packed["b_att"],
    packed["w_capf"], packed["b_capf"], packed["w_capd"], packed["b_capd"],
    packed["w_capfull"], packed["b_capfull"],
    packed["wih_lang"], packed["b_lang"], packed["w_fc"], packed["b_fc"])

  scores = scores_p[:, :V]            # strip vocab lane padding
  context = ctxh2[:, :2 * Hc]
  h2 = ctxh2[:, GP:GP + D]
  return scores, context, h2


# ----------------------------------------------------------------------------
# Parameters: PyTorch layouts -> kernel-ready packed layouts (done once)
# ----------------------------------------------------------------------------
def init_params(key, vocab, emb, dec, att, cap):
  ks = iter(jax.random.split(key, 32))

  def nrm(shape, scale=0.1):
    return scale * jax.random.normal(next(ks), shape, jnp.float32)

  p = {}
  p["emb_table"] = nrm((vocab, emb))
  for tag in ("f", "b"):                       # bidirectional encoder LSTM
    p[f"enc_wih_{tag}"] = nrm((4 * cap, emb))  # PyTorch (4H, in)
    p[f"enc_whh_{tag}"] = nrm((4 * cap, cap))
    p[f"enc_b_{tag}"] = nrm((4 * cap,)) + nrm((4 * cap,))   # b_ih + b_hh
  p["concat_w"] = nrm((2 * cap, 2 * cap))
  p["concat_b"] = nrm((2 * cap,))
  # LSTMCell W_hh omitted: the single decode step starts from zero states, so
  # the recurrent terms vanish exactly; b already includes b_ih + b_hh.
  p["att_wih"] = nrm((4 * dec, 3 * emb))
  p["att_b"] = nrm((4 * dec,)) + nrm((4 * dec,))
  p["lang_wih"] = nrm((4 * dec, 2 * emb))
  p["lang_b"] = nrm((4 * dec,)) + nrm((4 * dec,))
  p["capf_w"] = nrm((att, 2 * cap)); p["capf_b"] = nrm((att,))
  p["capd_w"] = nrm((att, dec));     p["capd_b"] = nrm((att,))
  p["capfull_w"] = nrm((1, att));    p["capfull_b"] = nrm((1,))
  p["fc_w"] = nrm((vocab, dec));     p["fc_b"] = nrm((vocab,))
  return p


def pack_params(p, cfg):
  GP, VP = cfg["gp"], cfg["vp"]
  E, Hc, D, A, V = cfg["emb"], cfg["cap"], cfg["dec"], cfg["att"], cfg["vocab"]
  # The kernel layout relies on these identities; fail loudly if violated.
  assert D + 2 * Hc == 2 * E and D <= GP and 2 * Hc <= GP and V <= VP
  f32, bf16 = jnp.float32, jnp.bfloat16

  def gate_pad_cols(w_pt, H):
    # PyTorch (4H, in) -> (in, 4*GP); each [i|f|g|o] gate on a 128-lane boundary
    w_t = w_pt.T
    out = jnp.zeros((w_t.shape[0], 4 * GP), f32)
    for k in range(4):
      out = out.at[:, k * GP:k * GP + H].set(w_t[:, k * H:(k + 1) * H])
    return out

  def gate_pad_bias(b, H):
    out = jnp.zeros((4 * GP,), f32)
    for k in range(4):
      out = out.at[k * GP:k * GP + H].set(b[k * H:(k + 1) * H])
    return out

  q = {"emb_table": p["emb_table"]}

  # Encoder: both directions block-diagonal on the contraction dim.
  q["wih_enc"] = jnp.concatenate(
      [gate_pad_cols(p["enc_wih_f"], Hc), gate_pad_cols(p["enc_wih_b"], Hc)],
      axis=0).astype(bf16)                                        # (2E, 4GP)
  whh_f = jnp.zeros((GP, 4 * GP), f32).at[:Hc].set(gate_pad_cols(p["enc_whh_f"], Hc))
  whh_b = jnp.zeros((GP, 4 * GP), f32).at[:Hc].set(gate_pad_cols(p["enc_whh_b"], Hc))
  q["whh_enc"] = jnp.concatenate([whh_f, whh_b], axis=0).astype(bf16)  # (2GP,4GP)
  q["b_enc_f"] = gate_pad_bias(p["enc_b_f"], Hc)[None]            # (1, 4GP)
  q["b_enc_b"] = gate_pad_bias(p["enc_b_b"], Hc)[None]

  # Concat layer: input is [h_f padded to GP | h_b padded to GP].
  wcat_t = p["concat_w"].T
  wcat_p = jnp.zeros((2 * GP, 2 * Hc), f32)
  wcat_p = wcat_p.at[:Hc].set(wcat_t[:Hc]).at[GP:GP + Hc].set(wcat_t[Hc:])
  q["w_cat"] = wcat_p.astype(bf16)
  q["b_cat"] = p["concat_b"][None]

  # Attention LSTM cell: input [final_hidden | emb]; the h2_prev rows (first D)
  # are dropped because h2_prev == 0 for the single decode step.
  q["wih_att"] = gate_pad_cols(p["att_wih"], D)[D:].astype(bf16)   # (3E-D, 4GP)
  q["b_att"] = gate_pad_bias(p["att_b"], D)[None]

  # Caption attention: feature weights padded to the packed GP slab.
  q["w_capf"] = jnp.zeros((GP, A), f32).at[:2 * Hc].set(p["capf_w"].T).astype(bf16)
  q["b_capf"] = p["capf_b"][None]
  q["w_capd"] = jnp.zeros((GP, A), f32).at[:D].set(p["capd_w"].T).astype(bf16)
  q["b_capd"] = p["capd_b"][None]
  q["w_capfull"] = p["capfull_w"]                                  # (1, A) f32
  q["b_capfull"] = p["capfull_b"].reshape(1, 1)                    # SMEM scalar

  # Language LSTM cell: input [context packed to GP | h1 packed to GP].
  wlang = gate_pad_cols(p["lang_wih"], D)                          # (2E, 4GP)
  wlang_p = jnp.zeros((2 * GP, 4 * GP), f32)
  wlang_p = wlang_p.at[:2 * Hc].set(wlang[:2 * Hc]).at[GP:GP + D].set(
      wlang[2 * Hc:2 * Hc + D])
  q["wih_lang"] = wlang_p.astype(bf16)
  q["b_lang"] = gate_pad_bias(p["lang_b"], D)[None]

  # Output projection padded to VP lanes.
  q["w_fc"] = jnp.zeros((GP, VP), f32).at[:D, :V].set(p["fc_w"].T).astype(bf16)
  q["b_fc"] = jnp.zeros((1, VP), f32).at[0, :V].set(p["fc_b"])
  return q


# ----------------------------------------------------------------------------
if __name__ == "__main__":
  VOCAB = 50      # len(word_map)
  EMB_DIM = 64    # emb_dim
  DEC_DIM = 64    # decoder_dim
  ATT_DIM = 64    # attention_dim
  CAP_DIM = 32    # caption_features_dim (encoder output dim = 2*CAP_DIM)
  B, L = 2, 8
  cfg = dict(vocab=VOCAB, emb=EMB_DIM, dec=DEC_DIM, att=ATT_DIM, cap=CAP_DIM,
             gp=128, vp=max(128, ((VOCAB + 127) // 128) * 128))

  key = jax.random.PRNGKey(0)
  k_params, k_tok = jax.random.split(key)
  params = init_params(k_params, VOCAB, EMB_DIM, DEC_DIM, ATT_DIM, CAP_DIM)
  packed = pack_params(params, cfg)

  encoded_previous_captions = jax.random.randint(
      k_tok, (B, L), 2, VOCAB, dtype=jnp.int32)
  previous_cap_length = jnp.array([[8], [5]], dtype=jnp.int32)
  start_tokens = jnp.ones((B,), dtype=jnp.int32)

  fwd = jax.jit(functools.partial(dae_forward, config=cfg))
  scores, context, h2 = fwd(packed, encoded_previous_captions,
                            previous_cap_length, start_tokens)
  jax.block_until_ready((scores, context, h2))

  assert scores.shape == (B, VOCAB)
  assert context.shape == (B, 2 * CAP_DIM)
  assert h2.shape == (B, DEC_DIM)
  assert bool(jnp.all(jnp.isfinite(scores)))
  assert bool(jnp.all(jnp.isfinite(context)))
  assert bool(jnp.all(jnp.isfinite(h2)))
  print("KERNEL_OK")
</pallas_src>

<mosaic_0001>
module attributes {stable_mosaic.version = 11 : i64} {
  func.func @_dae_kernel(%arg0: memref<64x128xbf16, #tpu.memory_space<vmem>>, %arg1: memref<8x1xi32, #tpu.memory_space<vmem>>, %arg2: memref<2xi32, #tpu.memory_space<smem>>, %arg3: memref<128x512xbf16, #tpu.memory_space<vmem>>, %arg4: memref<256x512xbf16, #tpu.memory_space<vmem>>, %arg5: memref<1x512xf32, #tpu.memory_space<vmem>>, %arg6: memref<1x512xf32, #tpu.memory_space<vmem>>, %arg7: memref<256x64xbf16, #tpu.memory_space<vmem>>, %arg8: memref<1x64xf32, #tpu.memory_space<vmem>>, %arg9: memref<2x64xf32, #tpu.memory_space<vmem>>, %arg10: memref<128x512xbf16, #tpu.memory_space<vmem>>, %arg11: memref<1x512xf32, #tpu.memory_space<vmem>>, %arg12: memref<128x64xbf16, #tpu.memory_space<vmem>>, %arg13: memref<1x64xf32, #tpu.memory_space<vmem>>, %arg14: memref<128x64xbf16, #tpu.memory_space<vmem>>, %arg15: memref<1x64xf32, #tpu.memory_space<vmem>>, %arg16: memref<1x64xf32, #tpu.memory_space<vmem>>, %arg17: memref<1x1xf32, #tpu.memory_space<smem>>, %arg18: memref<256x512xbf16, #tpu.memory_space<vmem>>, %arg19: memref<1x512xf32, #tpu.memory_space<vmem>>, %arg20: memref<128x128xbf16, #tpu.memory_space<vmem>>, %arg21: memref<1x128xf32, #tpu.memory_space<vmem>>, %arg22: memref<2x128xf32, #tpu.memory_space<vmem>>, %arg23: memref<2x256xf32, #tpu.memory_space<vmem>>, %arg24: memref<64x512xf32, #tpu.memory_space<vmem>>, %arg25: memref<8x256xf32, #tpu.memory_space<vmem>>, %arg26: memref<8x128xf32, #tpu.memory_space<vmem>>, %arg27: memref<64x128xf32, #tpu.memory_space<vmem>>, %arg28: memref<64x128xf32, #tpu.memory_space<vmem>>) attributes {dimension_semantics = [], scalar_prefetch = 0 : i64, scratch_operands = 5 : i64, tpu.core_type = #tpu.core_type<tc>} {
    %0 = tpu.iota {dimensions = array<i32: 0>} : vector<64x1xi32>
    %c8_i32 = arith.constant 8 : i32
    %c0_i32 = arith.constant 0 : i32
    %1 = arith.cmpi eq, %c8_i32, %c0_i32 : i32
    %c1_i32 = arith.constant 1 : i32
    %2 = arith.select %1, %c1_i32, %c8_i32 : i32
    %3 = vector.broadcast %2 : i32 to vector<64x1xi32>
    %4 = arith.remsi %0, %3 : vector<64x1xi32>
    %c0_i32_0 = arith.constant 0 : i32
    %5 = vector.broadcast %c0_i32_0 : i32 to vector<64x1xi32>
    %6 = arith.cmpi ne, %4, %5 : vector<64x1xi32>
    %c0_i32_1 = arith.constant 0 : i32
    %7 = vector.broadcast %c0_i32_1 : i32 to vector<64x1xi32>
    %8 = arith.cmpi slt, %4, %7 : vector<64x1xi32>
    %c0_i32_2 = arith.constant 0 : i32
    %9 = arith.cmpi slt, %2, %c0_i32_2 : i32
    %10 = vector.broadcast %9 : i1 to vector<64x1xi1>
    %11 = vector.broadcast %10 : vector<64x1xi1> to vector<64x1xi1>
    %12 = arith.xori %8, %11 : vector<64x1xi1>
    %13 = arith.andi %12, %6 : vector<64x1xi1>
    %14 = vector.broadcast %2 : i32 to vector<64x1xi32>
    %15 = arith.addi %4, %14 : vector<64x1xi32>
    %16 = arith.select %13, %15, %4 : vector<64x1xi1>, vector<64x1xi32>
    %c2_i32 = arith.constant 2 : i32
    %17 = vector.broadcast %c2_i32 : i32 to vector<64x1xi32>
    %18 = arith.cmpi slt, %16, %17 : vector<64x1xi32>
    %c0 = arith.constant 0 : index
    %c0_3 = arith.constant 0 : index
    %19 = vector.load %arg5[%c0, %c0_3] : memref<1x512xf32, #tpu.memory_space<vmem>>, vector<1x512xf32>
    %c0_4 = arith.constant 0 : index
    %c0_5 = arith.constant 0 : index
    %20 = vector.load %arg6[%c0_4, %c0_5] : memref<1x512xf32, #tpu.memory_space<vmem>>, vector<1x512xf32>
    %21 = vector.shape_cast %18 : vector<64x1xi1> to vector<64x1xi1>
    %22 = vector.broadcast %21 : vector<64x1xi1> to vector<64x512xi1>
    %23 = vector.shape_cast %19 : vector<1x512xf32> to vector<1x512xf32>
    %24 = vector.broadcast %23 : vector<1x512xf32> to vector<64x512xf32>
    %25 = vector.shape_cast %20 : vector<1x512xf32> to vector<1x512xf32>
    %26 = vector.broadcast %25 : vector<1x512xf32> to vector<64x512xf32>
    %27 = arith.select %22, %24, %26 : vector<64x512xi1>, vector<64x512xf32>
    %c0_6 = arith.constant 0 : index
    %c0_7 = arith.constant 0 : index
    %28 = vector.load %arg0[%c0_6, %c0_7] : memref<64x128xbf16, #tpu.memory_space<vmem>>, vector<64x128xbf16>
    %c0_8 = arith.constant 0 : index
    %c0_9 = arith.constant 0 : index
    %29 = vector.load %arg3[%c0_8, %c0_9] : memref<128x512xbf16, #tpu.memory_space<vmem>>, vector<128x512xbf16>
    %cst = arith.constant dense<0.000000e+00> : vector<64x512xf32>
    %30 = tpu.matmul %28, %29, %cst {dimension_numbers = #tpu.dot_dimension_numbers<[1], [0], [0], [1], [0, 0, 1, 1], [], []>} : vector<64x128xbf16>, vector<128x512xbf16>, vector<64x512xf32> -> vector<64x512xf32>
    %31 = arith.addf %30, %27 : vector<64x512xf32>
    %c0_10 = arith.constant 0 : index
    %c0_11 = arith.constant 0 : index
    %32 = vector.load %arg24[%c0_10, %c0_11] : memref<64x512xf32, #tpu.memory_space<vmem>>, vector<64x512xf32>
    tpu.vector_store %arg24[%c0_10, %c0_11], %31 {strides = array<i32>} : memref<64x512xf32, #tpu.memory_space<vmem>>, vector<64x512xf32>,
    %cst_12 = arith.constant 0.000000e+00 : f32
    %33 = vector.broadcast %cst_12 : f32 to vector<8x256xf32>
    %c0_13 = arith.constant 0 : index
    %c0_14 = arith.constant 0 : index
    %34 = vector.load %arg25[%c0_13, %c0_14] : memref<8x256xf32, #tpu.memory_space<vmem>>, vector<8x256xf32>
    tpu.vector_store %arg25[%c0_13, %c0_14], %33 {strides = array<i32>} : memref<8x256xf32, #tpu.memory_space<vmem>>, vector<8x256xf32>,
    %cst_15 = arith.constant 0.000000e+00 : f32
    %35 = vector.broadcast %cst_15 : f32 to vector<8x128xf32>
    %c0_16 = arith.constant 0 : index
    %c0_17 = arith.constant 0 : index
    %36 = vector.load %arg26[%c0_16, %c0_17] : memref<8x128xf32, #tpu.memory_space<vmem>>, vector<8x128xf32>
    tpu.vector_store %arg26[%c0_16, %c0_17], %35 {strides = array<i32>} : memref<8x128xf32, #tpu.memory_space<vmem>>, vector<8x128xf32>,
    %37 = tpu.iota {dimensions = array<i32: 0>} : vector<8x1xi32>
    %c2_i32_18 = arith.constant 2 : i32
    %38 = vector.broadcast %c2_i32_18 : i32 to vector<8x1xi32>
    %39 = arith.cmpi slt, %37, %38 : vector<8x1xi32>
    %c2_i32_19 = arith.constant 2 : i32
    %40 = vector.broadcast %c2_i32_19 : i32 to vector<8x1xi32>
    %41 = arith.cmpi sge, %37, %40 : vector<8x1xi32>
    %c4_i32 = arith.constant 4 : i32
    %42 = vector.broadcast %c4_i32 : i32 to vector<8x1xi32>
    %43 = arith.cmpi slt, %37, %42 : vector<8x1xi32>
    %44 = arith.andi %41, %43 : vector<8x1xi1>
    %c0_20 = arith.constant 0 : index
    %c0_21 = arith.constant 0 : index
    %45 = vector.load %arg1[%c0_20, %c0_21] : memref<8x1xi32, #tpu.memory_space<vmem>>, vector<8x1xi32>
    %46 = tpu.iota {dimensions = array<i32: 0>} : vector<8x256xi32>
    %47 = tpu.iota {dimensions = array<i32: 1>} : vector<8x256xi32>
    %c2_i32_22 = arith.constant 2 : i32
    %48 = vector.broadcast %c2_i32_22 : i32 to vector<8x256xi32>
    %49 = arith.cmpi slt, %46, %48 : vector<8x256xi32>
    %c128_i32 = arith.constant 128 : i32
    %50 = vector.broadcast %c128_i32 : i32 to vector<8x256xi32>
    %51 = arith.cmpi slt, %47, %50 : vector<8x256xi32>
    %52 = arith.andi %49, %51 : vector<8x256xi1>
    %c2_i32_23 = arith.constant 2 : i32
    %53 = vector.broadcast %c2_i32_23 : i32 to vector<8x256xi32>
    %54 = arith.cmpi sge, %46, %53 : vector<8x256xi32>
    %c4_i32_24 = arith.constant 4 : i32
    %55 = vector.broadcast %c4_i32_24 : i32 to vector<8x256xi32>
    %56 = arith.cmpi slt, %46, %55 : vector<8x256xi32>
    %57 = arith.andi %54, %56 : vector<8x256xi1>
    %c128_i32_25 = arith.constant 128 : i32
    %58 = vector.broadcast %c128_i32_25 : i32 to vector<8x256xi32>
    %59 = arith.cmpi sge, %47, %58 : vector<8x256xi32>
    %60 = arith.andi %57, %59 : vector<8x256xi1>
    %61 = arith.ori %52, %60 : vector<8x256xi1>
    %c0_i32_26 = arith.constant 0 : i32
    %c8_i32_27 = arith.constant 8 : i32
    %62 = arith.muli %c0_i32_26, %c8_i32_27 : i32
    %63 = tpu.assume_multiple %62, 8 : i32
    %64 = arith.index_cast %63 : i32 to index
    %c0_28 = arith.constant 0 : index
    %65 = vector.load %arg24[%64, %c0_28] : memref<64x512xf32, #tpu.memory_space<vmem>>, vector<8x512xf32>
    %c0_29 = arith.constant 0 : index
    %c0_30 = arith.constant 0 : index
    %66 = vector.load %arg25[%c0_29, %c0_30] : memref<8x256xf32, #tpu.memory_space<vmem>>, vector<8x256xf32>
    %67 = arith.truncf %66 : vector<8x256xf32> to vector<8x256xbf16>
    %c0_31 = arith.constant 0 : index
    %c0_32 = arith.constant 0 : index
    %68 = vector.load %arg4[%c0_31, %c0_32] : memref<256x512xbf16, #tpu.memory_space<vmem>>, vector<256x512xbf16>
    %cst_33 = arith.constant dense<0.000000e+00> : vector<8x512xf32>
    %69 = tpu.matmul %67, %68, %cst_33 {dimension_numbers = #tpu.dot_dimension_numbers<[1], [0], [0], [1], [0, 0, 1, 1], [], []>} : vector<8x256xbf16>, vector<256x512xbf16>, vector<8x512xf32> -> vector<8x512xf32>
    %70 = arith.addf %65, %69 : vector<8x512xf32>
    %71 = vector.extract_strided_slice %70 {offsets = [0, 0], sizes = [8, 128], strides = [1, 1]} : vector<8x512xf32> to vector<8x128xf32>
    %72 = arith.negf %71 : vector<8x128xf32>
    %73 = math.exp %72 : vector<8x128xf32>
    %cst_34 = arith.constant 1.000000e+00 : f32
    %74 = vector.broadcast %cst_34 : f32 to vector<8x128xf32>
    %75 = arith.addf %74, %73 : vector<8x128xf32>
    %76 = arith.divf %74, %75 : vector<8x128xf32>
    %77 = vector.extract_strided_slice %70 {offsets = [0, 128], sizes = [8, 128], strides = [1, 1]} : vector<8x512xf32> to vector<8x128xf32>
    %78 = arith.negf %77 : vector<8x128xf32>
    %79 = math.exp %78 : vector<8x128xf32>
    %cst_35 = arith.constant 1.000000e+00 : f32
    %80 = vector.broadcast %cst_35 : f32 to vector<8x128xf32>
    %81 = arith.addf %80, %79 : vector<8x128xf32>
    %82 = arith.divf %80, %81 : vector<8x128xf32>
    %83 = vector.extract_strided_slice %70 {offsets = [0, 256], sizes = [8, 128], strides = [1, 1]} : vector<8x512xf32> to vector<8x128xf32>
    %84 = math.tanh %83 : vector<8x128xf32>
    %85 = vector.extract_strided_slice %70 {offsets = [0, 384], sizes = [8, 128], strides = [1, 1]} : vector<8x512xf32> to vector<8x128xf32>
    %86 = arith.negf %85 : vector<8x128xf32>
    %87 = math.exp %86 : vector<8x128xf32>
    %cst_36 = arith.constant 1.000000e+00 : f32
    %88 = vector.broadcast %cst_36 : f32 to vector<8x128xf32>
    %89 = arith.addf %88, %87 : vector<8x128xf32>
    %90 = arith.divf %88, %89 : vector<8x128xf32>
    %c0_37 = arith.constant 0 : index
    %c0_38 = arith.constant 0 : index
    %91 = vector.load %arg26[%c0_37, %c0_38] : memref<8x128xf32, #tpu.memory_space<vmem>>, vector<8x128xf32>
    %92 = arith.mulf %82, %91 : vector<8x128xf32>
    %93 = arith.mulf %76, %84 : vector<8x128xf32>
    %94 = arith.addf %92, %93 : vector<8x128xf32>
    %95 = math.tanh %94 : vector<8x128xf32>
    %96 = arith.mulf %90, %95 : vector<8x128xf32>
    %c7_i32 = arith.constant 7 : i32
    %97 = arith.subi %c7_i32, %c0_i32_26 : i32
    %98 = vector.broadcast %c0_i32_26 : i32 to vector<8x1xi32>
    %99 = vector.broadcast %97 : i32 to vector<8x1xi32>
    %100 = arith.select %39, %98, %99 : vector<8x1xi1>, vector<8x1xi32>
    %101 = arith.cmpi slt, %100, %45 : vector<8x1xi32>
    %c0_39 = arith.constant 0 : index
    %c0_40 = arith.constant 0 : index
    %102 = vector.load %arg26[%c0_39, %c0_40] : memref<8x128xf32, #tpu.memory_space<vmem>>, vector<8x128xf32>
    %103 = vector.shape_cast %101 : vector<8x1xi1> to vector<8x1xi1>
    %104 = vector.broadcast %103 : vector<8x1xi1> to vector<8x128xi1>
    %105 = arith.select %104, %94, %102 : vector<8x128xi1>, vector<8x128xf32>
    %c0_41 = arith.constant 0 : index
    %c0_42 = arith.constant 0 : index
    %106 = vector.load %arg26[%c0_41, %c0_42] : memref<8x128xf32, #tpu.memory_space<vmem>>, vector<8x128xf32>
    tpu.vector_store %arg26[%c0_41, %c0_42], %105 {strides = array<i32>} : memref<8x128xf32, #tpu.memory_space<vmem>>, vector<8x128xf32>,
    %107 = tpu.concatenate %96, %96 in 1 : vector<8x128xf32>, vector<8x128xf32> -> vector<8x256xf32>
    %108 = vector.broadcast %101 : vector<8x1xi1> to vector<8x256xi1>
    %109 = arith.andi %108, %61 : vector<8x256xi1>
    %c0_43 = arith.constant 0 : index
    %c0_44 = arith.constant 0 : index
    %110 = vector.load %arg25[%c0_43, %c0_44] : memref<8x256xf32, #tpu.memory_space<vmem>>, vector<8x256xf32>
    %111 = arith.select %109, %107, %110 : vector<8x256xi1>, vector<8x256xf32>
    %c0_45 = arith.constant 0 : index
    %c0_46 = arith.constant 0 : index
    %112 = vector.load %arg25[%c0_45, %c0_46] : memref<8x256xf32, #tpu.memory_space<vmem>>, vector<8x256xf32>
    tpu.vector_store %arg25[%c0_45, %c0_46], %111 {strides = array<i32>} : memref<8x256xf32, #tpu.memory_space<vmem>>, vector<8x256xf32>,
    %113 = arith.andi %101, %39 : vector<8x1xi1>
    %cst_47 = arith.constant 0.000000e+00 : f32
    %114 = vector.shape_cast %113 : vector<8x1xi1> to vector<8x1xi1>
    %115 = vector.broadcast %114 : vector<8x1xi1> to vector<8x128xi1>
    %116 = vector.broadcast %cst_47 : f32 to vector<8x128xf32>
    %117 = arith.select %115, %96, %116 : vector<8x128xi1>, vector<8x128xf32>
    %118 = arith.index_cast %63 : i32 to index
    %c0_48 = arith.constant 0 : index
    %119 = vector.load %arg27[%118, %c0_48] : memref<64x128xf32, #tpu.memory_space<vmem>>, vector<8x128xf32>
    tpu.vector_store %arg27[%118, %c0_48], %117 {strides = array<i32>} : memref<64x128xf32, #tpu.memory_space<vmem>>, vector<8x128xf32>,
    %c7_i32_49 = arith.constant 7 : i32
    %120 = arith.subi %c7_i32_49, %c0_i32_26 : i32
    %c8_i32_50 = arith.constant 8 : i32
    %121 = arith.muli %120, %c8_i32_50 : i32
    %122 = tpu.assume_multiple %121, 8 : i32
    %c32_i32 = arith.constant 32 : i32
    %123 = tpu.dynamic_rotate %96 by %c32_i32 dim 1 : vector<8x128xf32>, i32 -> vector<8x128xf32>
    %124 = arith.andi %101, %44 : vector<8x1xi1>
    %cst_51 = arith.constant 0.000000e+00 : f32
    %125 = vector.shape_cast %124 : vector<8x1xi1> to vector<8x1xi1>
    %126 = vector.broadcast %125 : vector<8x1xi1> to vector<8x128xi1>
    %127 = vector.broadcast %cst_51 : f32 to vector<8x128xf32>
    %128 = arith.select %126, %123, %127 : vector<8x128xi1>, vector<8x128xf32>
    %129 = arith.index_cast %122 : i32 to index
    %c0_52 = arith.constant 0 : index
    %130 = vector.load %arg28[%129, %c0_52] : memref<64x128xf32, #tpu.memory_space<vmem>>, vector<8x128xf32>
    tpu.vector_store %arg28[%129, %c0_52], %128 {strides = array<i32>} : memref<64x128xf32, #tpu.memory_space<vmem>>, vector<8x128xf32>,
    %c1_i32_53 = arith.constant 1 : i32
    %c8_i32_54 = arith.constant 8 : i32
    %131 = arith.muli %c1_i32_53, %c8_i32_54 : i32
    %132 = tpu.assume_multiple %131, 8 : i32
    %133 = arith.index_cast %132 : i32 to index
    %c0_55 = arith.constant 0 : index
    %134 = vector.load %arg24[%133, %c0_55] : memref<64x512xf32, #tpu.memory_space<vmem>>, vector<8x512xf32>
    %c0_56 = arith.constant 0 : index
    %c0_57 = arith.constant 0 : index
    %135 = vector.load %arg25[%c0_56, %c0_57] : memref<8x256xf32, #tpu.memory_space<vmem>>, vector<8x256xf32>
    %136 = arith.truncf %135 : vector<8x256xf32> to vector<8x256xbf16>
    %c0_58 = arith.constant 0 : index
    %c0_59 = arith.constant 0 : index
    %137 = vector.load %arg4[%c0_58, %c0_59] : memref<256x512xbf16, #tpu.memory_space<vmem>>, vector<256x512xbf16>
    %cst_60 = arith.constant dense<0.000000e+00> : vector<8x512xf32>
    %138 = tpu.matmul %136, %137, %cst_60 {dimension_numbers = #tpu.dot_dimension_numbers<[1], [0], [0], [1], [0, 0, 1, 1], [], []>} : vector<8x256xbf16>, vector<256x512xbf16>, vector<8x512xf32> -> vector<8x512xf32>
    %139 = arith.addf %134, %138 : vector<8x512xf32>
    %140 = vector.extract_strided_slice %139 {offsets = [0, 0], sizes = [8, 128], strides = [1, 1]} : vector<8x512xf32> to vector<8x128xf32>
    %141 = arith.negf %140 : vector<8x128xf32>
    %142 = math.exp %141 : vector<8x128xf32>
    %cst_61 = arith.constant 1.000000e+00 : f32
    %143 = vector.broadcast %cst_61 : f32 to vector<8x128xf32>
    %144 = arith.addf %143, %142 : vector<8x128xf32>
    %145 = arith.divf %143, %144 : vector<8x128xf32>
    %146 = vector.extract_strided_slice %139 {offsets = [0, 128], sizes = [8, 128], strides = [1, 1]} : vector<8x512xf32> to vector<8x128xf32>
    %147 = arith.negf %146 : vector<8x128xf32>
    %148 = math.exp %147 : vector<8x128xf32>
    %cst_62 = arith.constant 1.000000e+00 : f32
    %149 = vector.broadcast %cst_62 : f32 to vector<8x128xf32>
    %150 = arith.addf %149, %148 : vector<8x128xf32>
    %151 = arith.divf %149, %150 : vector<8x128xf32>
    %152 = vector.extract_strided_slice %139 {offsets = [0, 256], sizes = [8, 128], strides = [1, 1]} : vector<8x512xf32> to vector<8x128xf32>
    %153 = math.tanh %152 : vector<8x128xf32>
    %154 = vector.extract_strided_slice %139 {offsets = [0, 384], sizes = [8, 128], strides = [1, 1]} : vector<8x512xf32> to vector<8x128xf32>
    %155 = arith.negf %154 : vector<8x128xf32>
    %156 = math.exp %155 : vector<8x128xf32>
    %cst_63 = arith.constant 1.000000e+00 : f32
    %157 = vector.broadcast %cst_63 : f32 to vector<8x128xf32>
    %158 = arith.addf %157, %156 : vector<8x128xf32>
    %159 = arith.divf %157, %158 : vector<8x128xf32>
    %c0_64 = arith.constant 0 : index
    %c0_65 = arith.constant 0 : index
    %160 = vector.load %arg26[%c0_64, %c0_65] : memref<8x128xf32, #tpu.memory_space<vmem>>, vector<8x128xf32>
    %161 = arith.mulf %151, %160 : vector<8x128xf32>
    %162 = arith.mulf %145, %153 : vector<8x128xf32>
    %163 = arith.addf %161, %162 : vector<8x128xf32>
    %164 = math.tanh %163 : vector<8x128xf32>
    %165 = arith.mulf %159, %164 : vector<8x128xf32>
    %c7_i32_66 = arith.constant 7 : i32
    %166 = arith.subi %c7_i32_66, %c1_i32_53 : i32
    %167 = vector.broadcast %c1_i32_53 : i32 to vector<8x1xi32>
    %168 = vector.broadcast %166 : i32 to vector<8x1xi32>
    %169 = arith.select %39, %167, %168 : vector<8x1xi1>, vector<8x1xi32>
    %170 = arith.cmpi slt, %169, %45 : vector<8x1xi32>
    %c0_67 = arith.constant 0 : index
    %c0_68 = arith.constant 0 : index
    %171 = vector.load %arg26[%c0_67, %c0_68] : memref<8x128xf32, #tpu.memory_space<vmem>>, vector<8x128xf32>
    %172 = vector.shape_cast %170 : vector<8x1xi1> to vector<8x1xi1>
    %173 = vector.broadcast %172 : vector<8x1xi1> to vector<8x128xi1>
    %174 = arith.select %173, %163, %171 : vector<8x128xi1>, vector<8x128xf32>
    %c0_69 = arith.constant 0 : index
    %c0_70 = arith.constant 0 : index
    %175 = vector.load %arg26[%c0_69, %c0_70] : memref<8x128xf32, #tpu.memory_space<vmem>>, vector<8x128xf32>
    tpu.vector_store %arg26[%c0_69, %c0_70], %174 {strides = array<i32>} : memref<8x128xf32, #tpu.memory_space<vmem>>, vector<8x128xf32>,
    %176 = tpu.concatenate %165, %165 in 1 : vector<8x128xf32>, vector<8x128xf32> -> vector<8x256xf32>
    %177 = vector.broadcast %170 : vector<8x1xi1> to vector<8x256xi1>
    %178 = arith.andi %177, %61 : vector<8x256xi1>
    %c0_71 = arith.constant 0 : index
    %c0_72 = arith.constant 0 : index
    %179 = vector.load %arg25[%c0_71, %c0_72] : memref<8x256xf32, #tpu.memory_space<vmem>>, vector<8x256xf32>
    %180 = arith.select %178, %176, %179 : vector<8x256xi1>, vector<8x256xf32>
    %c0_73 = arith.constant 0 : index
    %c0_74 = arith.constant 0 : index
    %181 = vector.load %arg25[%c0_73, %c0_74] : memref<8x256xf32, #tpu.memory_space<vmem>>, vector<8x256xf32>
    tpu.vector_store %arg25[%c0_73, %c0_74], %180 {strides = array<i32>} : memref<8x256xf32, #tpu.memory_space<vmem>>, vector<8x256xf32>,
    %182 = arith.andi %170, %39 : vector<8x1xi1>
    %cst_75 = arith.constant 0.000000e+00 : f32
    %183 = vector.shape_cast %182 : vector<8x1xi1> to vector<8x1xi1>
    %184 = vector.broadcast %183 : vector<8x1xi1> to vector<8x128xi1>
    %185 = vector.broadcast %cst_75 : f32 to vector<8x128xf32>
    %186 = arith.select %184, %165, %185 : vector<8x128xi1>, vector<8x128xf32>
    %187 = arith.index_cast %132 : i32 to index
    %c0_76 = arith.constant 0 : index
    %188 = vector.load %arg27[%187, %c0_76] : memref<64x128xf32, #tpu.memory_space<vmem>>, vector<8x128xf32>
    tpu.vector_store %arg27[%187, %c0_76], %186 {strides = array<i32>} : memref<64x128xf32, #tpu.memory_space<vmem>>, vector<8x128xf32>,
    %c7_i32_77 = arith.constant 7 : i32
    %189 = arith.subi %c7_i32_77, %c1_i32_53 : i32
    %c8_i32_78 = arith.constant 8 : i32
    %190 = arith.muli %189, %c8_i32_78 : i32
    %191 = tpu.assume_multiple %190, 8 : i32
    %c32_i32_79 = arith.constant 32 : i32
    %192 = tpu.dynamic_rotate %165 by %c32_i32_79 dim 1 : vector<8x128xf32>, i32 -> vector<8x128xf32>
    %193 = arith.andi %170, %44 : vector<8x1xi1>
    %cst_80 = arith.constant 0.000000e+00 : f32
    %194 = vector.shape_cast %193 : vector<8x1xi1> to vector<8x1xi1>
    %195 = vector.broadcast %194 : vector<8x1xi1> to vector<8x128xi1>
    %196 = vector.broadcast %cst_80 : f32 to vector<8x128xf32>
    %197 = arith.select %195, %192, %196 : vector<8x128xi1>, vector<8x128xf32>
    %198 = arith.index_cast %191 : i32 to index
    %c0_81 = arith.constant 0 : index
    %199 = vector.load %arg28[%198, %c0_81] : memref<64x128xf32, #tpu.memory_space<vmem>>, vector<8x128xf32>
    tpu.vector_store %arg28[%198, %c0_81], %197 {strides = array<i32>} : memref<64x128xf32, #tpu.memory_space<vmem>>, vector<8x128xf32>,
    %c2_i32_82 = arith.constant 2 : i32
    %c8_i32_83 = arith.constant 8 : i32
    %200 = arith.muli %c2_i32_82, %c8_i32_83 : i32
    %201 = tpu.assume_multiple %200, 8 : i32
    %202 = arith.index_cast %201 : i32 to index
    %c0_84 = arith.constant 0 : index
    %203 = vector.load %arg24[%202, %c0_84] : memref<64x512xf32, #tpu.memory_space<vmem>>, vector<8x512xf32>
    %c0_85 = arith.constant 0 : index
    %c0_86 = arith.constant 0 : index
    %204 = vector.load %arg25[%c0_85, %c0_86] : memref<8x256xf32, #tpu.memory_space<vmem>>, vector<8x256xf32>
    %205 = arith.truncf %204 : vector<8x256xf32> to vector<8x256xbf16>
    %c0_87 = arith.constant 0 : index
    %c0_88 = arith.constant 0 : index
    %206 = vector.load %arg4[%c0_87, %c0_88] : memref<256x512xbf16, #tpu.memory_space<vmem>>, vector<256x512xbf16>
    %cst_89 = arith.constant dense<0.000000e+00> : vector<8x512xf32>
    %207 = tpu.matmul %205, %206, %cst_89 {dimension_numbers = #tpu.dot_dimension_numbers<[1], [0], [0], [1], [0, 0, 1, 1], [], []>} : vector<8x256xbf16>, vector<256x512xbf16>, vector<8x512xf32> -> vector<8x512xf32>
    %208 = arith.addf %203, %207 : vector<8x512xf32>
    %209 = vector.extract_strided_slice %208 {offsets = [0, 0], sizes = [8, 128], strides = [1, 1]} : vector<8x512xf32> to vector<8x128xf32>
    %210 = arith.negf %209 : vector<8x128xf32>
    %211 = math.exp %210 : vector<8x128xf32>
    %cst_90 = arith.constant 1.000000e+00 : f32
    %212 = vector.broadcast %cst_90 : f32 to vector<8x128xf32>
    %213 = arith.addf %212, %211 : vector<8x128xf32>
    %214 = arith.divf %212, %213 : vector<8x128xf32>
    %215 = vector.extract_strided_slice %208 {offsets = [0, 128], sizes = [8, 128], strides = [1, 1]} : vector<8x512xf32> to vector<8x128xf32>
    %216 = arith.negf %215 : vector<8x128xf32>
    %217 = math.exp %216 : vector<8x128xf32>
    %cst_91 = arith.constant 1.000000e+00 : f32
    %218 = vector.broadcast %cst_91 : f32 to vector<8x128xf32>
    %219 = arith.addf %218, %217 : vector<8x128xf32>
    %220 = arith.divf %218, %219 : vector<8x128xf32>
    %221 = vector.extract_strided_slice %208 {offsets = [0, 256], sizes = [8, 128], strides = [1, 1]} : vector<8x512xf32> to vector<8x128xf32>
    %222 = math.tanh %221 : vector<8x128xf32>
    %223 = vector.extract_strided_slice %208 {offsets = [0, 384], sizes = [8, 128], strides = [1, 1]} : vector<8x512xf32> to vector<8x128xf32>
    %224 = arith.negf %223 : vector<8x128xf32>
    %225 = math.exp %224 : vector<8x128xf32>
    %cst_92 = arith.constant 1.000000e+00 : f32
    %226 = vector.broadcast %cst_92 : f32 to vector<8x128xf32>
    %227 = arith.addf %226, %225 : vector<8x128xf32>
    %228 = arith.divf %226, %227 : vector<8x128xf32>
    %c0_93 = arith.constant 0 : index
    %c0_94 = arith.constant 0 : index
    %229 = vector.load %arg26[%c0_93, %c0_94] : memref<8x128xf32, #tpu.memory_space<vmem>>, vector<8x128xf32>
    %230 = arith.mulf %220, %229 : vector<8x128xf32>
    %231 = arith.mulf %214, %222 : vector<8x128xf32>
    %232 = arith.addf %230, %231 : vector<8x128xf32>
    %233 = math.tanh %232 : vector<8x128xf32>
    %234 = arith.mulf %228, %233 : vector<8x128xf32>
    %c7_i32_95 = arith.constant 7 : i32
    %235 = arith.subi %c7_i32_95, %c2_i32_82 : i32
    %236 = vector.broadcast %c2_i32_82 : i32 to vector<8x1xi32>
    %237 = vector.broadcast %235 : i32 to vector<8x1xi32>
    %238 = arith.select %39, %236, %237 : vector<8x1xi1>, vector<8x1xi32>
    %239 = arith.cmpi slt, %238, %45 : vector<8x1xi32>
    %c0_96 = arith.constant 0 : index
    %c0_97 = arith.constant 0 : index
    %240 = vector.load %arg26[%c0_96, %c0_97] : memref<8x128xf32, #tpu.memory_space<vmem>>, vector<8x128xf32>
    %241 = vector.shape_cast %239 : vector<8x1xi1> to vector<8x1xi1>
    %242 = vector.broadcast %241 : vector<8x1xi1> to vector<8x128xi1>
    %243 = arith.select %242, %232, %240 : vector<8x128xi1>, vector<8x128xf32>
    %c0_98 = arith.constant 0 : index
    %c0_99 = arith.constant 0 : index
    %244 = vector.load %arg26[%c0_98, %c0_99] : memref<8x128xf32, #tpu.memory_space<vmem>>, vector<8x128xf32>
    tpu.vector_store %arg26[%c0_98, %c0_99], %243 {strides = array<i32>} : memref<8x128xf32, #tpu.memory_space<vmem>>, vector<8x128xf32>,
    %245 = tpu.concatenate %234, %234 in 1 : vector<8x128xf32>, vector<8x128xf32> -> vector<8x256xf32>
    %246 = vector.broadcast %239 : vector<8x1xi1> to vector<8x256xi1>
    %247 = arith.andi %246, %61 : vector<8x256xi1>
    %c0_100 = arith.constant 0 : index
    %c0_101 = arith.constant 0 : index
    %248 = vector.load %arg25[%c0_100, %c0_101] : memref<8x256xf32, #tpu.memory_space<vmem>>, vector<8x256xf32>
    %249 = arith.select %247, %245, %248 : vector<8x256xi1>, vector<8x256xf32>
    %c0_102 = arith.constant 0 : index
    %c0_103 = arith.constant 0 : index
    %250 = vector.load %arg25[%c0_102, %c0_103] : memref<8x256xf32, #tpu.memory_space<vmem>>, vector<8x256xf32>
    tpu.vector_store %arg25[%c0_102, %c0_103], %249 {strides = array<i32>} : memref<8x256xf32, #tpu.memory_space<vmem>>, vector<8x256xf32>,
    %251 = arith.andi %239, %39 : vector<8x1xi1>
    %cst_104 = arith.constant 0.000000e+00 : f32
    %252 = vector.shape_cast %251 : vector<8x1xi1> to vector<8x1xi1>
    %253 = vector.broadcast %252 : vector<8x1xi1> to vector<8x128xi1>
    %254 = vector.broadcast %cst_104 : f32 to vector<8x128xf32>
    %255 = arith.select %253, %234, %254 : vector<8x128xi1>, vector<8x128xf32>
    %256 = arith.index_cast %201 : i32 to index
    %c0_105 = arith.constant 0 : index
    %257 = vector.load %arg27[%256, %c0_105] : memref<64x128xf32, #tpu.memory_space<vmem>>, vector<8x128xf32>
    tpu.vector_store %arg27[%256, %c0_105], %255 {strides = array<i32>} : memref<64x128xf32, #tpu.memory_space<vmem>>, vector<8x128xf32>,
    %c7_i32_106 = arith.constant 7 : i32
    %258 = arith.subi %c7_i32_106, %c2_i32_82 : i32
    %c8_i32_107 = arith.constant 8 : i32
    %259 = arith.muli %258, %c8_i32_107 : i32
    %260 = tpu.assume_multiple %259, 8 : i32
    %c32_i32_108 = arith.constant 32 : i32
    %261 = tpu.dynamic_rotate %234 by %c32_i32_108 dim 1 : vector<8x128xf32>, i32 -> vector<8x128xf32>
    %262 = arith.andi %239, %44 : vector<8x1xi1>
    %cst_109 = arith.constant 0.000000e+00 : f32
    %263 = vector.shape_cast %262 : vector<8x1xi1> to vector<8x1xi1>
    %264 = vector.broadcast %263 : vector<8x1xi1> to vector<8x128xi1>
    %265 = vector.broadcast %cst_109 : f32 to vector<8x128xf32>
    %266 = arith.select %264, %261, %265 : vector<8x128xi1>, vector<8x128xf32>
    %267 = arith.index_cast %260 : i32 to index
    %c0_110 = arith.constant 0 : index
    %268 = vector.load %arg28[%267, %c0_110] : memref<64x128xf32, #tpu.memory_space<vmem>>, vector<8x128xf32>
    tpu.vector_store %arg28[%267, %c0_110], %266 {strides = array<i32>} : memref<64x128xf32, #tpu.memory_space<vmem>>, vector<8x128xf32>,
    %c3_i32 = arith.constant 3 : i32
    %c8_i32_111 = arith.constant 8 : i32
    %269 = arith.muli %c3_i32, %c8_i32_111 : i32
    %270 = tpu.assume_multiple %269, 8 : i32
    %271 = arith.index_cast %270 : i32 to index
    %c0_112 = arith.constant 0 : index
    %272 = vector.load %arg24[%271, %c0_112] : memref<64x512xf32, #tpu.memory_space<vmem>>, vector<8x512xf32>
    %c0_113 = arith.constant 0 : index
    %c0_114 = arith.constant 0 : index
    %273 = vector.load %arg25[%c0_113, %c0_114] : memref<8x256xf32, #tpu.memory_space<vmem>>, vector<8x256xf32>
    %274 = arith.truncf %273 : vector<8x256xf32> to vector<8x256xbf16>
    %c0_115 = arith.constant 0 : index
    %c0_116 = arith.constant 0 : index
    %275 = vector.load %arg4[%c0_115, %c0_116] : memref<256x512xbf16, #tpu.memory_space<vmem>>, vector<256x512xbf16>
    %cst_117 = arith.constant dense<0.000000e+00> : vector<8x512xf32>
    %276 = tpu.matmul %274, %275, %cst_117 {dimension_numbers = #tpu.dot_dimension_numbers<[1], [0], [0], [1], [0, 0, 1, 1], [], []>} : vector<8x256xbf16>, vector<256x512xbf16>, vector<8x512xf32> -> vector<8x512xf32>
    %277 = arith.addf %272, %276 : vector<8x512xf32>
    %278 = vector.extract_strided_slice %277 {offsets = [0, 0], sizes = [8, 128], strides = [1, 1]} : vector<8x512xf32> to vector<8x128xf32>
    %279 = arith.negf %278 : vector<8x128xf32>
    %280 = math.exp %279 : vector<8x128xf32>
    %cst_118 = arith.constant 1.000000e+00 : f32
    %281 = vector.broadcast %cst_118 : f32 to vector<8x128xf32>
    %282 = arith.addf %281, %280 : vector<8x128xf32>
    %283 = arith.divf %281, %282 : vector<8x128xf32>
    %284 = vector.extract_strided_slice %277 {offsets = [0, 128], sizes = [8, 128], strides = [1, 1]} : vector<8x512xf32> to vector<8x128xf32>
    %285 = arith.negf %284 : vector<8x128xf32>
    %286 = math.exp %285 : vector<8x128xf32>
    %cst_119 = arith.constant 1.000000e+00 : f32
    %287 = vector.broadcast %cst_119 : f32 to vector<8x128xf32>
    %288 = arith.addf %287, %286 : vector<8x128xf32>
    %289 = arith.divf %287, %288 : vector<8x128xf32>
    %290 = vector.extract_strided_slice %277 {offsets = [0, 256], sizes = [8, 128], strides = [1, 1]} : vector<8x512xf32> to vector<8x128xf32>
    %291 = math.tanh %290 : vector<8x128xf32>
    %292 = vector.extract_strided_slice %277 {offsets = [0, 384], sizes = [8, 128], strides = [1, 1]} : vector<8x512xf32> to vector<8x128xf32>
    %293 = arith.negf %292 : vector<8x128xf32>
    %294 = math.exp %293 : vector<8x128xf32>
    %cst_120 = arith.constant 1.000000e+00 : f32
    %295 = vector.broadcast %cst_120 : f32 to vector<8x128xf32>
    %296 = arith.addf %295, %294 : vector<8x128xf32>
    %297 = arith.divf %295, %296 : vector<8x128xf32>
    %c0_121 = arith.constant 0 : index
    %c0_122 = arith.constant 0 : index
    %298 = vector.load %arg26[%c0_121, %c0_122] : memref<8x128xf32, #tpu.memory_space<vmem>>, vector<8x128xf32>
    %299 = arith.mulf %289, %298 : vector<8x128xf32>
    %300 = arith.mulf %283, %291 : vector<8x128xf32>
    %301 = arith.addf %299, %300 : vector<8x128xf32>
    %302 = math.tanh %301 : vector<8x128xf32>
    %303 = arith.mulf %297, %302 : vector<8x128xf32>
    %c7_i32_123 = arith.constant 7 : i32
    %304 = arith.subi %c7_i32_123, %c3_i32 : i32
    %305 = vector.broadcast %c3_i32 : i32 to vector<8x1xi32>
    %306 = vector.broadcast %304 : i32 to vector<8x1xi32>
    %307 = arith.select %39, %305, %306 : vector<8x1xi1>, vector<8x1xi32>
    %308 = arith.cmpi slt, %307, %45 : vector<8x1xi32>
    %c0_124 = arith.constant 0 : index
    %c0_125 = arith.constant 0 : index
    %309 = vector.load %arg26[%c0_124, %c0_125] : memref<8x128xf32, #tpu.memory_space<vmem>>, vector<8x128xf32>
    %310 = vector.shape_cast %308 : vector<8x1xi1> to vector<8x1xi1>
    %311 = vector.broadcast %310 : vector<8x1xi1> to vector<8x128xi1>
    %312 = arith.select %311, %301, %309 : vector<8x128xi1>, vector<8x128xf32>
    %c0_126 = arith.constant 0 : index
    %c0_127 = arith.constant 0 : index
    %313 = vector.load %arg26[%c0_126, %c0_127] : memref<8x128xf32, #tpu.memory_space<vmem>>, vector<8x128xf32>
    tpu.vector_store %arg26[%c0_126, %c0_127], %312 {strides = array<i32>} : memref<8x128xf32, #tpu.memory_space<vmem>>, vector<8x128xf32>,
    %314 = tpu.concatenate %303, %303 in 1 : vector<8x128xf32>, vector<8x128xf32> -> vector<8x256xf32>
    %315 = vector.broadcast %308 : vector<8x1xi1> to vector<8x256xi1>
    %316 = arith.andi %315, %61 : vector<8x256xi1>
    %c0_128 = arith.constant 0 : index
    %c0_129 = arith.constant 0 : index
    %317 = vector.load %arg25[%c0_128, %c0_129] : memref<8x256xf32, #tpu.memory_space<vmem>>, vector<8x256xf32>
    %318 = arith.select %316, %314, %317 : vector<8x256xi1>, vector<8x256xf32>
    %c0_130 = arith.constant 0 : index
    %c0_131 = arith.constant 0 : index
    %319 = vector.load %arg25[%c0_130, %c0_131] : memref<8x256xf32, #tpu.memory_space<vmem>>, vector<8x256xf32>
    tpu.vector_store %arg25[%c0_130, %c0_131], %318 {strides = array<i32>} : memref<8x256xf32, #tpu.memory_space<vmem>>, vector<8x256xf32>,
    %320 = arith.andi %308, %39 : vector<8x1xi1>
    %cst_132 = arith.constant 0.000000e+00 : f32
    %321 = vector.shape_cast %320 : vector<8x1xi1> to vector<8x1xi1>
    %322 = vector.broadcast %321 : vector<8x1xi1> to vector<8x128xi1>
    %323 = vector.broadcast %cst_132 : f32 to vector<8x128xf32>
    %324 = arith.select %322, %303, %323 : vector<8x128xi1>, vector<8x128xf32>
    %325 = arith.index_cast %270 : i32 to index
    %c0_133 = arith.constant 0 : index
    %326 = vector.load %arg27[%325, %c0_133] : memref<64x128xf32, #tpu.memory_space<vmem>>, vector<8x128xf32>
    tpu.vector_store %arg27[%325, %c0_133], %324 {strides = array<i32>} : memref<64x128xf32, #tpu.memory_space<vmem>>, vector<8x128xf32>,
    %c7_i32_134 = arith.constant 7 : i32
    %327 = arith.subi %c7_i32_134, %c3_i32 : i32
    %c8_i32_135 = arith.constant 8 : i32
    %328 = arith.muli %327, %c8_i32_135 : i32
    %329 = tpu.assume_multiple %328, 8 : i32
    %c32_i32_136 = arith.constant 32 : i32
    %330 = tpu.dynamic_rotate %303 by %c32_i32_136 dim 1 : vector<8x128xf32>, i32 -> vector<8x128xf32>
    %331 = arith.andi %308, %44 : vector<8x1xi1>
    %cst_137 = arith.constant 0.000000e+00 : f32
    %332 = vector.shape_cast %331 : vector<8x1xi1> to vector<8x1xi1>
    %333 = vector.broadcast %332 : vector<8x1xi1> to vector<8x128xi1>
    %334 = vector.broadcast %cst_137 : f32 to vector<8x128xf32>
    %335 = arith.select %333, %330, %334 : vector<8x128xi1>, vector<8x128xf32>
    %336 = arith.index_cast %329 : i32 to index
    %c0_138 = arith.constant 0 : index
    %337 = vector.load %arg28[%336, %c0_138] : memref<64x128xf32, #tpu.memory_space<vmem>>, vector<8x128xf32>
    tpu.vector_store %arg28[%336, %c0_138], %335 {strides = array<i32>} : memref<64x128xf32, #tpu.memory_space<vmem>>, vector<8x128xf32>,
    %c4_i32_139 = arith.constant 4 : i32
    %c8_i32_140 = arith.constant 8 : i32
    %338 = arith.muli %c4_i32_139, %c8_i32_140 : i32
    %339 = tpu.assume_multiple %338, 8 : i32
    %340 = arith.index_cast %339 : i32 to index
    %c0_141 = arith.constant 0 : index
    %341 = vector.load %arg24[%340, %c0_141] : memref<64x512xf32, #tpu.memory_space<vmem>>, vector<8x512xf32>
    %c0_142 = arith.constant 0 : index
    %c0_143 = arith.constant 0 : index
    %342 = vector.load %arg25[%c0_142, %c0_143] : memref<8x256xf32, #tpu.memory_space<vmem>>, vector<8x256xf32>
    %343 = arith.truncf %342 : vector<8x256xf32> to vector<8x256xbf16>
    %c0_144 = arith.constant 0 : index
    %c0_145 = arith.constant 0 : index
    %344 = vector.load %arg4[%c0_144, %c0_145] : memref<256x512xbf16, #tpu.memory_space<vmem>>, vector<256x512xbf16>
    %cst_146 = arith.constant dense<0.000000e+00> : vector<8x512xf32>
    %345 = tpu.matmul %343, %344, %cst_146 {dimension_numbers = #tpu.dot_dimension_numbers<[1], [0], [0], [1], [0, 0, 1, 1], [], []>} : vector<8x256xbf16>, vector<256x512xbf16>, vector<8x512xf32> -> vector<8x512xf32>
    %346 = arith.addf %341, %345 : vector<8x512xf32>
    %347 = vector.extract_strided_slice %346 {offsets = [0, 0], sizes = [8, 128], strides = [1, 1]} : vector<8x512xf32> to vector<8x128xf32>
    %348 = arith.negf %347 : vector<8x128xf32>
    %349 = math.exp %348 : vector<8x128xf32>
    %cst_147 = arith.constant 1.000000e+00 : f32
    %350 = vector.broadcast %cst_147 : f32 to vector<8x128xf32>
    %351 = arith.addf %350, %349 : vector<8x128xf32>
    %352 = arith.divf %350, %351 : vector<8x128xf32>
    %353 = vector.extract_strided_slice %346 {offsets = [0, 128], sizes = [8, 128], strides = [1, 1]} : vector<8x512xf32> to vector<8x128xf32>
    %354 = arith.negf %353 : vector<8x128xf32>
    %355 = math.exp %354 : vector<8x128xf32>
    %cst_148 = arith.constant 1.000000e+00 : f32
    %356 = vector.broadcast %cst_148 : f32 to vector<8x128xf32>
    %357 = arith.addf %356, %355 : vector<8x128xf32>
    %358 = arith.divf %356, %357 : vector<8x128xf32>
    %359 = vector.extract_strided_slice %346 {offsets = [0, 256], sizes = [8, 128], strides = [1, 1]} : vector<8x512xf32> to vector<8x128xf32>
    %360 = math.tanh %359 : vector<8x128xf32>
    %361 = vector.extract_strided_slice %346 {offsets = [0, 384], sizes = [8, 128], strides = [1, 1]} : vector<8x512xf32> to vector<8x128xf32>
    %362 = arith.negf %361 : vector<8x128xf32>
    %363 = math.exp %362 : vector<8x128xf32>
    %cst_149 = arith.constant 1.000000e+00 : f32
    %364 = vector.broadcast %cst_149 : f32 to vector<8x128xf32>
    %365 = arith.addf %364, %363 : vector<8x128xf32>
    %366 = arith.divf %364, %365 : vector<8x128xf32>
    %c0_150 = arith.constant 0 : index
    %c0_151 = arith.constant 0 : index
    %367 = vector.load %arg26[%c0_150, %c0_151] : memref<8x128xf32, #tpu.memory_space<vmem>>, vector<8x128xf32>
    %368 = arith.mulf %358, %367 : vector<8x128xf32>
    %369 = arith.mulf %352, %360 : vector<8x128xf32>
    %370 = arith.addf %368, %369 : vector<8x128xf32>
    %371 = math.tanh %370 : vector<8x128xf32>
    %372 = arith.mulf %366, %371 : vector<8x128xf32>
    %c7_i32_152 = arith.constant 7 : i32
    %373 = arith.subi %c7_i32_152, %c4_i32_139 : i32
    %374 = vector.broadcast %c4_i32_139 : i32 to vector<8x1xi32>
    %375 = vector.broadcast %373 : i32 to vector<8x1xi32>
    %376 = arith.select %39, %374, %375 : vector<8x1xi1>, vector<8x1xi32>
    %377 = arith.cmpi slt, %376, %45 : vector<8x1xi32>
    %c0_153 = arith.constant 0 : index
    %c0_154 = arith.constant 0 : index
    %378 = vector.load %arg26[%c0_153, %c0_154] : memref<8x128xf32, #tpu.memory_space<vmem>>, vector<8x128xf32>
    %379 = vector.shape_cast %377 : vector<8x1xi1> to vector<8x1xi1>
    %380 = vector.broadcast %379 : vector<8x1xi1> to vector<8x128xi1>
    %381 = arith.select %380, %370, %378 : vector<8x128xi1>, vector<8x128xf32>
    %c0_155 = arith.constant 0 : index
    %c0_156 = arith.constant 0 : index
    %382 = vector.load %arg26[%c0_155, %c0_156] : memref<8x128xf32, #tpu.memory_space<vmem>>, vector<8x128xf32>
    tpu.vector_store %arg26[%c0_155, %c0_156], %381 {strides = array<i32>} : memref<8x128xf32, #tpu.memory_space<vmem>>, vector<8x128xf32>,
    %383 = tpu.concatenate %372, %372 in 1 : vector<8x128xf32>, vector<8x128xf32> -> vector<8x256xf32>
    %384 = vector.broadcast %377 : vector<8x1xi1> to vector<8x256xi1>
    %385 = arith.andi %384, %61 : vector<8x256xi1>
    %c0_157 = arith.constant 0 : index
    %c0_158 = arith.constant 0 : index
    %386 = vector.load %arg25[%c0_157, %c0_158] : memref<8x256xf32, #tpu.memory_space<vmem>>, vector<8x256xf32>
    %387 = arith.select %385, %383, %386 : vector<8x256xi1>, vector<8x256xf32>
    %c0_159 = arith.constant 0 : index
    %c0_160 = arith.constant 0 : index
    %388 = vector.load %arg25[%c0_159, %c0_160] : memref<8x256xf32, #tpu.memory_space<vmem>>, vector<8x256xf32>
    tpu.vector_store %arg25[%c0_159, %c0_160], %387 {strides = array<i32>} : memref<8x256xf32, #tpu.memory_space<vmem>>, vector<8x256xf32>,
    %389 = arith.andi %377, %39 : vector<8x1xi1>
    %cst_161 = arith.constant 0.000000e+00 : f32
    %390 = vector.shape_cast %389 : vector<8x1xi1> to vector<8x1xi1>
    %391 = vector.broadcast %390 : vector<8x1xi1> to vector<8x128xi1>
    %392 = vector.broadcast %cst_161 : f32 to vector<8x128xf32>
    %393 = arith.select %391, %372, %392 : vector<8x128xi1>, vector<8x128xf32>
    %394 = arith.index_cast %339 : i32 to index
    %c0_162 = arith.constant 0 : index
    %395 = vector.load %arg27[%394, %c0_162] : memref<64x128xf32, #tpu.memory_space<vmem>>, vector<8x128xf32>
    tpu.vector_store %arg27[%394, %c0_162], %393 {strides = array<i32>} : memref<64x128xf32, #tpu.memory_space<vmem>>, vector<8x128xf32>,
    %c7_i32_163 = arith.constant 7 : i32
    %396 = arith.subi %c7_i32_163, %c4_i32_139 : i32
    %c8_i32_164 = arith.constant 8 : i32
    %397 = arith.muli %396, %c8_i32_164 : i32
    %398 = tpu.assume_multiple %397, 8 : i32
    %c32_i32_165 = arith.constant 32 : i32
    %399 = tpu.dynamic_rotate %372 by %c32_i32_165 dim 1 : vector<8x128xf32>, i32 -> vector<8x128xf32>
    %400 = arith.andi %377, %44 : vector<8x1xi1>
    %cst_166 = arith.constant 0.000000e+00 : f32
    %401 = vector.shape_cast %400 : vector<8x1xi1> to vector<8x1xi1>
    %402 = vector.broadcast %401 : vector<8x1xi1> to vector<8x128xi1>
    %403 = vector.broadcast %cst_166 : f32 to vector<8x128xf32>
    %404 = arith.select %402, %399, %403 : vector<8x128xi1>, vector<8x128xf32>
    %405 = arith.index_cast %398 : i32 to index
    %c0_167 = arith.constant 0 : index
    %406 = vector.load %arg28[%405, %c0_167] : memref<64x128xf32, #tpu.memory_space<vmem>>, vector<8x128xf32>
    tpu.vector_store %arg28[%405, %c0_167], %404 {strides = array<i32>} : memref<64x128xf32, #tpu.memory_space<vmem>>, vector<8x128xf32>,
    %c5_i32 = arith.constant 5 : i32
    %c8_i32_168 = arith.constant 8 : i32
    %407 = arith.muli %c5_i32, %c8_i32_168 : i32
    %408 = tpu.assume_multiple %407, 8 : i32
    %409 = arith.index_cast %408 : i32 to index
    %c0_169 = arith.constant 0 : index
    %410 = vector.load %arg24[%409, %c0_169] : memref<64x512xf32, #tpu.memory_space<vmem>>, vector<8x512xf32>
    %c0_170 = arith.constant 0 : index
    %c0_171 = arith.constant 0 : index
    %411 = vector.load %arg25[%c0_170, %c0_171] : memref<8x256xf32, #tpu.memory_space<vmem>>, vector<8x256xf32>
    %412 = arith.truncf %411 : vector<8x256xf32> to vector<8x256xbf16>
    %c0_172 = arith.constant 0 : index
    %c0_173 = arith.constant 0 : index
    %413 = vector.load %arg4[%c0_172, %c0_173] : memref<256x512xbf16, #tpu.memory_space<vmem>>, vector<256x512xbf16>
    %cst_174 = arith.constant dense<0.000000e+00> : vector<8x512xf32>
    %414 = tpu.matmul %412, %413, %cst_174 {dimension_numbers = #tpu.dot_dimension_numbers<[1], [0], [0], [1], [0, 0, 1, 1], [], []>} : vector<8x256xbf16>, vector<256x512xbf16>, vector<8x512xf32> -> vector<8x512xf32>
    %415 = arith.addf %410, %414 : vector<8x512xf32>
    %416 = vector.extract_strided_slice %415 {offsets = [0, 0], sizes = [8, 128], strides = [1, 1]} : vector<8x512xf32> to vector<8x128xf32>
    %417 = arith.negf %416 : vector<8x128xf32>
    %418 = math.exp %417 : vector<8x128xf32>
    %cst_175 = arith.constant 1.000000e+00 : f32
    %419 = vector.broadcast %cst_175 : f32 to vector<8x128xf32>
    %420 = arith.addf %419, %418 : vector<8x128xf32>
    %421 = arith.divf %419, %420 : vector<8x128xf32>
    %422 = vector.extract_strided_slice %415 {offsets = [0, 128], sizes = [8, 128], strides = [1, 1]} : vector<8x512xf32> to vector<8x128xf32>
    %423 = arith.negf %422 : vector<8x128xf32>
    %424 = math.exp %423 : vector<8x128xf32>
    %cst_176 = arith.constant 1.000000e+00 : f32
    %425 = vector.broadcast %cst_176 : f32 to vector<8x128xf32>
    %426 = arith.addf %425, %424 : vector<8x128xf32>
    %427 = arith.divf %425, %426 : vector<8x128xf32>
    %428 = vector.extract_strided_slice %415 {offsets = [0, 256], sizes = [8, 128], strides = [1, 1]} : vector<8x512xf32> to vector<8x128xf32>
    %429 = math.tanh %428 : vector<8x128xf32>
    %430 = vector.extract_strided_slice %415 {offsets = [0, 384], sizes = [8, 128], strides = [1, 1]} : vector<8x512xf32> to vector<8x128xf32>
    %431 = arith.negf %430 : vector<8x128xf32>
    %432 = math.exp %431 : vector<8x128xf32>
    %cst_177 = arith.constant 1.000000e+00 : f32
    %433 = vector.broadcast %cst_177 : f32 to vector<8x128xf32>
    %434 = arith.addf %433, %432 : vector<8x128xf32>
    %435 = arith.divf %433, %434 : vector<8x128xf32>
    %c0_178 = arith.constant 0 : index
    %c0_179 = arith.constant 0 : index
    %436 = vector.load %arg26[%c0_178, %c0_179] : memref<8x128xf32, #tpu.memory_space<vmem>>, vector<8x128xf32>
    %437 = arith.mulf %427, %436 : vector<8x128xf32>
    %438 = arith.mulf %421, %429 : vector<8x128xf32>
    %439 = arith.addf %437, %438 : vector<8x128xf32>
    %440 = math.tanh %439 : vector<8x128xf32>
    %441 = arith.mulf %435, %440 : vector<8x128xf32>
    %c7_i32_180 = arith.constant 7 : i32
    %442 = arith.subi %c7_i32_180, %c5_i32 : i32
    %443 = vector.broadcast %c5_i32 : i32 to vector<8x1xi32>
    %444 = vector.broadcast %442 : i32 to vector<8x1xi32>
    %445 = arith.select %39, %443, %444 : vector<8x1xi1>, vector<8x1xi32>
    %446 = arith.cmpi slt, %445, %45 : vector<8x1xi32>
    %c0_181 = arith.constant 0 : index
    %c0_182 = arith.constant 0 : index
    %447 = vector.load %arg26[%c0_181, %c0_182] : memref<8x128xf32, #tpu.memory_space<vmem>>, vector<8x128xf32>
    %448 = vector.shape_cast %446 : vector<8x1xi1> to vector<8x1xi1>
    %449 = vector.broadcast %448 : vector<8x1xi1> to vector<8x128xi1>
    %450 = arith.select %449, %439, %447 : vector<8x128xi1>, vector<8x128xf32>
    %c0_183 = arith.constant 0 : index
    %c0_184 = arith.constant 0 : index
    %451 = vector.load %arg26[%c0_183, %c0_184] : memref<8x128xf32, #tpu.memory_space<vmem>>, vector<8x128xf32>
    tpu.vector_store %arg26[%c0_183, %c0_184], %450 {strides = array<i32>} : memref<8x128xf32, #tpu.memory_space<vmem>>, vector<8x128xf32>,
    %452 = tpu.concatenate %441, %441 in 1 : vector<8x128xf32>, vector<8x128xf32> -> vector<8x256xf32>
    %453 = vector.broadcast %446 : vector<8x1xi1> to vector<8x256xi1>
    %454 = arith.andi %453, %61 : vector<8x256xi1>
    %c0_185 = arith.constant 0 : index
    %c0_186 = arith.constant 0 : index
    %455 = vector.load %arg25[%c0_185, %c0_186] : memref<8x256xf32, #tpu.memory_space<vmem>>, vector<8x256xf32>
    %456 = arith.select %454, %452, %455 : vector<8x256xi1>, vector<8x256xf32>
    %c0_187 = arith.constant 0 : index
    %c0_188 = arith.constant 0 : index
    %457 = vector.load %arg25[%c0_187, %c0_188] : memref<8x256xf32, #tpu.memory_space<vmem>>, vector<8x256xf32>
    tpu.vector_store %arg25[%c0_187, %c0_188], %456 {strides = array<i32>} : memref<8x256xf32, #tpu.memory_space<vmem>>, vector<8x256xf32>,
    %458 = arith.andi %446, %39 : vector<8x1xi1>
    %cst_189 = arith.constant 0.000000e+00 : f32
    %459 = vector.shape_cast %458 : vector<8x1xi1> to vector<8x1xi1>
    %460 = vector.broadcast %459 : vector<8x1xi1> to vector<8x128xi1>
    %461 = vector.broadcast %cst_189 : f32 to vector<8x128xf32>
    %462 = arith.select %460, %441, %461 : vector<8x128xi1>, vector<8x128xf32>
    %463 = arith.index_cast %408 : i32 to index
    %c0_190 = arith.constant 0 : index
    %464 = vector.load %arg27[%463, %c0_190] : memref<64x128xf32, #tpu.memory_space<vmem>>, vector<8x128xf32>
    tpu.vector_store %arg27[%463, %c0_190], %462 {strides = array<i32>} : memref<64x128xf32, #tpu.memory_space<vmem>>, vector<8x128xf32>,
    %c7_i32_191 = arith.constant 7 : i32
    %465 = arith.subi %c7_i32_191, %c5_i32 : i32
    %c8_i32_192 = arith.constant 8 : i32
    %466 = arith.muli %465, %c8_i32_192 : i32
    %467 = tpu.assume_multiple %466, 8 : i32
    %c32_i32_193 = arith.constant 32 : i32
    %468 = tpu.dynamic_rotate %441 by %c32_i32_193 dim 1 : vector<8x128xf32>, i32 -> vector<8x128xf32>
    %469 = arith.andi %446, %44 : vector<8x1xi1>
    %cst_194 = arith.constant 0.000000e+00 : f32
    %470 = vector.shape_cast %469 : vector<8x1xi1> to vector<8x1xi1>
    %471 = vector.broadcast %470 : vector<8x1xi1> to vector<8x128xi1>
    %472 = vector.broadcast %cst_194 : f32 to vector<8x128xf32>
    %473 = arith.select %471, %468, %472 : vector<8x128xi1>, vector<8x128xf32>
    %474 = arith.index_cast %467 : i32 to index
    %c0_195 = arith.constant 0 : index
    %475 = vector.load %arg28[%474, %c0_195] : memref<64x128xf32, #tpu.memory_space<vmem>>, vector<8x128xf32>
    tpu.vector_store %arg28[%474, %c0_195], %473 {strides = array<i32>} : memref<64x128xf32, #tpu.memory_space<vmem>>, vector<8x128xf32>,
    %c6_i32 = arith.constant 6 : i32
    %c8_i32_196 = arith.constant 8 : i32
    %476 = arith.muli %c6_i32, %c8_i32_196 : i32
    %477 = tpu.assume_multiple %476, 8 : i32
    %478 = arith.index_cast %477 : i32 to index
    %c0_197 = arith.constant 0 : index
    %479 = vector.load %arg24[%478, %c0_197] : memref<64x512xf32, #tpu.memory_space<vmem>>, vector<8x512xf32>
    %c0_198 = arith.constant 0 : index
    %c0_199 = arith.constant 0 : index
    %480 = vector.load %arg25[%c0_198, %c0_199] : memref<8x256xf32, #tpu.memory_space<vmem>>, vector<8x256xf32>
    %481 = arith.truncf %480 : vector<8x256xf32> to vector<8x256xbf16>
    %c0_200 = arith.constant 0 : index
    %c0_201 = arith.constant 0 : index
    %482 = vector.load %arg4[%c0_200, %c0_201] : memref<256x512xbf16, #tpu.memory_space<vmem>>, vector<256x512xbf16>
    %cst_202 = arith.constant dense<0.000000e+00> : vector<8x512xf32>
    %483 = tpu.matmul %481, %482, %cst_202 {dimension_numbers = #tpu.dot_dimension_numbers<[1], [0], [0], [1], [0, 0, 1, 1], [], []>} : vector<8x256xbf16>, vector<256x512xbf16>, vector<8x512xf32> -> vector<8x512xf32>
    %484 = arith.addf %479, %483 : vector<8x512xf32>
    %485 = vector.extract_strided_slice %484 {offsets = [0, 0], sizes = [8, 128], strides = [1, 1]} : vector<8x512xf32> to vector<8x128xf32>
    %486 = arith.negf %485 : vector<8x128xf32>
    %487 = math.exp %486 : vector<8x128xf32>
    %cst_203 = arith.constant 1.000000e+00 : f32
    %488 = vector.broadcast %cst_203 : f32 to vector<8x128xf32>
    %489 = arith.addf %488, %487 : vector<8x128xf32>
    %490 = arith.divf %488, %489 : vector<8x128xf32>
    %491 = vector.extract_strided_slice %484 {offsets = [0, 128], sizes = [8, 128], strides = [1, 1]} : vector<8x512xf32> to vector<8x128xf32>
    %492 = arith.negf %491 : vector<8x128xf32>
    %493 = math.exp %492 : vector<8x128xf32>
    %cst_204 = arith.constant 1.000000e+00 : f32
    %494 = vector.broadcast %cst_204 : f32 to vector<8x128xf32>
    %495 = arith.addf %494, %493 : vector<8x128xf32>
    %496 = arith.divf %494, %495 : vector<8x128xf32>
    %497 = vector.extract_strided_slice %484 {offsets = [0, 256], sizes = [8, 128], strides = [1, 1]} : vector<8x512xf32> to vector<8x128xf32>
    %498 = math.tanh %497 : vector<8x128xf32>
    %499 = vector.extract_strided_slice %484 {offsets = [0, 384], sizes = [8, 128], strides = [1, 1]} : vector<8x512xf32> to vector<8x128xf32>
    %500 = arith.negf %499 : vector<8x128xf32>
    %501 = math.exp %500 : vector<8x128xf32>
    %cst_205 = arith.constant 1.000000e+00 : f32
    %502 = vector.broadcast %cst_205 : f32 to vector<8x128xf32>
    %503 = arith.addf %502, %501 : vector<8x128xf32>
    %504 = arith.divf %502, %503 : vector<8x128xf32>
    %c0_206 = arith.constant 0 : index
    %c0_207 = arith.constant 0 : index
    %505 = vector.load %arg26[%c0_206, %c0_207] : memref<8x128xf32, #tpu.memory_space<vmem>>, vector<8x128xf32>
    %506 = arith.mulf %496, %505 : vector<8x128xf32>
    %507 = arith.mulf %490, %498 : vector<8x128xf32>
    %508 = arith.addf %506, %507 : vector<8x128xf32>
    %509 = math.tanh %508 : vector<8x128xf32>
    %510 = arith.mulf %504, %509 : vector<8x128xf32>
    %c7_i32_208 = arith.constant 7 : i32
    %511 = arith.subi %c7_i32_208, %c6_i32 : i32
    %512 = vector.broadcast %c6_i32 : i32 to vector<8x1xi32>
    %513 = vector.broadcast %511 : i32 to vector<8x1xi32>
    %514 = arith.select %39, %512, %513 : vector<8x1xi1>, vector<8x1xi32>
    %515 = arith.cmpi slt, %514, %45 : vector<8x1xi32>
    %c0_209 = arith.constant 0 : index
    %c0_210 = arith.constant 0 : index
    %516 = vector.load %arg26[%c0_209, %c0_210] : memref<8x128xf32, #tpu.memory_space<vmem>>, vector<8x128xf32>
    %517 = vector.shape_cast %515 : vector<8x1xi1> to vector<8x1xi1>
    %518 = vector.broadcast %517 : vector<8x1xi1> to vector<8x128xi1>
    %519 = arith.select %518, %508, %516 : vector<8x128xi1>, vector<8x128xf32>
    %c0_211 = arith.constant 0 : index
    %c0_212 = arith.constant 0 : index
    %520 = vector.load %arg26[%c0_211, %c0_212] : memref<8x128xf32, #tpu.memory_space<vmem>>, vector<8x128xf32>
    tpu.vector_store %arg26[%c0_211, %c0_212], %519 {strides = array<i32>} : memref<8x128xf32, #tpu.memory_space<vmem>>, vector<8x128xf32>,
    %521 = tpu.concatenate %510, %510 in 1 : vector<8x128xf32>, vector<8x128xf32> -> vector<8x256xf32>
    %522 = vector.broadcast %515 : vector<8x1xi1> to vector<8x256xi1>
    %523 = arith.andi %522, %61 : vector<8x256xi1>
    %c0_213 = arith.constant 0 : index
    %c0_214 = arith.constant 0 : index
    %524 = vector.load %arg25[%c0_213, %c0_214] : memref<8x256xf32, #tpu.memory_space<vmem>>, vector<8x256xf32>
    %525 = arith.select %523, %521, %524 : vector<8x256xi1>, vector<8x256xf32>
    %c0_215 = arith.constant 0 : index
    %c0_216 = arith.constant 0 : index
    %526 = vector.load %arg25[%c0_215, %c0_216] : memref<8x256xf32, #tpu.memory_space<vmem>>, vector<8x256xf32>
    tpu.vector_store %arg25[%c0_215, %c0_216], %525 {strides = array<i32>} : memref<8x256xf32, #tpu.memory_space<vmem>>, vector<8x256xf32>,
    %527 = arith.andi %515, %39 : vector<8x1xi1>
    %cst_217 = arith.constant 0.000000e+00 : f32
    %528 = vector.shape_cast %527 : vector<8x1xi1> to vector<8x1xi1>
    %529 = vector.broadcast %528 : vector<8x1xi1> to vector<8x128xi1>
    %530 = vector.broadcast %cst_217 : f32 to vector<8x128xf32>
    %531 = arith.select %529, %510, %530 : vector<8x128xi1>, vector<8x128xf32>
    %532 = arith.index_cast %477 : i32 to index
    %c0_218 = arith.constant 0 : index
    %533 = vector.load %arg27[%532, %c0_218] : memref<64x128xf32, #tpu.memory_space<vmem>>, vector<8x128xf32>
    tpu.vector_store %arg27[%532, %c0_218], %531 {strides = array<i32>} : memref<64x128xf32, #tpu.memory_space<vmem>>, vector<8x128xf32>,
    %c7_i32_219 = arith.constant 7 : i32
    %534 = arith.subi %c7_i32_219, %c6_i32 : i32
    %c8_i32_220 = arith.constant 8 : i32
    %535 = arith.muli %534, %c8_i32_220 : i32
    %536 = tpu.assume_multiple %535, 8 : i32
    %c32_i32_221 = arith.constant 32 : i32
    %537 = tpu.dynamic_rotate %510 by %c32_i32_221 dim 1 : vector<8x128xf32>, i32 -> vector<8x128xf32>
    %538 = arith.andi %515, %44 : vector<8x1xi1>
    %cst_222 = arith.constant 0.000000e+00 : f32
    %539 = vector.shape_cast %538 : vector<8x1xi1> to vector<8x1xi1>
    %540 = vector.broadcast %539 : vector<8x1xi1> to vector<8x128xi1>
    %541 = vector.broadcast %cst_222 : f32 to vector<8x128xf32>
    %542 = arith.select %540, %537, %541 : vector<8x128xi1>, vector<8x128xf32>
    %543 = arith.index_cast %536 : i32 to index
    %c0_223 = arith.constant 0 : index
    %544 = vector.load %arg28[%543, %c0_223] : memref<64x128xf32, #tpu.memory_space<vmem>>, vector<8x128xf32>
    tpu.vector_store %arg28[%543, %c0_223], %542 {strides = array<i32>} : memref<64x128xf32, #tpu.memory_space<vmem>>, vector<8x128xf32>,
    %c7_i32_224 = arith.constant 7 : i32
    %c8_i32_225 = arith.constant 8 : i32
    %545 = arith.muli %c7_i32_224, %c8_i32_225 : i32
    %546 = tpu.assume_multiple %545, 8 : i32
    %547 = arith.index_cast %546 : i32 to index
    %c0_226 = arith.constant 0 : index
    %548 = vector.load %arg24[%547, %c0_226] : memref<64x512xf32, #tpu.memory_space<vmem>>, vector<8x512xf32>
    %c0_227 = arith.constant 0 : index
    %c0_228 = arith.constant 0 : index
    %549 = vector.load %arg25[%c0_227, %c0_228] : memref<8x256xf32, #tpu.memory_space<vmem>>, vector<8x256xf32>
    %550 = arith.truncf %549 : vector<8x256xf32> to vector<8x256xbf16>
    %c0_229 = arith.constant 0 : index
    %c0_230 = arith.constant 0 : index
    %551 = vector.load %arg4[%c0_229, %c0_230] : memref<256x512xbf16, #tpu.memory_space<vmem>>, vector<256x512xbf16>
    %cst_231 = arith.constant dense<0.000000e+00> : vector<8x512xf32>
    %552 = tpu.matmul %550, %551, %cst_231 {dimension_numbers = #tpu.dot_dimension_numbers<[1], [0], [0], [1], [0, 0, 1, 1], [], []>} : vector<8x256xbf16>, vector<256x512xbf16>, vector<8x512xf32> -> vector<8x512xf32>
    %553 = arith.addf %548, %552 : vector<8x512xf32>
    %554 = vector.extract_strided_slice %553 {offsets = [0, 0], sizes = [8, 128], strides = [1, 1]} : vector<8x512xf32> to vector<8x128xf32>
    %555 = arith.negf %554 : vector<8x128xf32>
    %556 = math.exp %555 : vector<8x128xf32>
    %cst_232 = arith.constant 1.000000e+00 : f32
    %557 = vector.broadcast %cst_232 : f32 to vector<8x128xf32>
    %558 = arith.addf %557, %556 : vector<8x128xf32>
    %559 = arith.divf %557, %558 : vector<8x128xf32>
    %560 = vector.extract_strided_slice %553 {offsets = [0, 128], sizes = [8, 128], strides = [1, 1]} : vector<8x512xf32> to vector<8x128xf32>
    %561 = arith.negf %560 : vector<8x128xf32>
    %562 = math.exp %561 : vector<8x128xf32>
    %cst_233 = arith.constant 1.000000e+00 : f32
    %563 = vector.broadcast %cst_233 : f32 to vector<8x128xf32>
    %564 = arith.addf %563, %562 : vector<8x128xf32>
    %565 = arith.divf %563, %564 : vector<8x128xf32>
    %566 = vector.extract_strided_slice %553 {offsets = [0, 256], sizes = [8, 128], strides = [1, 1]} : vector<8x512xf32> to vector<8x128xf32>
    %567 = math.tanh %566 : vector<8x128xf32>
    %568 = vector.extract_strided_slice %553 {offsets = [0, 384], sizes = [8, 128], strides = [1, 1]} : vector<8x512xf32> to vector<8x128xf32>
    %569 = arith.negf %568 : vector<8x128xf32>
    %570 = math.exp %569 : vector<8x128xf32>
    %cst_234 = arith.constant 1.000000e+00 : f32
    %571 = vector.broadcast %cst_234 : f32 to vector<8x128xf32>
    %572 = arith.addf %571, %570 : vector<8x128xf32>
    %573 = arith.divf %571, %572 : vector<8x128xf32>
    %c0_235 = arith.constant 0 : index
    %c0_236 = arith.constant 0 : index
    %574 = vector.load %arg26[%c0_235, %c0_236] : memref<8x128xf32, #tpu.memory_space<vmem>>, vector<8x128xf32>
    %575 = arith.mulf %565, %574 : vector<8x128xf32>
    %576 = arith.mulf %559, %567 : vector<8x128xf32>
    %577 = arith.addf %575, %576 : vector<8x128xf32>
    %578 = math.tanh %577 : vector<8x128xf32>
    %579 = arith.mulf %573, %578 : vector<8x128xf32>
    %c7_i32_237 = arith.constant 7 : i32
    %580 = arith.subi %c7_i32_237, %c7_i32_224 : i32
    %581 = vector.broadcast %c7_i32_224 : i32 to vector<8x1xi32>
    %582 = vector.broadcast %580 : i32 to vector<8x1xi32>
    %583 = arith.select %39, %581, %582 : vector<8x1xi1>, vector<8x1xi32>
    %584 = arith.cmpi slt, %583, %45 : vector<8x1xi32>
    %c0_238 = arith.constant 0 : index
    %c0_239 = arith.constant 0 : index
    %585 = vector.load %arg26[%c0_238, %c0_239] : memref<8x128xf32, #tpu.memory_space<vmem>>, vector<8x128xf32>
    %586 = vector.shape_cast %584 : vector<8x1xi1> to vector<8x1xi1>
    %587 = vector.broadcast %586 : vector<8x1xi1> to vector<8x128xi1>
    %588 = arith.select %587, %577, %585 : vector<8x128xi1>, vector<8x128xf32>
    %c0_240 = arith.constant 0 : index
    %c0_241 = arith.constant 0 : index
    %589 = vector.load %arg26[%c0_240, %c0_241] : memref<8x128xf32, #tpu.memory_space<vmem>>, vector<8x128xf32>
    tpu.vector_store %arg26[%c0_240, %c0_241], %588 {strides = array<i32>} : memref<8x128xf32, #tpu.memory_space<vmem>>, vector<8x128xf32>,
    %590 = tpu.concatenate %579, %579 in 1 : vector<8x128xf32>, vector<8x128xf32> -> vector<8x256xf32>
    %591 = vector.broadcast %584 : vector<8x1xi1> to vector<8x256xi1>
    %592 = arith.andi %591, %61 : vector<8x256xi1>
    %c0_242 = arith.constant 0 : index
    %c0_243 = arith.constant 0 : index
    %593 = vector.load %arg25[%c0_242, %c0_243] : memref<8x256xf32, #tpu.memory_space<vmem>>, vector<8x256xf32>
    %594 = arith.select %592, %590, %593 : vector<8x256xi1>, vector<8x256xf32>
    %c0_244 = arith.constant 0 : index
    %c0_245 = arith.constant 0 : index
    %595 = vector.load %arg25[%c0_244, %c0_245] : memref<8x256xf32, #tpu.memory_space<vmem>>, vector<8x256xf32>
    tpu.vector_store %arg25[%c0_244, %c0_245], %594 {strides = array<i32>} : memref<8x256xf32, #tpu.memory_space<vmem>>, vector<8x256xf32>,
    %596 = arith.andi %584, %39 : vector<8x1xi1>
    %cst_246 = arith.constant 0.000000e+00 : f32
    %597 = vector.shape_cast %596 : vector<8x1xi1> to vector<8x1xi1>
    %598 = vector.broadcast %597 : vector<8x1xi1> to vector<8x128xi1>
    %599 = vector.broadcast %cst_246 : f32 to vector<8x128xf32>
    %600 = arith.select %598, %579, %599 : vector<8x128xi1>, vector<8x128xf32>
    %601 = arith.index_cast %546 : i32 to index
    %c0_247 = arith.constant 0 : index
    %602 = vector.load %arg27[%601, %c0_247] : memref<64x128xf32, #tpu.memory_space<vmem>>, vector<8x128xf32>
    tpu.vector_store %arg27[%601, %c0_247], %600 {strides = array<i32>} : memref<64x128xf32, #tpu.memory_space<vmem>>, vector<8x128xf32>,
    %c7_i32_248 = arith.constant 7 : i32
    %603 = arith.subi %c7_i32_248, %c7_i32_224 : i32
    %c8_i32_249 = arith.constant 8 : i32
    %604 = arith.muli %603, %c8_i32_249 : i32
    %605 = tpu.assume_multiple %604, 8 : i32
    %c32_i32_250 = arith.constant 32 : i32
    %606 = tpu.dynamic_rotate %579 by %c32_i32_250 dim 1 : vector<8x128xf32>, i32 -> vector<8x128xf32>
    %607 = arith.andi %584, %44 : vector<8x1xi1>
    %cst_251 = arith.constant 0.000000e+00 : f32
    %608 = vector.shape_cast %607 : vector<8x1xi1> to vector<8x1xi1>
    %609 = vector.broadcast %608 : vector<8x1xi1> to vector<8x128xi1>
    %610 = vector.broadcast %cst_251 : f32 to vector<8x128xf32>
    %611 = arith.select %609, %606, %610 : vector<8x128xi1>, vector<8x128xf32>
    %612 = arith.index_cast %605 : i32 to index
    %c0_252 = arith.constant 0 : index
    %613 = vector.load %arg28[%612, %c0_252] : memref<64x128xf32, #tpu.memory_space<vmem>>, vector<8x128xf32>
    tpu.vector_store %arg28[%612, %c0_252], %611 {strides = array<i32>} : memref<64x128xf32, #tpu.memory_space<vmem>>, vector<8x128xf32>,
    %c8_i32_253 = arith.constant 8 : i32
    %c0_254 = arith.constant 0 : index
    %c0_255 = arith.constant 0 : index
    %614 = vector.load %arg25[%c0_254, %c0_255] : memref<8x256xf32, #tpu.memory_space<vmem>>, vector<2x256xf32>
    %c2 = arith.constant 2 : index
    %c0_256 = arith.constant 0 : index
    %615 = vector.load %arg25[%c2, %c0_256] : memref<8x256xf32, #tpu.memory_space<vmem>>, vector<2x256xf32>
    %616 = arith.addf %614, %615 : vector<2x256xf32>
    %617 = arith.truncf %616 : vector<2x256xf32> to vector<2x256xbf16>
    %c0_257 = arith.constant 0 : index
    %c0_258 = arith.constant 0 : index
    %618 = vector.load %arg7[%c0_257, %c0_258] : memref<256x64xbf16, #tpu.memory_space<vmem>>, vector<256x64xbf16>
    %cst_259 = arith.constant dense<0.000000e+00> : vector<2x64xf32>
    %619 = tpu.matmul %617, %618, %cst_259 {dimension_numbers = #tpu.dot_dimension_numbers<[1], [0], [0], [1], [0, 0, 1, 1], [], []>} : vector<2x256xbf16>, vector<256x64xbf16>, vector<2x64xf32> -> vector<2x64xf32>
    %c0_260 = arith.constant 0 : index
    %c0_261 = arith.constant 0 : index
    %620 = vector.load %arg8[%c0_260, %c0_261] : memref<1x64xf32, #tpu.memory_space<vmem>>, vector<1x64xf32>
    %621 = vector.broadcast %620 : vector<1x64xf32> to vector<2x64xf32>
    %622 = arith.addf %619, %621 : vector<2x64xf32>
    %623 = math.tanh %622 : vector<2x64xf32>
    %c0_262 = arith.constant 0 : index
    %c0_263 = arith.constant 0 : index
    %624 = vector.load %arg9[%c0_262, %c0_263] : memref<2x64xf32, #tpu.memory_space<vmem>>, vector<2x64xf32>
    %625 = tpu.concatenate %623, %624 in 1 : vector<2x64xf32>, vector<2x64xf32> -> vector<2x128xf32>
    %626 = arith.truncf %625 : vector<2x128xf32> to vector<2x128xbf16>
    %c0_264 = arith.constant 0 : index
    %c0_265 = arith.constant 0 : index
    %627 = vector.load %arg10[%c0_264, %c0_265] : memref<128x512xbf16, #tpu.memory_space<vmem>>, vector<128x512xbf16>
    %cst_266 = arith.constant dense<0.000000e+00> : vector<2x512xf32>
    %628 = tpu.matmul %626, %627, %cst_266 {dimension_numbers = #tpu.dot_dimension_numbers<[1], [0], [0], [1], [0, 0, 1, 1], [], []>} : vector<2x128xbf16>, vector<128x512xbf16>, vector<2x512xf32> -> vector<2x512xf32>
    %c0_267 = arith.constant 0 : index
    %c0_268 = arith.constant 0 : index
    %629 = vector.load %arg11[%c0_267, %c0_268] : memref<1x512xf32, #tpu.memory_space<vmem>>, vector<1x512xf32>
    %630 = vector.broadcast %629 : vector<1x512xf32> to vector<2x512xf32>
    %631 = arith.addf %628, %630 : vector<2x512xf32>
    %632 = vector.extract_strided_slice %631 {offsets = [0, 0], sizes = [2, 128], strides = [1, 1]} : vector<2x512xf32> to vector<2x128xf32>
    %633 = arith.negf %632 : vector<2x128xf32>
    %634 = math.exp %633 : vector<2x128xf32>
    %cst_269 = arith.constant 1.000000e+00 : f32
    %635 = vector.broadcast %cst_269 : f32 to vector<2x128xf32>
    %636 = arith.addf %635, %634 : vector<2x128xf32>
    %637 = arith.divf %635, %636 : vector<2x128xf32>
    %638 = vector.extract_strided_slice %631 {offsets = [0, 256], sizes = [2, 128], strides = [1, 1]} : vector<2x512xf32> to vector<2x128xf32>
    %639 = math.tanh %638 : vector<2x128xf32>
    %640 = vector.extract_strided_slice %631 {offsets = [0, 384], sizes = [2, 128], strides = [1, 1]} : vector<2x512xf32> to vector<2x128xf32>
    %641 = arith.negf %640 : vector<2x128xf32>
    %642 = math.exp %641 : vector<2x128xf32>
    %cst_270 = arith.constant 1.000000e+00 : f32
    %643 = vector.broadcast %cst_270 : f32 to vector<2x128xf32>
    %644 = arith.addf %643, %642 : vector<2x128xf32>
    %645 = arith.divf %643, %644 : vector<2x128xf32>
    %646 = arith.mulf %637, %639 : vector<2x128xf32>
    %647 = math.tanh %646 : vector<2x128xf32>
    %648 = arith.mulf %645, %647 : vector<2x128xf32>
    %649 = arith.truncf %648 : vector<2x128xf32> to vector<2x128xbf16>
    %c0_271 = arith.constant 0 : index
    %c0_272 = arith.constant 0 : index
    %650 = vector.load %arg14[%c0_271, %c0_272] : memref<128x64xbf16, #tpu.memory_space<vmem>>, vector<128x64xbf16>
    %cst_273 = arith.constant dense<0.000000e+00> : vector<2x64xf32>
    %651 = tpu.matmul %649, %650, %cst_273 {dimension_numbers = #tpu.dot_dimension_numbers<[1], [0], [0], [1], [0, 0, 1, 1], [], []>} : vector<2x128xbf16>, vector<128x64xbf16>, vector<2x64xf32> -> vector<2x64xf32>
    %c0_274 = arith.constant 0 : index
    %c0_275 = arith.constant 0 : index
    %652 = vector.load %arg15[%c0_274, %c0_275] : memref<1x64xf32, #tpu.memory_space<vmem>>, vector<1x64xf32>
    %653 = vector.broadcast %652 : vector<1x64xf32> to vector<2x64xf32>
    %654 = arith.addf %651, %653 : vector<2x64xf32>
    %655 = tpu.iota {dimensions = array<i32: 0>} : vector<8x1xi32>
    %c0_276 = arith.constant 0 : index
    %c0_277 = arith.constant 0 : index
    %656 = tpu.strided_load %arg27[%c0_276, %c0_277] {strides = array<i32: 8, 1>} : memref<64x128xf32, #tpu.memory_space<vmem>>, vector<8x128xf32>
    %c2_278 = arith.constant 2 : index
    %c0_279 = arith.constant 0 : index
    %657 = tpu.strided_load %arg28[%c2_278, %c0_279] {strides = array<i32: 8, 1>} : memref<64x128xf32, #tpu.memory_space<vmem>>, vector<8x128xf32>
    %658 = arith.addf %656, %657 : vector<8x128xf32>
    %659 = arith.truncf %658 : vector<8x128xf32> to vector<8x128xbf16>
    %c0_280 = arith.constant 0 : index
    %c0_281 = arith.constant 0 : index
    %660 = vector.load %arg12[%c0_280, %c0_281] : memref<128x64xbf16, #tpu.memory_space<vmem>>, vector<128x64xbf16>
    %cst_282 = arith.constant dense<0.000000e+00> : vector<8x64xf32>
    %661 = tpu.matmul %659, %660, %cst_282 {dimension_numbers = #tpu.dot_dimension_numbers<[1], [0], [0], [1], [0, 0, 1, 1], [], []>} : vector<8x128xbf16>, vector<128x64xbf16>, vector<8x64xf32> -> vector<8x64xf32>
    %c0_283 = arith.constant 0 : index
    %c0_284 = arith.constant 0 : index
    %662 = vector.load %arg13[%c0_283, %c0_284] : memref<1x64xf32, #tpu.memory_space<vmem>>, vector<1x64xf32>
    %663 = vector.broadcast %662 : vector<1x64xf32> to vector<8x64xf32>
    %664 = arith.addf %661, %663 : vector<8x64xf32>
    %665 = vector.extract_strided_slice %654 {offsets = [0, 0], sizes = [1, 64], strides = [1, 1]} : vector<2x64xf32> to vector<1x64xf32>
    %666 = vector.broadcast %665 : vector<1x64xf32> to vector<8x64xf32>
    %667 = arith.addf %664, %666 : vector<8x64xf32>
    %668 = math.tanh %667 : vector<8x64xf32>
    %c0_285 = arith.constant 0 : index
    %c0_286 = arith.constant 0 : index
    %669 = vector.load %arg16[%c0_285, %c0_286] : memref<1x64xf32, #tpu.memory_space<vmem>>, vector<1x64xf32>
    %670 = vector.broadcast %669 : vector<1x64xf32> to vector<8x64xf32>
    %671 = arith.mulf %668, %670 : vector<8x64xf32>
    %cst_287 = arith.constant dense<0.000000e+00> : vector<8xf32>
    %672 = vector.multi_reduction <add>, %671, %cst_287 [1] : vector<8x64xf32> to vector<8xf32>
    %673 = vector.shape_cast %672 : vector<8xf32> to vector<8x1xf32>
    %c0_288 = arith.constant 0 : index
    %c0_289 = arith.constant 0 : index
    %674 = memref.load %arg17[%c0_288, %c0_289] : memref<1x1xf32, #tpu.memory_space<smem>>
    %675 = vector.broadcast %674 : f32 to vector<8x1xf32>
    %676 = arith.addf %673, %675 : vector<8x1xf32>
    %c0_290 = arith.constant 0 : index
    %677 = memref.load %arg2[%c0_290] : memref<2xi32, #tpu.memory_space<smem>>
    %678 = vector.broadcast %677 : i32 to vector<8x1xi32>
    %679 = arith.cmpi slt, %655, %678 : vector<8x1xi32>
    %cst_291 = arith.constant -1.000000e+10 : f32
    %680 = vector.broadcast %cst_291 : f32 to vector<8x1xf32>
    %681 = arith.select %679, %676, %680 : vector<8x1xi1>, vector<8x1xf32>
    %cst_292 = arith.constant dense<0xFF800000> : vector<1xf32>
    %682 = vector.multi_reduction <maximumf>, %681, %cst_292 [0] : vector<8x1xf32> to vector<1xf32>
    %683 = vector.shape_cast %682 : vector<1xf32> to vector<1x1xf32>
    %684 = vector.broadcast %683 : vector<1x1xf32> to vector<8x1xf32>
    %685 = arith.subf %681, %684 : vector<8x1xf32>
    %686 = math.exp %685 : vector<8x1xf32>
    %cst_293 = arith.constant dense<0.000000e+00> : vector<1xf32>
    %687 = vector.multi_reduction <add>, %686, %cst_293 [0] : vector<8x1xf32> to vector<1xf32>
    %688 = vector.shape_cast %687 : vector<1xf32> to vector<1x1xf32>
    %689 = tpu.reciprocal %688 {approx = true} : vector<1x1xf32> -> vector<1x1xf32>
    %690 = vector.broadcast %689 : vector<1x1xf32> to vector<8x1xf32>
    %691 = arith.mulf %686, %690 : vector<8x1xf32>
    %692 = vector.broadcast %691 : vector<8x1xf32> to vector<8x128xf32>
    %693 = arith.mulf %658, %692 : vector<8x128xf32>
    %cst_294 = arith.constant dense<0.000000e+00> : vector<128xf32>
    %694 = vector.multi_reduction <add>, %693, %cst_294 [0] : vector<8x128xf32> to vector<128xf32>
    %695 = vector.shape_cast %694 : vector<128xf32> to vector<1x128xf32>
    %c1 = arith.constant 1 : index
    %c0_295 = arith.constant 0 : index
    %696 = tpu.strided_load %arg27[%c1, %c0_295] {strides = array<i32: 8, 1>} : memref<64x128xf32, #tpu.memory_space<vmem>>, vector<8x128xf32>
    %c3 = arith.constant 3 : index
    %c0_296 = arith.constant 0 : index
    %697 = tpu.strided_load %arg28[%c3, %c0_296] {strides = array<i32: 8, 1>} : memref<64x128xf32, #tpu.memory_space<vmem>>, vector<8x128xf32>
    %698 = arith.addf %696, %697 : vector<8x128xf32>
    %699 = arith.truncf %698 : vector<8x128xf32> to vector<8x128xbf16>
    %c0_297 = arith.constant 0 : index
    %c0_298 = arith.constant 0 : index
    %700 = vector.load %arg12[%c0_297, %c0_298] : memref<128x64xbf16, #tpu.memory_space<vmem>>, vector<128x64xbf16>
    %cst_299 = arith.constant dense<0.000000e+00> : vector<8x64xf32>
    %701 = tpu.matmul %699, %700, %cst_299 {dimension_numbers = #tpu.dot_dimension_numbers<[1], [0], [0], [1], [0, 0, 1, 1], [], []>} : vector<8x128xbf16>, vector<128x64xbf16>, vector<8x64xf32> -> vector<8x64xf32>
    %c0_300 = arith.constant 0 : index
    %c0_301 = arith.constant 0 : index
    %702 = vector.load %arg13[%c0_300, %c0_301] : memref<1x64xf32, #tpu.memory_space<vmem>>, vector<1x64xf32>
    %703 = vector.broadcast %702 : vector<1x64xf32> to vector<8x64xf32>
    %704 = arith.addf %701, %703 : vector<8x64xf32>
    %705 = vector.extract_strided_slice %654 {offsets = [1, 0], sizes = [1, 64], strides = [1, 1]} : vector<2x64xf32> to vector<1x64xf32>
    %706 = vector.broadcast %705 : vector<1x64xf32> to vector<8x64xf32>
    %707 = arith.addf %704, %706 : vector<8x64xf32>
    %708 = math.tanh %707 : vector<8x64xf32>
    %c0_302 = arith.constant 0 : index
    %c0_303 = arith.constant 0 : index
    %709 = vector.load %arg16[%c0_302, %c0_303] : memref<1x64xf32, #tpu.memory_space<vmem>>, vector<1x64xf32>
    %710 = vector.broadcast %709 : vector<1x64xf32> to vector<8x64xf32>
    %711 = arith.mulf %708, %710 : vector<8x64xf32>
    %cst_304 = arith.constant dense<0.000000e+00> : vector<8xf32>
    %712 = vector.multi_reduction <add>, %711, %cst_304 [1] : vector<8x64xf32> to vector<8xf32>
    %713 = vector.shape_cast %712 : vector<8xf32> to vector<8x1xf32>
    %c0_305 = arith.constant 0 : index
    %c0_306 = arith.constant 0 : index
    %714 = memref.load %arg17[%c0_305, %c0_306] : memref<1x1xf32, #tpu.memory_space<smem>>
    %715 = vector.broadcast %714 : f32 to vector<8x1xf32>
    %716 = arith.addf %713, %715 : vector<8x1xf32>
    %c1_307 = arith.constant 1 : index
    %717 = memref.load %arg2[%c1_307] : memref<2xi32, #tpu.memory_space<smem>>
    %718 = vector.broadcast %717 : i32 to vector<8x1xi32>
    %719 = arith.cmpi slt, %655, %718 : vector<8x1xi32>
    %cst_308 = arith.constant -1.000000e+10 : f32
    %720 = vector.broadcast %cst_308 : f32 to vector<8x1xf32>
    %721 = arith.select %719, %716, %720 : vector<8x1xi1>, vector<8x1xf32>
    %cst_309 = arith.constant dense<0xFF800000> : vector<1xf32>
    %722 = vector.multi_reduction <maximumf>, %721, %cst_309 [0] : vector<8x1xf32> to vector<1xf32>
    %723 = vector.shape_cast %722 : vector<1xf32> to vector<1x1xf32>
    %724 = vector.broadcast %723 : vector<1x1xf32> to vector<8x1xf32>
    %725 = arith.subf %721, %724 : vector<8x1xf32>
    %726 = math.exp %725 : vector<8x1xf32>
    %cst_310 = arith.constant dense<0.000000e+00> : vector<1xf32>
    %727 = vector.multi_reduction <add>, %726, %cst_310 [0] : vector<8x1xf32> to vector<1xf32>
    %728 = vector.shape_cast %727 : vector<1xf32> to vector<1x1xf32>
    %729 = tpu.reciprocal %728 {approx = true} : vector<1x1xf32> -> vector<1x1xf32>
    %730 = vector.broadcast %729 : vector<1x1xf32> to vector<8x1xf32>
    %731 = arith.mulf %726, %730 : vector<8x1xf32>
    %732 = vector.broadcast %731 : vector<8x1xf32> to vector<8x128xf32>
    %733 = arith.mulf %698, %732 : vector<8x128xf32>
    %cst_311 = arith.constant dense<0.000000e+00> : vector<128xf32>
    %734 = vector.multi_reduction <add>, %733, %cst_311 [0] : vector<8x128xf32> to vector<128xf32>
    %735 = vector.shape_cast %734 : vector<128xf32> to vector<1x128xf32>
    %736 = tpu.concatenate %695, %735 in 0 : vector<1x128xf32>, vector<1x128xf32> -> vector<2x128xf32>
    %737 = tpu.concatenate %736, %648 in 1 : vector<2x128xf32>, vector<2x128xf32> -> vector<2x256xf32>
    %738 = arith.truncf %737 : vector<2x256xf32> to vector<2x256xbf16>
    %c0_312 = arith.constant 0 : index
    %c0_313 = arith.constant 0 : index
    %739 = vector.load %arg18[%c0_312, %c0_313] : memref<256x512xbf16, #tpu.memory_space<vmem>>, vector<256x512xbf16>
    %cst_314 = arith.constant dense<0.000000e+00> : vector<2x512xf32>
    %740 = tpu.matmul %738, %739, %cst_314 {dimension_numbers = #tpu.dot_dimension_numbers<[1], [0], [0], [1], [0, 0, 1, 1], [], []>} : vector<2x256xbf16>, vector<256x512xbf16>, vector<2x512xf32> -> vector<2x512xf32>
    %c0_315 = arith.constant 0 : index
    %c0_316 = arith.constant 0 : index
    %741 = vector.load %arg19[%c0_315, %c0_316] : memref<1x512xf32, #tpu.memory_space<vmem>>, vector<1x512xf32>
    %742 = vector.broadcast %741 : vector<1x512xf32> to vector<2x512xf32>
    %743 = arith.addf %740, %742 : vector<2x512xf32>
    %744 = vector.extract_strided_slice %743 {offsets = [0, 0], sizes = [2, 128], strides = [1, 1]} : vector<2x512xf32> to vector<2x128xf32>
    %745 = arith.negf %744 : vector<2x128xf32>
    %746 = math.exp %745 : vector<2x128xf32>
    %cst_317 = arith.constant 1.000000e+00 : f32
    %747 = vector.broadcast %cst_317 : f32 to vector<2x128xf32>
    %748 = arith.addf %747, %746 : vector<2x128xf32>
    %749 = arith.divf %747, %748 : vector<2x128xf32>
    %750 = vector.extract_strided_slice %743 {offsets = [0, 256], sizes = [2, 128], strides = [1, 1]} : vector<2x512xf32> to vector<2x128xf32>
    %751 = math.tanh %750 : vector<2x128xf32>
    %752 = vector.extract_strided_slice %743 {offsets = [0, 384], sizes = [2, 128], strides = [1, 1]} : vector<2x512xf32> to vector<2x128xf32>
    %753 = arith.negf %752 : vector<2x128xf32>
    %754 = math.exp %753 : vector<2x128xf32>
    %cst_318 = arith.constant 1.000000e+00 : f32
    %755 = vector.broadcast %cst_318 : f32 to vector<2x128xf32>
    %756 = arith.addf %755, %754 : vector<2x128xf32>
    %757 = arith.divf %755, %756 : vector<2x128xf32>
    %758 = arith.mulf %749, %751 : vector<2x128xf32>
    %759 = math.tanh %758 : vector<2x128xf32>
    %760 = arith.mulf %757, %759 : vector<2x128xf32>
    %761 = arith.truncf %760 : vector<2x128xf32> to vector<2x128xbf16>
    %c0_319 = arith.constant 0 : index
    %c0_320 = arith.constant 0 : index
    %762 = vector.load %arg20[%c0_319, %c0_320] : memref<128x128xbf16, #tpu.memory_space<vmem>>, vector<128x128xbf16>
    %cst_321 = arith.constant dense<0.000000e+00> : vector<2x128xf32>
    %763 = tpu.matmul %761, %762, %cst_321 {dimension_numbers = #tpu.dot_dimension_numbers<[1], [0], [0], [1], [0, 0, 1, 1], [], []>} : vector<2x128xbf16>, vector<128x128xbf16>, vector<2x128xf32> -> vector<2x128xf32>
    %c0_322 = arith.constant 0 : index
    %c0_323 = arith.constant 0 : index
    %764 = vector.load %arg21[%c0_322, %c0_323] : memref<1x128xf32, #tpu.memory_space<vmem>>, vector<1x128xf32>
    %765 = vector.broadcast %764 : vector<1x128xf32> to vector<2x128xf32>
    %766 = arith.addf %763, %765 : vector<2x128xf32>
    %c0_324 = arith.constant 0 : index
    %c0_325 = arith.constant 0 : index
    %767 = vector.load %arg22[%c0_324, %c0_325] : memref<2x128xf32, #tpu.memory_space<vmem>>, vector<2x128xf32>
    tpu.vector_store %arg22[%c0_324, %c0_325], %766 {strides = array<i32>} : memref<2x128xf32, #tpu.memory_space<vmem>>, vector<2x128xf32>,
    %768 = tpu.concatenate %736, %760 in 1 : vector<2x128xf32>, vector<2x128xf32> -> vector<2x256xf32>
    %c0_326 = arith.constant 0 : index
    %c0_327 = arith.constant 0 : index
    %769 = vector.load %arg23[%c0_326, %c0_327] : memref<2x256xf32, #tpu.memory_space<vmem>>, vector<2x256xf32>
    tpu.vector_store %arg23[%c0_326, %c0_327], %768 {strides = array<i32>} : memref<2x256xf32, #tpu.memory_space<vmem>>, vector<2x256xf32>,
    return
  }
}

</mosaic_0001>

<bundles_post_ra>
// kernel: dae_forward.1
= control target key start
LH: loop header
LB: loop body
LE: loop exit
PB: predicated region body
PF: predicated region fallthrough
CT: control target
= control target key end

     0   :  { %s11175_s0 = inlined_call_operand.vmem [shape: bf16[64,128], index: 0, kind: input, shape index: {}]   ;;  %s11176_s1 = inlined_call_operand.vmem [shape: s32[8,1], index: 1, kind: input, shape index: {}]   ;;  %s11177_s2 = inlined_call_operand.vmem [shape: s32[2], index: 2, kind: input, shape index: {}]   ;;  %s11178_s3 = inlined_call_operand.hbm [shape: bf16[128,512], index: 3, kind: input, shape index: {}]   ;;  %s11179_s4 = inlined_call_operand.vmem [shape: bf16[256,512], index: 4, kind: input, shape index: {}]   ;;  %s11180_s5 = inlined_call_operand.vmem [shape: f32[1,512], index: 5, kind: input, shape index: {}]   ;;  %s11181_s6 = inlined_call_operand.vmem [shape: f32[1,512], index: 6, kind: input, shape index: {}]   ;;  %s11182_s7 = inlined_call_operand.vmem [shape: bf16[256,64], index: 7, kind: input, shape index: {}]   ;;  %s11183_s8 = inlined_call_operand.vmem [shape: f32[1,64], index: 8, kind: input, shape index: {}]   ;;  %s11184_s9 = inlined_call_operand.vmem [shape: f32[2,64], index: 9, kind: input, shape index: {}]   ;;  %s11185_s10 = inlined_call_operand.hbm [shape: bf16[128,512], index: 10, kind: input, shape index: {}]   ;;  %s11186_s11 = inlined_call_operand.vmem [shape: f32[1,512], index: 11, kind: input, shape index: {}]   ;;  %s11187_s12 = inlined_call_operand.vmem [shape: bf16[128,64], index: 12, kind: input, shape index: {}]   ;;  %s11188_s13 = inlined_call_operand.vmem [shape: f32[1,64], index: 13, kind: input, shape index: {}]   ;;  %s11189_s14 = inlined_call_operand.vmem [shape: bf16[128,64], index: 14, kind: input, shape index: {}]   ;;  %s11190_s15 = inlined_call_operand.vmem [shape: f32[1,64], index: 15, kind: input, shape index: {}]   ;;  %s11191_s16 = inlined_call_operand.vmem [shape: f32[1,64], index: 16, kind: input, shape index: {}]   ;;  %s11192_s17 = inlined_call_operand.<no memory space> [shape: f32[1,1], index: 17, kind: input, shape index: {}]   ;;  %s11193_s18 = inlined_call_operand.hbm [shape: bf16[256,512], index: 18, kind: input, shape index: {}]   ;;  %s11194_s19 = inlined_call_operand.vmem [shape: f32[1,512], index: 19, kind: input, shape index: {}]   ;;  %s11195_s20 = inlined_call_operand.vmem [shape: bf16[128,128], index: 20, kind: input, shape index: {}]   ;;  %s11196_s21 = inlined_call_operand.vmem [shape: f32[1,128], index: 21, kind: input, shape index: {}]   ;;  %s11197_s22 = inlined_call_operand.hbm [shape: f32[2,128], index: 22, kind: output, shape index: {0}]   ;;  %s11198_s23 = inlined_call_operand.vmem [shape: f32[2,256], index: 23, kind: output, shape index: {1}]  }
   0x1   :  { %11283 = sst [smem:[#allocation88_spill]] %s11175_s0 }
   0x2   :  { %11284 = sst [smem:[#allocation89_spill]] %s11176_s1 }
   0x3   :  { %11285 = sst [smem:[#allocation90_spill]] %s11177_s2 }
   0x4   :  { %11286 = sst [smem:[#allocation91_spill]] %s11178_s3 }
   0x5   :  { %11287 = sst [smem:[#allocation92_spill]] %s11179_s4 }
   0x6   :  { %11288 = sst [smem:[#allocation93_spill]] %s11180_s5 }
   0x7   :  { %11289 = sst [smem:[#allocation94_spill]] %s11181_s6 }
   0x8   :  { %11290 = sst [smem:[#allocation95_spill]] %s11182_s7 }
   0x9   :  { %30 = vsyncpa [#allocation11], 0 }
   0xa   :  { %31 = vsyncpa [#allocation9], 0 }
   0xb   :  { %32 = vsyncpa [#allocation14], 0 }
   0xc   :  { %33 = vsyncpa [#allocation10], 0  ;;  %s11291_s24 = sld [smem:[#allocation90_spill]]  ;;  %s8349_s5 = smov [#allocation13]  }
   0xd   :  { %s77_s1 = sshll.u32 %s8349_s5, 4  ;;  %s78_s1 = int_to_ptr.vmem [resolvable:$true] %s77_s1 }
   0xe   :  { %s8257_s26 = scalar_lea.vmem %s78_s1, 4096  ;;  %p8262_p1 = scmp.lt.s32.totalorder %s78_s1, %s78_s1 }
   0xf   :  { %p8258_p0 = scmp.ne.s32.totalorder %s78_s1, %s8257_s26  ;;  %p8263_p2 = scmp.lt.s32.totalorder %s8257_s26, %s8257_s26 }
  0x11   :  { %p8264_p3 = por %p8263_p2, %p8262_p1 }
  0x12   :  { %s44_s25 = sshll.u32 %s11291_s24, 4  ;;  %s45_s25 = int_to_ptr.vmem [resolvable:$true] %s44_s25 }
  0x13   :  { %p8265_p4 = pnand %p8264_p3, %p8258_p0 }
  0x15   :  { %8268 = shalt.err (!%p8265_p4)
}
  0x16   :  { %s8350_s2 = smov 256   ;;  %s8351_s6 = smov 16  }
  0x17   :  { %83 = dma.hbm_to_vmem [thread:$0]  %s11185_s10, 4096, %s78_s1, [#allocation14], %s8350_s2, %s8350_s2, %s8351_s6  }
  0x18   :  { %s8269_s28 = scalar_lea.vmem %s45_s25, 16  ;;  %p8274_p6 = scmp.lt.s32.totalorder %s45_s25, %s45_s25 }
  0x19   :  { %p8270_p5 = scmp.ne.s32.totalorder %s45_s25, %s8269_s28  ;;  %p8275_p7 = scmp.lt.s32.totalorder %s8269_s28, %s8269_s28 }
  0x1b   :  { %p8276_p8 = por %p8275_p7, %p8274_p6 }
  0x1d   :  { %p8277_p9 = pnand %p8276_p8, %p8270_p5 }
  0x1f   :  { %8280 = shalt.err (!%p8277_p9)
}
  0x20   :  { %s8352_s29 = smov [#allocation8]   ;;  %s8353_s3 = smov [#allocation12]  }
  0x21   :  { %47 = dma.vmem_to_smem %s45_s25, 16, %s8352_s29, [#allocation11]  }
  0x22   :  { %s53_s0 = sshll.u32 %s8353_s3, 4  ;;  %s8354_s4 = smov [#allocation15]   ;;  %s54_s0 = int_to_ptr.vmem [resolvable:$true] %s53_s0 }
  0x23   :  { %s103_s30 = sshll.u32 %s8354_s4, 4  ;;  %s8289_s24 = scalar_lea.vmem %s54_s0, 4096  ;;  %s104_s30 = int_to_ptr.vmem [resolvable:$true] %s103_s30 }
  0x24   :  { %p8290_p10 = scmp.ne.s32.totalorder %s54_s0, %s8289_s24  ;;  %p8294_p11 = scmp.lt.s32.totalorder %s54_s0, %s54_s0 }
  0x25   :  { %p8295_p12 = scmp.lt.s32.totalorder %s8289_s24, %s8289_s24 }
  0x27   :  { %p8296_p13 = por %p8295_p12, %p8294_p11 }
  0x29   :  { %p8297_p0 = pnand %p8296_p13, %p8290_p10 }
  0x2b   :  { %8300 = shalt.err (!%p8297_p0)
}
  0x2c   :  { %s11292_s1 = sld [smem:[#allocation91_spill]]  ;;  %s8309_s25 = scalar_lea.vmem %s104_s30, 8192 }
  0x2d   :  { %p8310_p1 = scmp.ne.s32.totalorder %s104_s30, %s8309_s25  ;;  %p8314_p2 = scmp.lt.s32.totalorder %s104_s30, %s104_s30 }
  0x2e   :  { %p8315_p3 = scmp.lt.s32.totalorder %s8309_s25, %s8309_s25 }
  0x30   :  { %p8316_p4 = por %p8315_p3, %p8314_p2 }
  0x32   :  { %59 = dma.hbm_to_vmem [thread:$0]  %s11292_s1, 4096, %s54_s0, [#allocation9], %s8350_s2, %s8350_s2, %s8351_s6  }
  0x33   :  { %p8317_p5 = pnand %p8316_p4, %p8310_p1 }
  0x35   :  { %8320 = shalt.err (!%p8317_p5)
}
  0x36   :  { %109 = dma.hbm_to_vmem [thread:$0]  %s11193_s18, 8192, %s104_s30, [#allocation14], %s8350_s2, %s8350_s2, %s8351_s6  }
  0x37   :  { %8341 = dma.done.wait [#allocation11], 16  }
  0x38   :  { %8342 = vsyncadd [#allocation11], 4294967280 }
  0x39   :  { %8343 = dma.done.wait [#allocation9], 4096  }
  0x3a   :  { %8344 = vsyncadd [#allocation9], 4294963200 }
  0x3b   :  { %8345 = dma.done.wait [#allocation14], 12288  }
  0x3c   :  { %8346 = vsyncadd [#allocation14], 4294955008 }
  0x3d   :  { %128 = sfence }
  0x3e   :  { %v7505_v0 = vld [vmem:[#allocation12 + $0xe4] ss:$16 sps:$4 sm:$0xff]   ;;  %v7507_v1 = vld [vmem:[#allocation12 + $0xec] ss:$16 sps:$4 sm:$0xff]   ;;  %v11205_v2 = vmov 0   ;;  %s11293_s6 = sld [smem:[#allocation92_spill]]  ;;  %v130_v62 = vlaneseq }
  0x3f   :  { %591 = vmatprep.mubr.bf16.mxu0 %v11205_v2  ;;  %664 = vmatprep.mubr.bf16.mxu1 %v11205_v2  ;;  %v7509_v3 = vld [vmem:[#allocation12 + $0xe0] ss:$16 sps:$4 sm:$0xff]   ;;  %v7510_v4 = vld [vmem:[#allocation12 + $0xe8] ss:$16 sps:$4 sm:$0xff]   ;;  %v7511_v5 = vld [vmem:[#allocation12 + $0xc4] ss:$16 sps:$4 sm:$0xff]  }
  0x40   :  { %559 = vmatprep.subr.bf16.mxu0 %v7505_v0  ;;  %7503 = vset.pattern.permute.xlu0 %v11205_v2  ;;  %v7513_v6 = vld [vmem:[#allocation12 + $0xcc] ss:$16 sps:$4 sm:$0xff]   ;;  %v7515_v7 = vld [vmem:[#allocation12 + $0xc0] ss:$16 sps:$4 sm:$0xff]   ;;  %v7516_v8 = vld [vmem:[#allocation12 + $0xc8] ss:$16 sps:$4 sm:$0xff]  }
  0x41   :  { %632 = vmatprep.subr.bf16.mxu1 %v7507_v1  ;;  %7504 = vset.pattern.permute.xlu1 %v11205_v2  ;;  %v7517_v9 = vld [vmem:[#allocation12 + $0xa4] ss:$16 sps:$4 sm:$0xff]   ;;  %v7519_v10 = vld [vmem:[#allocation12 + $0xac] ss:$16 sps:$4 sm:$0xff]   ;;  %v7521_v11 = vld [vmem:[#allocation12 + $0xa0] ss:$16 sps:$4 sm:$0xff]  }
  0x42   :  { %560 = vmatpush1.bf16.msra.mxu0 %v7509_v3  ;;  %633 = vmatpush1.bf16.msra.mxu1 %v7510_v4  ;;  %v7522_v12 = vld [vmem:[#allocation12 + $0xa8] ss:$16 sps:$4 sm:$0xff]   ;;  %v7523_v13 = vld [vmem:[#allocation12 + $0x84] ss:$16 sps:$4 sm:$0xff]   ;;  %v7525_v14 = vld [vmem:[#allocation12 + $0x8c] ss:$16 sps:$4 sm:$0xff]  }
  0x43   :  { %561 = vmatprep.subr.bf16.mxu0 %v7511_v5  ;;  %634 = vmatprep.subr.bf16.mxu1 %v7513_v6  ;;  %v7527_v15 = vld [vmem:[#allocation12 + $0x80] ss:$16 sps:$4 sm:$0xff]   ;;  %v7528_v16 = vld [vmem:[#allocation12 + $0x88] ss:$16 sps:$4 sm:$0xff]   ;;  %v7529_v17 = vld [vmem:[#allocation12 + $0x64] ss:$16 sps:$4 sm:$0xff]  }
  0x44   :  { %v7531_v18 = vld [vmem:[#allocation12 + $0x6c] ss:$16 sps:$4 sm:$0xff]   ;;  %v7533_v19 = vld [vmem:[#allocation12 + $0x60] ss:$16 sps:$4 sm:$0xff]   ;;  %v7534_v20 = vld [vmem:[#allocation12 + $0x68] ss:$16 sps:$4 sm:$0xff]  }
  0x45   :  { %v7535_v21 = vld [vmem:[#allocation12 + $0x44] ss:$16 sps:$4 sm:$0xff]   ;;  %v7537_v22 = vld [vmem:[#allocation12 + $0x4c] ss:$16 sps:$4 sm:$0xff]   ;;  %v7539_v23 = vld [vmem:[#allocation12 + $0x40] ss:$16 sps:$4 sm:$0xff]  }
  0x46   :  { %562 = vmatpush1.bf16.msra.mxu0 %v7515_v7  ;;  %635 = vmatpush1.bf16.msra.mxu1 %v7516_v8  ;;  %v7540_v24 = vld [vmem:[#allocation12 + $0x48] ss:$16 sps:$4 sm:$0xff]   ;;  %v7541_v25 = vld [vmem:[#allocation12 + $0x24] ss:$16 sps:$4 sm:$0xff]   ;;  %v7543_v26 = vld [vmem:[#allocation12 + $0x2c] ss:$16 sps:$4 sm:$0xff]  }
  0x47   :  { %563 = vmatprep.subr.bf16.mxu0 %v7517_v9  ;;  %636 = vmatprep.subr.bf16.mxu1 %v7519_v10  ;;  %v7545_v27 = vld [vmem:[#allocation12 + $0x20] ss:$16 sps:$4 sm:$0xff]   ;;  %v7546_v28 = vld [vmem:[#allocation12 + $0x28] ss:$16 sps:$4 sm:$0xff]   ;;  %v7547_v29 = vld [vmem:[#allocation12 + $0x4] ss:$16 sps:$4 sm:$0xff]  }
  0x48   :  { %v7549_v30 = vld [vmem:[#allocation12 + $0xc] ss:$16 sps:$4 sm:$0xff]   ;;  %v7551_v31 = vld [vmem:[#allocation12] ss:$16 sps:$4 sm:$0xff]   ;;  %v7552_v32 = vld [vmem:[#allocation12 + $0x8] ss:$16 sps:$4 sm:$0xff]  }
  0x49   :  { %v8517_v33 = vld [vmem:[%s11293_s6 + $0xe4] ss:$16 sps:$4 sm:$0xff]   ;;  %v8522_v34 = vld [vmem:[%s11293_s6 + $0xec] ss:$16 sps:$4 sm:$0xff]   ;;  %s11294_s0 = sld [smem:[#allocation88_spill]]  ;;  %v8708_v5 = vshrl.u32 %v130_v62, 7 }
  0x4a   :  { %564 = vmatpush1.bf16.msra.mxu0 %v7521_v11  ;;  %637 = vmatpush1.bf16.msra.mxu1 %v7522_v12  ;;  %v8530_v36 = vld [vmem:[%s11293_s6 + $0xe0] ss:$16 sps:$4 sm:$0xff]   ;;  %v8535_v37 = vld [vmem:[%s11293_s6 + $0xe8] ss:$16 sps:$4 sm:$0xff]   ;;  %v8540_v38 = vld [vmem:[%s11293_s6 + $0xc4] ss:$16 sps:$4 sm:$0xff]  }
  0x4b   :  { %565 = vmatprep.subr.bf16.mxu0 %v7523_v13  ;;  %638 = vmatprep.subr.bf16.mxu1 %v7525_v14  ;;  %v8547_v39 = vld [vmem:[%s11293_s6 + $0xcc] ss:$16 sps:$4 sm:$0xff]   ;;  %v8552_v40 = vld [vmem:[%s11293_s6 + $0xc0] ss:$16 sps:$4 sm:$0xff]   ;;  %v8559_v41 = vld [vmem:[%s11293_s6 + $0xc8] ss:$16 sps:$4 sm:$0xff]  }
  0x4c   :  { %v8564_v42 = vld [vmem:[%s11293_s6 + $0xa4] ss:$16 sps:$4 sm:$0xff]   ;;  %v8571_v43 = vld [vmem:[%s11293_s6 + $0xac] ss:$16 sps:$4 sm:$0xff]   ;;  %v8578_v44 = vld [vmem:[%s11293_s6 + $0xa0] ss:$16 sps:$4 sm:$0xff]  }
  0x4d   :  { %v8585_v45 = vld [vmem:[%s11293_s6 + $0xa8] ss:$16 sps:$4 sm:$0xff]   ;;  %v8590_v46 = vld [vmem:[%s11293_s6 + $0x84] ss:$16 sps:$4 sm:$0xff]   ;;  %v8597_v47 = vld [vmem:[%s11293_s6 + $0x8c] ss:$16 sps:$4 sm:$0xff]  }
  0x4e   :  { %566 = vmatpush1.bf16.msra.mxu0 %v7527_v15  ;;  %639 = vmatpush1.bf16.msra.mxu1 %v7528_v16  ;;  %v8602_v48 = vld [vmem:[%s11293_s6 + $0x80] ss:$16 sps:$4 sm:$0xff]   ;;  %v8609_v49 = vld [vmem:[%s11293_s6 + $0x88] ss:$16 sps:$4 sm:$0xff]   ;;  %v8614_v50 = vld [vmem:[%s11293_s6 + $0x64] ss:$16 sps:$4 sm:$0xff]  }
  0x4f   :  { %567 = vmatprep.subr.bf16.mxu0 %v7529_v17  ;;  %640 = vmatprep.subr.bf16.mxu1 %v7531_v18  ;;  %v7553_v35 = vld [vmem:[%s11294_s0] sm:$0xff]   ;;  %v8621_v51 = vld [vmem:[%s11293_s6 + $0x6c] ss:$16 sps:$4 sm:$0xff]   ;;  %v8636_v54 = vld [vmem:[%s11293_s6 + $0x68] ss:$16 sps:$4 sm:$0xff]   ;;  %vm740_vm0 = vcmp.lt.s32.totalorder %v8708_v5, 2 }
  0x50   :  { %v7608_v52 = vld [vmem:[%s11294_s0 + $0x8] sm:$0xff]   ;;  %v8631_v53 = vld [vmem:[%s11293_s6 + $0x60] ss:$16 sps:$4 sm:$0xff]   ;;  %v8643_v55 = vld [vmem:[%s11293_s6 + $0x44] ss:$16 sps:$4 sm:$0xff]   ;;  %v8356_v14 = vmov 7  }
  0x51   :  { %v8648_v56 = vld [vmem:[%s11293_s6 + $0x4c] ss:$16 sps:$4 sm:$0xff]   ;;  %v8653_v57 = vld [vmem:[%s11293_s6 + $0x40] ss:$16 sps:$4 sm:$0xff]   ;;  %v8662_v58 = vld [vmem:[%s11293_s6 + $0x48] ss:$16 sps:$4 sm:$0xff]  }
  0x52   :  { %568 = vmatpush1.bf16.msra.mxu0 %v7533_v19  ;;  %641 = vmatpush1.bf16.msra.mxu1 %v7534_v20  ;;  %v8667_v59 = vld [vmem:[%s11293_s6 + $0x24] ss:$16 sps:$4 sm:$0xff]   ;;  %v8674_v60 = vld [vmem:[%s11293_s6 + $0x2c] ss:$16 sps:$4 sm:$0xff]   ;;  %v8682_v63 = vld [vmem:[%s11293_s6 + $0x20] ss:$16 sps:$4 sm:$0xff]  }
  0x53   :  { %569 = vmatprep.subr.bf16.mxu0 %v7535_v21  ;;  %642 = vmatprep.subr.bf16.mxu1 %v7537_v22  ;;  %v7621_v61 = vld [vmem:[%s11294_s0 + $0x10] sm:$0xff]   ;;  %v8689_v0 = vld [vmem:[%s11293_s6 + $0x28] ss:$16 sps:$4 sm:$0xff]   ;;  %v8701_v3 = vld [vmem:[%s11293_s6 + $0xc] ss:$16 sps:$4 sm:$0xff]   ;;  %v8757_v15 = vsel %vm740_vm0, 0, %v8356_v14 }
  0x54   :  { %v8696_v1 = vld [vmem:[%s11293_s6 + $0x4] ss:$16 sps:$4 sm:$0xff]   ;;  %v8706_v4 = vld [vmem:[%s11293_s6] ss:$16 sps:$4 sm:$0xff]   ;;  %v8713_v6 = vld [vmem:[%s11293_s6 + $0x8] ss:$16 sps:$4 sm:$0xff]  }
  0x55   :  { %v8722_v7 = vld [vmem:[%s11293_s6 + $0x1e4] ss:$16 sps:$4 sm:$0xff]   ;;  %v8729_v8 = vld [vmem:[%s11293_s6 + $0x1ec] ss:$16 sps:$4 sm:$0xff]   ;;  %v8737_v10 = vld [vmem:[%s11293_s6 + $0x1e0] ss:$16 sps:$4 sm:$0xff]  }
  0x56   :  { %570 = vmatpush1.bf16.msra.mxu0 %v7539_v23  ;;  %643 = vmatpush1.bf16.msra.mxu1 %v7540_v24  ;;  %v7634_v9 = vld [vmem:[%s11294_s0 + $0x18] sm:$0xff]   ;;  %v7611_v12 = vld [vmem:[%s11293_s6 + $0x1c4] ss:$16 sps:$4 sm:$0xff]   ;;  %v8357_v16 = vmov 6   ;;  %v8358_v18 = vmov 0.0|0.0   ;;  %v8359_v19 = vmov 3  }
  0x57   :  { %571 = vmatprep.subr.bf16.mxu0 %v7541_v25  ;;  %644 = vmatprep.subr.bf16.mxu1 %v7543_v26  ;;  %v8742_v11 = vld [vmem:[%s11293_s6 + $0x1e8] ss:$16 sps:$4 sm:$0xff]   ;;  %v7614_v13 = vld [vmem:[%s11293_s6 + $0x1cc] ss:$16 sps:$4 sm:$0xff]   ;;  %v8761_v17 = vsel %vm740_vm0, 1, %v8357_v16  ;;  %v8767_v20 = vsel %vm740_vm0, 4, %v8359_v19 }
  0x58   :  { %v8360_v21 = vmov 5   ;;  %v7609_v23 = vld [vmem:[%s11293_s6 + $0x1c0] ss:$16 sps:$4 sm:$0xff]   ;;  %v7612_v24 = vld [vmem:[%s11293_s6 + $0x1c8] ss:$16 sps:$4 sm:$0xff]   ;;  %s11295_s27 = sld [smem:[#allocation89_spill]] }
  0x59   :  { %v8771_v22 = vsel %vm740_vm0, 2, %v8360_v21  ;;  %v7617_v26 = vld [vmem:[%s11293_s6 + $0x1a4] ss:$16 sps:$4 sm:$0xff]   ;;  %vm741_vm3 = vcmp.ge.s32.totalorder %v8708_v5, 2  ;;  %vm742_vm4 = vcmp.lt.s32.totalorder %v8708_v5, 4  ;;  %s8364_s25 = smov 64  }
  0x5a   :  { %572 = vmatpush1.bf16.msra.mxu0 %v7545_v27  ;;  %645 = vmatpush1.bf16.msra.mxu1 %v7546_v28  ;;  %v7620_v27 = vld [vmem:[%s11293_s6 + $0x1ac] ss:$16 sps:$4 sm:$0xff]   ;;  %v7615_v28 = vld [vmem:[%s11293_s6 + $0x1a0] ss:$16 sps:$4 sm:$0xff]   ;;  %vm8844_vm7 = vmand %vm741_vm3, %vm742_vm4  ;;  %s11310_s29 = sld [smem:[#allocation93_spill]]  ;;  %s8365_s1 = smov 32  }
  0x5b   :  { %573 = vmatprep.subr.bf16.mxu0 %v7547_v29  ;;  %646 = vmatprep.subr.bf16.mxu1 %v7549_v30  ;;  %v7618_v30 = vld [vmem:[%s11293_s6 + $0x1a8] ss:$16 sps:$4 sm:$0xff]   ;;  %v7627_v62 = vld [vmem:[%s11293_s6 + $0x18c] ss:$16 sps:$4 sm:$0xff]   ;;  %v7630_v19 = vld [vmem:[%s11293_s6 + $0x164] ss:$16 sps:$4 sm:$0xff]  }
  0x5c   :  { %s11311_s4 = sld [smem:[#allocation94_spill]]  ;;  %s8368_s5 = smov [#allocation16]  }
  0x5d   :  { %s11545_s26 = sld [smem:[#allocation95_spill]] }
  0x5e   :  { %574 = vmatpush1.bf16.msra.mxu0 %v7551_v31  ;;  %647 = vmatpush1.bf16.msra.mxu1 %v7552_v32  ;;  %v8784_v25 = vld [vmem:[%s11295_s27] sm:$0xff]  ;;  %v8361_v31 = vmov 4  }
  0x5f   :  { %1153 = vmatprep.subr.bf16.mxu0 %v8517_v33  ;;  %1194 = vmatprep.subr.bf16.mxu1 %v8522_v34  ;;  %vm1265_vm1 = vcmp.lt.s32.totalorder %v8757_v15, %v8784_v25  ;;  %vm1807_vm2 = vcmp.lt.s32.totalorder %v8761_v17, %v8784_v25  ;;  %vm2350_vm5 = vcmp.lt.s32.totalorder %v8771_v22, %v8784_v25  ;;  %v8812_v32 = vsel %vm740_vm0, 3, %v8361_v31  ;;  %v7631_v31 = vld [vmem:[%s11293_s6 + $0x168] ss:$16 sps:$4 sm:$0xff]  }
  0x60   :  { %v1266_v29 = vsel %vm1265_vm1, 1, %v11205_v2  ;;  %vm3436_vm6 = vcmp.lt.s32.totalorder %v8767_v20, %v8784_v25  ;;  %vm2893_vm8 = vcmp.lt.s32.totalorder %v8812_v32, %v8784_v25  ;;  %vm8875_vm10 = vmand %vm1265_vm1, %vm8844_vm7  ;;  %v9303_v32 = vld [vmem:[%s11293_s6 + $0x1cc] ss:$16 sps:$4 sm:$0xff]   ;;  %v9313_v20 = vld [vmem:[%s11293_s6 + $0x1c8] ss:$16 sps:$4 sm:$0xff]  }
  0x61   :  { %592 = vmatmul.mubr.bf16.vlgmr.msra.gmra.mxu0 %v7553_v35  ;;  %665 = vmatmul.mubr.bf16.vlgmr.msra.gmra.mxu1 %v7553_v35  ;;  %v7624_v35 = vld [vmem:[%s11293_s6 + $0x184] ss:$16 sps:$4 sm:$0xff]   ;;  %v2894_v21 = vsel %vm2893_vm8, 1, %v11205_v2  ;;  %vm8897_vm12 = vmand %vm1265_vm1, %vm740_vm0 }
  0x62   :  { %1154 = vmatpush1.bf16.msra.mxu0 %v8530_v36  ;;  %1195 = vmatpush1.bf16.msra.mxu1 %v8535_v37  ;;  %vm8922_vm14 = vmand %vm1807_vm2, %vm8844_vm7 }
  0x63   :  { %1155 = vmatprep.subr.bf16.mxu0 %v8540_v38  ;;  %1196 = vmatprep.subr.bf16.mxu1 %v8547_v39  ;;  %vm8956_vm15 = vmand %vm2350_vm5, %vm8844_vm7 }
  0x64   :  { %601 = vmatprep.mubr.bf16.mxu0 %v11205_v2  ;;  %674 = vmatprep.mubr.bf16.mxu1 %v11205_v2  ;;  %vm8983_vm1 = vmand %vm2893_vm8, %vm8844_vm7 }
  0x65   :  { %1268 = vperm.xlu0 %7503, %v1266_v29   ;;  %v8882_v29 = vsel %vm740_vm0, 7, %v11205_v2  ;;  %vm8995_vm3 = vmand %vm3436_vm6, %vm8844_vm7 }
  0x66   :  { %1156 = vmatpush1.bf16.msra.mxu0 %v8552_v40  ;;  %1197 = vmatpush1.bf16.msra.mxu1 %v8559_v41  ;;  %vm11202_vm13 = vcmp.lt.s32.totalorder %v8882_v29, %v8784_v25 }
  0x67   :  { %1157 = vmatprep.subr.bf16.mxu0 %v8564_v42  ;;  %1198 = vmatprep.subr.bf16.mxu1 %v8571_v43 }
  0x69   :  { %602 = vmatmul.mubr.bf16.gmra.mxu0 %v7608_v52  ;;  %675 = vmatmul.mubr.bf16.gmra.mxu1 %v7608_v52  ;;  %v1808_v52 = vsel %vm1807_vm2, 1, %v11205_v2 }
  0x6a   :  { %1158 = vmatpush1.bf16.msra.mxu0 %v8578_v44  ;;  %1199 = vmatpush1.bf16.msra.mxu1 %v8585_v45 }
  0x6b   :  { %1159 = vmatprep.subr.bf16.mxu0 %v8590_v46  ;;  %1200 = vmatprep.subr.bf16.mxu1 %v8597_v47 }
  0x6c   :  { %611 = vmatprep.mubr.bf16.mxu0 %v11205_v2  ;;  %684 = vmatprep.mubr.bf16.mxu1 %v11205_v2 }
  0x6d   :  { %1810 = vperm.xlu0 %7503, %v1808_v52   ;;  %v7637_v52 = vld [vmem:[%s11293_s6 + $0x144] ss:$16 sps:$4 sm:$0xff]  }
  0x6e   :  { %1160 = vmatpush1.bf16.msra.mxu0 %v8602_v48  ;;  %1201 = vmatpush1.bf16.msra.mxu1 %v8609_v49 }
  0x6f   :  { %1161 = vmatprep.subr.bf16.mxu0 %v8614_v50  ;;  %1202 = vmatprep.subr.bf16.mxu1 %v8621_v51 }
  0x71   :  { %612 = vmatmul.mubr.bf16.gmra.mxu0 %v7621_v61  ;;  %685 = vmatmul.mubr.bf16.gmra.mxu1 %v7621_v61  ;;  %v2351_v61 = vsel %vm2350_vm5, 1, %v11205_v2 }
  0x72   :  { %1162 = vmatpush1.bf16.msra.mxu0 %v8631_v53  ;;  %1203 = vmatpush1.bf16.msra.mxu1 %v8636_v54 }
  0x73   :  { %1163 = vmatprep.subr.bf16.mxu0 %v8643_v55  ;;  %1204 = vmatprep.subr.bf16.mxu1 %v8648_v56 }
  0x74   :  { %621 = vmatprep.mubr.bf16.mxu0 %v11205_v2  ;;  %694 = vmatprep.mubr.bf16.mxu1 %v11205_v2 }
  0x75   :  { %2353 = vperm.xlu1 %7504, %v2351_v61   ;;  %v7640_v61 = vld [vmem:[%s11293_s6 + $0x14c] ss:$16 sps:$4 sm:$0xff]  }
  0x76   :  { %1164 = vmatpush1.bf16.msra.mxu0 %v8653_v57  ;;  %1205 = vmatpush1.bf16.msra.mxu1 %v8662_v58 }
  0x77   :  { %1165 = vmatprep.subr.bf16.mxu0 %v8667_v59  ;;  %1206 = vmatprep.subr.bf16.mxu1 %v8674_v60 }
  0x79   :  { %622 = vmatmul.mubr.bf16.gmra.mxu0 %v7634_v9  ;;  %695 = vmatmul.mubr.bf16.gmra.mxu1 %v7634_v9  ;;  %v7622_v9 = vld [vmem:[%s11293_s6 + $0x180] ss:$16 sps:$4 sm:$0xff]  }
  0x7a   :  { %1166 = vmatpush1.bf16.msra.mxu0 %v8682_v63  ;;  %1207 = vmatpush1.bf16.msra.mxu1 %v8689_v0 }
  0x7b   :  { %1167 = vmatprep.subr.bf16.mxu0 %v8696_v1  ;;  %1208 = vmatprep.subr.bf16.mxu1 %v8701_v3 }
  0x7c   :  { %1185 = vmatprep.mubr.bf16.mxu0 %v8358_v18  ;;  %1226 = vmatprep.mubr.bf16.mxu1 %v8358_v18 }
  0x7d   :  { %2896 = vperm.xlu1 %7504, %v2894_v21   ;;  %v7643_v21 = vld [vmem:[%s11293_s6 + $0x124] ss:$16 sps:$4 sm:$0xff]  }
  0x7e   :  { %1168 = vmatpush1.bf16.msra.mxu0 %v8706_v4  ;;  %1209 = vmatpush1.bf16.msra.mxu1 %v8713_v6 }
  0x7f   :  { %1169 = vmatprep.subr.bf16.mxu0 %v8722_v7  ;;  %1210 = vmatprep.subr.bf16.mxu1 %v8729_v8 }
  0x82   :  { %1170 = vmatpush2.bf16.msra.mxu0 %v8737_v10  ;;  %1211 = vmatpush2.bf16.msra.mxu1 %v8742_v11 }
  0x83   :  { %1171 = vmatprep.subr.bf16.mxu0 %v7611_v12  ;;  %1212 = vmatprep.subr.bf16.mxu1 %v7614_v13  ;;  %v7625_v12 = vld [vmem:[%s11293_s6 + $0x188] ss:$16 sps:$4 sm:$0xff]   ;;  %v8362_v13 = vmov 1  }
  0x84   :  { %v8838_v14 = vsel %vm740_vm0, 6, %v8362_v13  ;;  %v244_v13 = vld [vmem:[%s11311_s4] sm:$0xf] }
  0x85   :  { %vm11203_vm9 = vcmp.lt.s32.totalorder %v8838_v14, %v8784_v25 }
  0x86   :  { %1172 = vmatpush2.bf16.msra.mxu0 %v7609_v23  ;;  %1213 = vmatpush2.bf16.msra.mxu1 %v7612_v24  ;;  %v8363_v23 = vmov 2   ;;  %v4523_v15 = vsel %vm11203_vm9, 1, %v11205_v2 }
  0x87   :  { %1173 = vmatprep.subr.bf16.mxu0 %v7617_v26  ;;  %1214 = vmatprep.subr.bf16.mxu1 %v7620_v27  ;;  %v8859_v24 = vsel %vm740_vm0, 5, %v8363_v23  ;;  %v7633_v26 = vld [vmem:[%s11293_s6 + $0x16c] ss:$16 sps:$4 sm:$0xff]   ;;  %v3437_v27 = vsel %vm3436_vm6, 1, %v11205_v2 }
  0x88   :  { %vm11204_vm11 = vcmp.lt.s32.totalorder %v8859_v24, %v8784_v25  ;;  %3439 = vperm.xlu0 %7503, %v3437_v27   ;;  %v7646_v23 = vld [vmem:[%s11293_s6 + $0x12c] ss:$16 sps:$4 sm:$0xff]   ;;  %v7641_v27 = vld [vmem:[%s11293_s6 + $0x120] ss:$16 sps:$4 sm:$0xff]  }
  0x89   :  { %vm9018_vm4 = vmand %vm11204_vm11, %vm8844_vm7 }
  0x8a   :  { %1174 = vmatpush2.bf16.msra.mxu0 %v7615_v28  ;;  %1215 = vmatpush2.bf16.msra.mxu1 %v7618_v30  ;;  %v7628_v30 = vld [vmem:[%s11293_s6 + $0x160] ss:$16 sps:$4 sm:$0xff]   ;;  %v1835_v28 = vsel %vm8922_vm14, 1, %v11205_v2  ;;  %vm9079_vm14 = vmand %vm11202_vm13, %vm8844_vm7 }
  0x8b   :  { %1175 = vmatprep.subr.bf16.mxu0 %v7624_v35  ;;  %1216 = vmatprep.subr.bf16.mxu1 %v7627_v62  ;;  %v3980_v62 = vsel %vm11204_vm11, 1, %v11205_v2  ;;  %v133_v35 = vadd.s32 16, %v8708_v5  ;;  %vm2909_vm11 = vmand %vm2893_vm8, %vm740_vm0  ;;  %vm11337_vm8 = vcmp.lt.s32.totalorder %v8838_v14, %v8784_v25  ;;  %v9368_v14 = vld [vmem:[%s11293_s6 + $0x180] ss:$16 sps:$4 sm:$0xff]  }
  0x8c   :  { %3982 = vperm.xlu1 %7504, %v3980_v62   ;;  %4525 = vperm.xlu0 %7503, %v4523_v15   ;;  %v7644_v62 = vld [vmem:[%s11293_s6 + $0x128] ss:$16 sps:$4 sm:$0xff]   ;;  %v132_v15 = vadd.s32 8, %v8708_v5  ;;  %v2910_v17 = vsel %vm2909_vm11, 1, %v11205_v2  ;;  %vm11338_vm11 = vcmp.lt.s32.totalorder %v8882_v29, %v8784_v25 }
  0x8d   :  { %v9403_v29 = vld [vmem:[%s11293_s6 + $0x168] ss:$16 sps:$4 sm:$0xff]  }
  0x8e   :  { %1176 = vmatpush2.bf16.msra.mxu0 %v7622_v9  ;;  %1217 = vmatpush2.bf16.msra.mxu1 %v7625_v12  ;;  %v7635_v9 = vld [vmem:[%s11293_s6 + $0x140] ss:$16 sps:$4 sm:$0xff]   ;;  %v7638_v12 = vld [vmem:[%s11293_s6 + $0x148] ss:$16 sps:$4 sm:$0xff]  }
  0x8f   :  { %1177 = vmatprep.subr.bf16.mxu0 %v7630_v19  ;;  %1218 = vmatprep.subr.bf16.mxu1 %v7633_v26  ;;  %v5290_v19 = vld [vmem:[%s11184_s9] sm:$0x3]  ;;  %v5066_v26 = vsel %vm11202_vm13, 1, %v11205_v2  ;;  %vm1823_vm13 = vmand %vm1807_vm2, %vm740_vm0 }
  0x90   :  { %5068 = vperm.xlu1 %7504, %v5066_v26   ;;  %5292 = vrot.lane.b32.xlu0 %v5290_v19, %s8364_s25  ;;  %v7647_v26 = vld [vmem:[%s11293_s6 + $0x100] ss:$16 sps:$4 sm:$0xff]   ;;  %v7650_v19 = vld [vmem:[%s11293_s6 + $0x108] ss:$16 sps:$4 sm:$0xff]   ;;  %vm3452_vm2 = vmand %vm3436_vm6, %vm740_vm0 }
  0x91   :  { %v3453_v22 = vsel %vm3452_vm2, 1, %v11205_v2 }
  0x92   :  { %1178 = vmatpush2.bf16.msra.mxu0 %v7628_v30  ;;  %1219 = vmatpush2.bf16.msra.mxu1 %v7631_v31  ;;  %v7649_v30 = vld [vmem:[%s11293_s6 + $0x104] ss:$16 sps:$4 sm:$0xff]   ;;  %v7652_v31 = vld [vmem:[%s11293_s6 + $0x10c] ss:$16 sps:$4 sm:$0xff]  }
  0x93   :  { %1179 = vmatprep.subr.bf16.mxu0 %v7637_v52  ;;  %1220 = vmatprep.subr.bf16.mxu1 %v7640_v61  ;;  %v1282_v52 = vsel %vm8897_vm12, 1, %v11205_v2  ;;  %v1292_v61 = vsel %vm8875_vm10, 1, %v11205_v2  ;;  %vm9045_vm10 = vmand %vm11203_vm9, %vm8844_vm7 }
  0x94   :  { %1284 = vperm.xlu1 %7504, %v1282_v52   ;;  %1294 = vperm.xlu0 %7503, %v1292_v61   ;;  %vm2366_vm9 = vmand %vm2350_vm5, %vm740_vm0  ;;  %vm11336_vm5 = vcmp.lt.s32.totalorder %v8859_v24, %v8784_v25  ;;  %v9338_v24 = vld [vmem:[%s11293_s6 + $0x1a0] ss:$16 sps:$4 sm:$0xff]  }
  0x95   :  { %vm3995_vm6 = vmand %vm11336_vm5, %vm740_vm0  ;;  %v9398_v25 = vld [vmem:[%s11293_s6 + $0x160] ss:$16 sps:$4 sm:$0xff]  }
  0x96   :  { %1180 = vmatpush2.bf16.msra.mxu0 %v7635_v9  ;;  %1221 = vmatpush2.bf16.msra.mxu1 %v7638_v12  ;;  %v243_v12 = vld [vmem:[%s11310_s29] sm:$0xf] }
  0x97   :  { %1181 = vmatprep.subr.bf16.mxu0 %v7643_v21  ;;  %1222 = vmatprep.subr.bf16.mxu1 %v7646_v23  ;;  %v2378_v21 = vsel %vm8956_vm15, 1, %v11205_v2  ;;  %v9009_v23 = vsub.s32 0, %v8708_v5 }
  0x98   :  { %1837 = vperm.xlu0 %7503, %v1835_v28  }
  0x99   :  { %11312 = vst [vmem:[#allocation21_spill] sm:$0xff] %v9009_v23 }
  0x9a   :  { %1182 = vmatpush2.bf16.msra.mxu0 %v7641_v27  ;;  %1223 = vmatpush2.bf16.msra.mxu1 %v7644_v62  ;;  %v9023_v62 = vsub.s32 1, %v8708_v5  ;;  %v134_v27 = vadd.s32 24, %v8708_v5 }
  0x9b   :  { %1183 = vmatprep.subr.bf16.mxu0 %v7649_v30  ;;  %1224 = vmatprep.subr.bf16.mxu1 %v7652_v31  ;;  %v9033_v30 = vrot.slane %v243_v12, %v9009_v23  ;;  %v9036_v31 = vrot.slane %v244_v13, %v9009_v23 }
  0x9c   :  { %11315 = vst [vmem:[#allocation22_spill] sm:$0xff] %v9023_v62  ;;  %2380 = vperm.xlu0 %7503, %v2378_v21   ;;  %v9053_v52 = vrot.slane %v244_v13, %v9023_v62  ;;  %v4007_v21 = vsel %vm9018_vm4, 1, %v11205_v2 }
  0x9e   :  { %1184 = vmatpush2.bf16.msra.mxu0 %v7647_v26  ;;  %1225 = vmatpush2.bf16.msra.mxu1 %v7650_v19  ;;  %v3464_v26 = vsel %vm8995_vm3, 1, %v11205_v2  ;;  %v9084_v19 = vsub.s32 2, %v8708_v5 }
  0x9f   :  { %1695 = vmatprep.subr.bf16.mxu0 %v8517_v33  ;;  %1736 = vmatprep.subr.bf16.mxu1 %v8522_v34  ;;  %v150_v33 = vand.u32 7, %v132_v15  ;;  %v2921_v34 = vsel %vm8983_vm1, 1, %v11205_v2  ;;  %v157_v15 = vand.u32 7, %v133_v35  ;;  %v9465_v35 = vld [vmem:[%s11293_s6 + $0x100] ss:$16 sps:$4 sm:$0xff]  }
  0xa0   :  { %2923 = vperm.xlu0 %7503, %v2921_v34   ;;  %11322 = vst [vmem:[#allocation23_spill] sm:$0xff] %v9084_v19  ;;  %11344 = vst [vmem:[#allocation30_spill] sm:$0xff] %v9465_v35 }
  0xa1   :  { %1186 = vmatmul.mubr.bf16.vlgmr.msra.gmra.mxu0 %v8358_v18  ;;  %1227 = vmatmul.mubr.bf16.vlgmr.msra.gmra.mxu1 %v8358_v18  ;;  %v9050_v18 = vrot.slane %v243_v12, %v9023_v62  ;;  %vm9055_vm12 = vcmp.lt.s32.totalorder %v150_v33, 2  ;;  %vm9117_vm15 = vcmp.lt.s32.totalorder %v157_v15, 2  ;;  %v136_v33 = vadd.s32 40, %v8708_v5 }
  0xa2   :  { %1696 = vmatpush1.bf16.msra.mxu0 %v8530_v36  ;;  %1737 = vmatpush1.bf16.msra.mxu1 %v8535_v37  ;;  %v307_v37 = vsel %vm9055_vm12, %v9033_v30, %v9036_v31 }
  0xa3   :  { %1697 = vmatprep.subr.bf16.mxu0 %v8540_v38  ;;  %1738 = vmatprep.subr.bf16.mxu1 %v8547_v39  ;;  %v308_v38 = vsel %vm9055_vm12, %v9050_v18, %v9053_v52  ;;  %v178_v34 = vand.u32 7, %v136_v33  ;;  %v1824_v33 = vsel %vm1823_vm13, 1, %v11205_v2  ;;  %vm5081_vm13 = vmand %vm11338_vm11, %vm740_vm0 }
  0xa4   :  { %3466 = vperm.xlu0 %7503, %v3464_v26   ;;  %v137_v26 = vadd.s32 48, %v8708_v5  ;;  %1826 = vperm.xlu1 %7504, %v1824_v33   ;;  %v9333_v33 = vld [vmem:[%s11293_s6 + $0x1ac] ss:$16 sps:$4 sm:$0xff]  }
  0xa5   :  { %vm9195_vm4 = vcmp.lt.s32.totalorder %v178_v34, 2  ;;  %v2367_v34 = vsel %vm2366_vm9, 1, %v11205_v2  ;;  %vm4538_vm9 = vmand %vm11337_vm8, %vm740_vm0 }
  0xa6   :  { %1698 = vmatpush1.bf16.msra.mxu0 %v8552_v40  ;;  %1739 = vmatpush1.bf16.msra.mxu1 %v8559_v41  ;;  %v9087_v40 = vsub.s32 3, %v8708_v5  ;;  %v9092_v41 = vrot.slane %v243_v12, %v9084_v19  ;;  %v185_v39 = vand.u32 7, %v137_v26  ;;  %v9298_v26 = vld [vmem:[%s11293_s6 + $0x1c4] ss:$16 sps:$4 sm:$0xff]  }
  0xa7   :  { %1699 = vmatprep.subr.bf16.mxu0 %v8564_v42  ;;  %1740 = vmatprep.subr.bf16.mxu1 %v8571_v43  ;;  %v9095_v42 = vrot.slane %v244_v13, %v9084_v19 }
  0xa8   :  { %11323 = vst [vmem:[#allocation24_spill] sm:$0xff] %v9087_v40  ;;  %v9098_v28 = vrot.slane %v243_v12, %v9087_v40  ;;  %v9101_v9 = vrot.slane %v244_v13, %v9087_v40  ;;  %4009 = vperm.xlu0 %7503, %v4007_v21   ;;  %v138_v21 = vadd.s32 56, %v8708_v5  ;;  %2369 = vperm.xlu1 %7504, %v2367_v34   ;;  %v9343_v34 = vld [vmem:[%s11293_s6 + $0x1a8] ss:$16 sps:$4 sm:$0xff]  }
  0xa9   :  { %v309_v43 = vsel %vm9055_vm12, %v9092_v41, %v9095_v42 }
  0xaa   :  { %1700 = vmatpush1.bf16.msra.mxu0 %v8578_v44  ;;  %1741 = vmatpush1.bf16.msra.mxu1 %v8585_v45  ;;  %v310_v12 = vsel %vm9055_vm12, %v9098_v28, %v9101_v9  ;;  %v4550_v45 = vsel %vm9045_vm10, 1, %v11205_v2  ;;  %vm9220_vm10 = vcmp.lt.s32.totalorder %v185_v39, 2  ;;  %v192_v15 = vand.u32 7, %v138_v21  ;;  %v9308_v39 = vld [vmem:[%s11293_s6 + $0x1c0] ss:$16 sps:$4 sm:$0xff]  }
  0xab   :  { %1701 = vmatprep.subr.bf16.mxu0 %v8590_v46  ;;  %1742 = vmatprep.subr.bf16.mxu1 %v8597_v47  ;;  %v5093_v47 = vsel %vm9079_vm14, 1, %v11205_v2  ;;  %v3996_v21 = vsel %vm3995_vm6, 1, %v11205_v2 }
  0xac   :  { %4552 = vperm.xlu0 %7503, %v4550_v45   ;;  %vm9243_vm14 = vcmp.lt.s32.totalorder %v192_v15, 2  ;;  %2912 = vperm.xlu1 %7504, %v2910_v17   ;;  %v9328_v15 = vld [vmem:[%s11293_s6 + $0x1a4] ss:$16 sps:$4 sm:$0xff]   ;;  %v4539_v17 = vsel %vm4538_vm9, 1, %v11205_v2  ;;  %v9451_v45 = vld [vmem:[%s11293_s6 + $0x128] ss:$16 sps:$4 sm:$0xff]  }
  0xad   :  { %11342 = vst [vmem:[#allocation28_spill] sm:$0xff] %v9451_v45 }
  0xae   :  { %1702 = vmatpush1.bf16.msra.mxu0 %v8602_v48  ;;  %1743 = vmatpush1.bf16.msra.mxu1 %v8609_v49  ;;  %v164_v48 = vand.u32 7, %v134_v27  ;;  %v9422_v27 = vld [vmem:[%s11293_s6 + $0x140] ss:$16 sps:$4 sm:$0xff]  }
  0xaf   :  { %1703 = vmatprep.subr.bf16.mxu0 %v8614_v50  ;;  %1744 = vmatprep.subr.bf16.mxu1 %v8621_v51  ;;  %v135_v51 = vadd.s32 32, %v8708_v5 }
  0xb0   :  { %5095 = vperm.xlu0 %7503, %v5093_v47   ;;  %vm9145_vm1 = vcmp.lt.s32.totalorder %v164_v48, 2  ;;  %3455 = vperm.xlu1 %7504, %v3453_v22   ;;  %v9358_v22 = vld [vmem:[%s11293_s6 + $0x184] ss:$16 sps:$4 sm:$0xff]   ;;  %v9427_v47 = vld [vmem:[%s11293_s6 + $0x148] ss:$16 sps:$4 sm:$0xff]  }
  0xb1   :  { %v9388_v48 = vld [vmem:[%s11293_s6 + $0x164] ss:$16 sps:$4 sm:$0xff]  }
  0xb2   :  { %1704 = vmatpush1.bf16.msra.mxu0 %v8631_v53  ;;  %1745 = vmatpush1.bf16.msra.mxu1 %v8636_v54 }
  0xb3   :  { %1705 = vmatprep.subr.bf16.mxu0 %v8643_v55  ;;  %1746 = vmatprep.subr.bf16.mxu1 %v8648_v56  ;;  %v171_v55 = vand.u32 7, %v135_v51  ;;  %v9393_v51 = vld [vmem:[%s11293_s6 + $0x16c] ss:$16 sps:$4 sm:$0xff]  }
  0xb4   :  { %3998 = vperm.xlu1 %7504, %v3996_v21   ;;  %v9363_v21 = vld [vmem:[%s11293_s6 + $0x18c] ss:$16 sps:$4 sm:$0xff]  }
  0xb5   :  { %vm9170_vm3 = vcmp.lt.s32.totalorder %v171_v55, 2  ;;  %v9373_v55 = vld [vmem:[%s11293_s6 + $0x188] ss:$16 sps:$4 sm:$0xff]  }
  0xb6   :  { %1706 = vmatpush1.bf16.msra.mxu0 %v8653_v57  ;;  %1747 = vmatpush1.bf16.msra.mxu1 %v8662_v58 }
  0xb7   :  { %1707 = vmatprep.subr.bf16.mxu0 %v8667_v59  ;;  %1748 = vmatprep.subr.bf16.mxu1 %v8674_v60 }
  0xb8   :  { %4541 = vperm.xlu1 %7504, %v4539_v17   ;;  %v5082_v17 = vsel %vm5081_vm13, 1, %v11205_v2  ;;  %v9417_v2 = vld [vmem:[%s11293_s6 + $0x14c] ss:$16 sps:$4 sm:$0xff]  }
  0xba   :  { %1708 = vmatpush1.bf16.msra.mxu0 %v8682_v63  ;;  %1749 = vmatpush1.bf16.msra.mxu1 %v8689_v0 }
  0xbb   :  { %1709 = vmatprep.subr.bf16.mxu0 %v8696_v1  ;;  %1750 = vmatprep.subr.bf16.mxu1 %v8701_v3  ;;  %v9460_v3 = vld [vmem:[%s11293_s6 + $0x104] ss:$16 sps:$4 sm:$0xff]   ;;  %v9471_v1 = vld [vmem:[%s11293_s6 + $0x108] ss:$16 sps:$4 sm:$0xff]  }
  0xbc   :  { %5084 = vperm.xlu1 %7504, %v5082_v17   ;;  %v9412_v17 = vld [vmem:[%s11293_s6 + $0x144] ss:$16 sps:$4 sm:$0xff]   ;;  %11343 = vst [vmem:[#allocation29_spill] sm:$0xff] %v9460_v3  ;;  %11345 = vst [vmem:[#allocation31_spill] sm:$0xff] %v9471_v1 }
  0xbe   :  { %1710 = vmatpush1.bf16.msra.mxu0 %v8706_v4  ;;  %1751 = vmatpush1.bf16.msra.mxu1 %v8713_v6  ;;  %v9476_v4 = vld [vmem:[%s11293_s6 + $0x10c] ss:$16 sps:$4 sm:$0xff]  }
  0xbf   :  { %1711 = vmatprep.subr.bf16.mxu0 %v8722_v7  ;;  %1752 = vmatprep.subr.bf16.mxu1 %v8729_v8  ;;  %v9436_v8 = vld [vmem:[%s11293_s6 + $0x124] ss:$16 sps:$4 sm:$0xff]   ;;  %v9446_v7 = vld [vmem:[%s11293_s6 + $0x120] ss:$16 sps:$4 sm:$0xff]   ;;  %11346 = vst [vmem:[#allocation32_spill] sm:$0xff] %v9476_v4 }
  0xc0   :  { %11339 = vst [vmem:[#allocation25_spill] sm:$0xff] %v9436_v8  ;;  %11341 = vst [vmem:[#allocation27_spill] sm:$0xff] %v9446_v7 }
  0xc2   :  { %1712 = vmatpush2.bf16.msra.mxu0 %v8737_v10  ;;  %1753 = vmatpush2.bf16.msra.mxu1 %v8742_v11  ;;  %v9441_v11 = vld [vmem:[%s11293_s6 + $0x12c] ss:$16 sps:$4 sm:$0xff]  }
  0xc3   :  { %1713 = vmatprep.subr.bf16.mxu0 %v9298_v26  ;;  %1754 = vmatprep.subr.bf16.mxu1 %v9303_v32  ;;  %11340 = vst [vmem:[#allocation26_spill] sm:$0xff] %v9441_v11 }
  0xc6   :  { %1714 = vmatpush2.bf16.msra.mxu0 %v9308_v39  ;;  %1755 = vmatpush2.bf16.msra.mxu1 %v9313_v20 }
  0xc7   :  { %1715 = vmatprep.subr.bf16.mxu0 %v9328_v15  ;;  %1756 = vmatprep.subr.bf16.mxu1 %v9333_v33 }
  0xca   :  { %1716 = vmatpush2.bf16.msra.mxu0 %v9338_v24  ;;  %1757 = vmatpush2.bf16.msra.mxu1 %v9343_v34 }
  0xcb   :  { %1717 = vmatprep.subr.bf16.mxu0 %v9358_v22  ;;  %1758 = vmatprep.subr.bf16.mxu1 %v9363_v21 }
  0xce   :  { %1718 = vmatpush2.bf16.msra.mxu0 %v9368_v14  ;;  %1759 = vmatpush2.bf16.msra.mxu1 %v9373_v55 }
  0xcf   :  { %1719 = vmatprep.subr.bf16.mxu0 %v9388_v48  ;;  %1760 = vmatprep.subr.bf16.mxu1 %v9393_v51 }
  0xd2   :  { %1720 = vmatpush2.bf16.msra.mxu0 %v9398_v25  ;;  %1761 = vmatpush2.bf16.msra.mxu1 %v9403_v29 }
  0xd3   :  { %1721 = vmatprep.subr.bf16.mxu0 %v9412_v17  ;;  %1762 = vmatprep.subr.bf16.mxu1 %v9417_v2 }
  0xd6   :  { %1722 = vmatpush2.bf16.msra.mxu0 %v9422_v27  ;;  %1763 = vmatpush2.bf16.msra.mxu1 %v9427_v47 }
  0xd7   :  { %1723 = vmatprep.subr.bf16.mxu0 %v9436_v8  ;;  %1764 = vmatprep.subr.bf16.mxu1 %v9441_v11 }
  0xda   :  { %1724 = vmatpush2.bf16.msra.mxu0 %v9446_v7  ;;  %1765 = vmatpush2.bf16.msra.mxu1 %v9451_v45 }
  0xdb   :  { %1725 = vmatprep.subr.bf16.mxu0 %v9460_v3  ;;  %1766 = vmatprep.subr.bf16.mxu1 %v9476_v4 }
  0xde   :  { %1726 = vmatpush2.bf16.msra.mxu0 %v9465_v35  ;;  %1767 = vmatpush2.bf16.msra.mxu1 %v9471_v1 }
 0x121   :  { %v9481_v60 = vpop.f32.mrf.mxu0  ;;  %v9483_v36 = vpop.f32.mrf.mxu1 }
 0x123   :  { %v9485_v59 = vpop.f32.mrf.mxu0  ;;  %v9487_v63 = vpop.f32.mrf.mxu1 }
 0x125   :  { %v597_v54 = vpop.f32.mrf.mxu0  ;;  %v670_v58 = vpop.f32.mrf.mxu1 }
 0x126   :  { %v9494_v53 = vadd.f32 %v597_v54, %v307_v37  ;;  %v9501_v56 = vadd.f32 %v670_v58, %v309_v43  ;;  %v11347_v43 = vsel %vm9117_vm15, %v9033_v30, %v9036_v31 }
 0x127   :  { %v599_v46 = vpop.f32.mrf.mxu0  ;;  %v672_v50 = vpop.f32.mrf.mxu1 }
 0x128   :  { %v9508_v44 = vadd.f32 %v599_v46, %v308_v38  ;;  %v9515_v37 = vadd.f32 %v672_v50, %v310_v12  ;;  %v11349_v38 = vsel %vm9117_vm15, %v9092_v41, %v9095_v42  ;;  %v11351_v12 = vsel %vm9117_vm15, %v9050_v18, %v9053_v52 }
 0x129   :  { %v603_v54 = vpop.f32.mrf.mxu0  ;;  %v676_v62 = vpop.f32.mrf.mxu1 }
 0x12a   :  { %v9522_v58 = vadd.f32 %v603_v54, %v11347_v43  ;;  %v9529_v61 = vadd.f32 %v676_v62, %v11349_v38  ;;  %v11353_v54 = vsel %vm9117_vm15, %v9098_v28, %v9101_v9  ;;  %v11355_v62 = vsel %vm9145_vm1, %v9033_v30, %v9036_v31 }
 0x12b   :  { %v605_v46 = vpop.f32.mrf.mxu0  ;;  %v678_v19 = vpop.f32.mrf.mxu1 }
 0x12c   :  { %11348 = vst [vmem:[#allocation33_spill] sm:$0xff] %v9522_v58  ;;  %11350 = vst [vmem:[#allocation34_spill] sm:$0xff] %v9529_v61  ;;  %v9536_v50 = vadd.f32 %v605_v46, %v11351_v12  ;;  %v9543_v43 = vadd.f32 %v678_v19, %v11353_v54  ;;  %v11357_v46 = vsel %vm9145_vm1, %v9092_v41, %v9095_v42  ;;  %v9898_v58 = vld [vmem:[%s11293_s6 + $0x40] ss:$16 sps:$4 sm:$0xff]  }
 0x12d   :  { %v607_v40 = vpop.f32.mrf.mxu0  ;;  %v680_v23 = vpop.f32.mrf.mxu1  ;;  %v11359_v19 = vsel %vm9145_vm1, %v9050_v18, %v9053_v52  ;;  %11416 = vst [vmem:[#allocation72_spill] sm:$0xff] %v9898_v58 }
 0x12e   :  { %11352 = vst [vmem:[#allocation35_spill] sm:$0xff] %v9536_v50  ;;  %11354 = vst [vmem:[#allocation36_spill] sm:$0xff] %v9543_v43  ;;  %v9550_v38 = vadd.f32 %v607_v40, %v11355_v62  ;;  %v9557_v13 = vadd.f32 %v680_v23, %v11357_v46  ;;  %v11361_v40 = vsel %vm9145_vm1, %v9098_v28, %v9101_v9  ;;  %v9893_v50 = vld [vmem:[%s11293_s6 + $0x4c] ss:$16 sps:$4 sm:$0xff]  }
 0x12f   :  { %v609_v12 = vpop.f32.mrf.mxu0  ;;  %v682_v61 = vpop.f32.mrf.mxu1  ;;  %v11363_v23 = vsel %vm9170_vm3, %v9033_v30, %v9036_v31  ;;  %11415 = vst [vmem:[#allocation71_spill] sm:$0xff] %v9893_v50 }
 0x130   :  { %11356 = vst [vmem:[#allocation37_spill] sm:$0xff] %v9550_v38  ;;  %11358 = vst [vmem:[#allocation38_spill] sm:$0xff] %v9557_v13  ;;  %v9564_v54 = vadd.f32 %v609_v12, %v11359_v19  ;;  %v9571_v62 = vadd.f32 %v682_v61, %v11361_v40  ;;  %v11365_v12 = vsel %vm9170_vm3, %v9092_v41, %v9095_v42 }
 0x131   :  { %v613_v38 = vpop.f32.mrf.mxu0  ;;  %v686_v43 = vpop.f32.mrf.mxu1  ;;  %v11367_v61 = vsel %vm9170_vm3, %v9050_v18, %v9053_v52 }
 0x132   :  { %11360 = vst [vmem:[#allocation39_spill] sm:$0xff] %v9564_v54  ;;  %11362 = vst [vmem:[#allocation40_spill] sm:$0xff] %v9571_v62  ;;  %v9578_v46 = vadd.f32 %v613_v38, %v11363_v23  ;;  %v9585_v49 = vadd.f32 %v686_v43, %v11365_v12  ;;  %v11369_v38 = vsel %vm9170_vm3, %v9098_v28, %v9101_v9  ;;  %v9877_v54 = vld [vmem:[%s11293_s6 + $0x68] ss:$16 sps:$4 sm:$0xff]  }
 0x133   :  { %v615_v19 = vpop.f32.mrf.mxu0  ;;  %v688_v13 = vpop.f32.mrf.mxu1  ;;  %v11371_v43 = vsel %vm9195_vm4, %v9033_v30, %v9036_v31  ;;  %11412 = vst [vmem:[#allocation68_spill] sm:$0xff] %v9877_v54 }
 0x134   :  { %11364 = vst [vmem:[#allocation41_spill] sm:$0xff] %v9578_v46  ;;  %11366 = vst [vmem:[#allocation42_spill] sm:$0xff] %v9585_v49  ;;  %v9592_v40 = vadd.f32 %v615_v19, %v11367_v61  ;;  %v9599_v23 = vadd.f32 %v688_v13, %v11369_v38  ;;  %v11373_v19 = vsel %vm9195_vm4, %v9092_v41, %v9095_v42 }
 0x135   :  { %v617_v46 = vpop.f32.mrf.mxu0  ;;  %v690_v62 = vpop.f32.mrf.mxu1  ;;  %v11375_v13 = vsel %vm9195_vm4, %v9050_v18, %v9053_v52 }
 0x136   :  { %11368 = vst [vmem:[#allocation43_spill] sm:$0xff] %v9592_v40  ;;  %11370 = vst [vmem:[#allocation44_spill] sm:$0xff] %v9599_v23  ;;  %v9606_v12 = vadd.f32 %v617_v46, %v11371_v43  ;;  %v9613_v57 = vadd.f32 %v690_v62, %v11373_v19  ;;  %v11377_v46 = vsel %vm9195_vm4, %v9098_v28, %v9101_v9 }
 0x137   :  { %v619_v61 = vpop.f32.mrf.mxu0  ;;  %v692_v49 = vpop.f32.mrf.mxu1  ;;  %v11379_v62 = vsel %vm9220_vm10, %v9033_v30, %v9036_v31 }
 0x138   :  { %11372 = vst [vmem:[#allocation45_spill] sm:$0xff] %v9606_v12  ;;  %11374 = vst [vmem:[#allocation46_spill] sm:$0xff] %v9613_v57  ;;  %v9620_v38 = vadd.f32 %v619_v61, %v11375_v13  ;;  %v9627_v43 = vadd.f32 %v692_v49, %v11377_v46  ;;  %v11381_v61 = vsel %vm9220_vm10, %v9092_v41, %v9095_v42 }
 0x139   :  { %v623_v12 = vpop.f32.mrf.mxu0  ;;  %v696_v23 = vpop.f32.mrf.mxu1  ;;  %v11383_v49 = vsel %vm9220_vm10, %v9050_v18, %v9053_v52 }
 0x13a   :  { %11376 = vst [vmem:[#allocation47_spill] sm:$0xff] %v9620_v38  ;;  %11378 = vst [vmem:[#allocation48_spill] sm:$0xff] %v9627_v43  ;;  %v9634_v19 = vadd.f32 %v623_v12, %v11379_v62  ;;  %v9641_v0 = vadd.f32 %v696_v23, %v11381_v61  ;;  %v11385_v12 = vsel %vm9220_vm10, %v9098_v28, %v9101_v9 }
 0x13b   :  { %v625_v13 = vpop.f32.mrf.mxu0  ;;  %v698_v57 = vpop.f32.mrf.mxu1  ;;  %v11387_v23 = vsel %vm9243_vm14, %v9033_v30, %v9036_v31 }
 0x13c   :  { %11380 = vst [vmem:[#allocation49_spill] sm:$0xff] %v9634_v19  ;;  %11382 = vst [vmem:[#allocation50_spill] sm:$0xff] %v9641_v0  ;;  %v9648_v46 = vadd.f32 %v625_v13, %v11383_v49  ;;  %v9655_v62 = vadd.f32 %v698_v57, %v11385_v12  ;;  %v11389_v13 = vsel %vm9243_vm14, %v9092_v41, %v9095_v42 }
 0x13d   :  { %v627_v19 = vpop.f32.mrf.mxu0  ;;  %v700_v43 = vpop.f32.mrf.mxu1  ;;  %v11391_v57 = vsel %vm9243_vm14, %v9050_v18, %v9053_v52 }
 0x13e   :  { %11384 = vst [vmem:[#allocation51_spill] sm:$0xff] %v9648_v46  ;;  %11386 = vst [vmem:[#allocation52_spill] sm:$0xff] %v9655_v62  ;;  %v9662_v61 = vadd.f32 %v627_v19, %v11387_v23  ;;  %v9669_v6 = vadd.f32 %v700_v43, %v11389_v13  ;;  %v11393_v19 = vsel %vm9243_vm14, %v9098_v28, %v9101_v9 }
 0x13f   :  { %v629_v49 = vpop.f32.mrf.mxu0  ;;  %v702_v0 = vpop.f32.mrf.mxu1 }
 0x140   :  { %11388 = vst [vmem:[#allocation53_spill] sm:$0xff] %v9662_v61  ;;  %11390 = vst [vmem:[#allocation54_spill] sm:$0xff] %v9669_v6  ;;  %v9676_v12 = vadd.f32 %v629_v49, %v11391_v57  ;;  %v9683_v23 = vadd.f32 %v702_v0, %v11393_v19  ;;  %v143_v61 = vand.u32 7, %v8708_v5 }
 0x142   :  { %11392 = vst [vmem:[#allocation55_spill] sm:$0xff] %v9676_v12  ;;  %11394 = vst [vmem:[#allocation56_spill] sm:$0xff] %v9683_v23  ;;  %vm9686_vm12 = vcmp.lt.s32.totalorder %v143_v61, 2 }
 0x143   :  { %v303_v13 = vsel %vm9686_vm12, %v9033_v30, %v9036_v31  ;;  %v304_v10 = vsel %vm9686_vm12, %v9050_v18, %v9053_v52  ;;  %v306_v18 = vsel %vm9686_vm12, %v9098_v28, %v9101_v9  ;;  %v9710_v28 = vpop.permute.xlu1 %2353 }
 0x144   :  { %v594_v49 = vadd.f32 %v9481_v60, %v303_v13  ;;  %v596_v19 = vadd.f32 %v9485_v59, %v304_v10  ;;  %v669_v52 = vadd.f32 %v9487_v63, %v306_v18  ;;  %v305_v60 = vsel %vm9686_vm12, %v9092_v41, %v9095_v42  ;;  %11397 = vst [vmem:[#allocation57_spill] sm:$0xff] %v9710_v28  ;;  %v9888_v28 = vld [vmem:[%s11293_s6 + $0x44] ss:$16 sps:$4 sm:$0xff]  }
 0x145   :  { %11414 = vst [vmem:[#allocation70_spill] sm:$0xff] %v9888_v28 }
 0x147   :  { %v9712_v63 = vpop.permute.xlu1 %2896 }
 0x148   :  { %11398 = vst [vmem:[#allocation58_spill] sm:$0xff] %v9712_v63  ;;  %v9872_v63 = vld [vmem:[%s11293_s6 + $0x60] ss:$16 sps:$4 sm:$0xff]  }
 0x149   :  { %11411 = vst [vmem:[#allocation67_spill] sm:$0xff] %v9872_v63 }
 0x161   :  { %v1187_v0 = vpop.f32.mrf.mxu0  ;;  %v1228_v57 = vpop.f32.mrf.mxu1 }
 0x162   :  { %v1235_v61 = vadd.f32 %v1187_v0, %v594_v49  ;;  %v9716_v0 = vpop.permute.xlu1 %3982 }
 0x163   :  { %v1189_v6 = vpop.f32.mrf.mxu0  ;;  %v1230_v23 = vpop.f32.mrf.mxu1  ;;  %11399 = vst [vmem:[#allocation59_spill] sm:$0xff] %v9716_v0  ;;  %v9867_v0 = vld [vmem:[%s11293_s6 + $0x6c] ss:$16 sps:$4 sm:$0xff]  }
 0x164   :  { %v6727_v12 = vmul.f32 -1.442695, %v1235_v61  ;;  %v1236_v62 = vadd.f32 %v1189_v6, %v596_v19  ;;  %v1238_v59 = vadd.f32 %v1230_v23, %v669_v52  ;;  %v9721_v19 = vpop.permute.xlu0 %1268  ;;  %11410 = vst [vmem:[#allocation66_spill] sm:$0xff] %v9867_v0 }
 0x165   :  { %v1191_v46 = vpop.f32.mrf.mxu0  ;;  %v1232_v38 = vpop.f32.mrf.mxu1  ;;  %vm1270_vm15 = vcmp.eq.s32.totalorder %v9721_v19, 1 }
 0x166   :  { %8071 = vpow2.f32 %v6727_v12  ;;  %v6728_v30 = vmul.f32 -1.442695, %v1236_v62  ;;  %v667_v38 = vadd.f32 %v9483_v36, %v305_v60  ;;  %v6729_v46 = vmul.f32 -1.442695, %v1238_v59  ;;  %vm9728_vm1 = vmand %vm1270_vm15, %vm740_vm0 }
 0x167   :  { %v1192_v31 = vpop.f32.mrf.mxu0  ;;  %v1233_v40 = vpop.f32.mrf.mxu1  ;;  %vm9736_vm3 = vmand %vm1270_vm15, %vm8844_vm7 }
 0x168   :  { %8073 = vpow2.f32 %v6728_v30  ;;  %v1237_v6 = vadd.f32 %v1228_v57, %v667_v38  ;;  %v9719_v57 = vpop.permute.xlu1 %5068  ;;  %vm8237_vm10 = vmpackc.low %vm9736_vm3, %vm9736_vm3  ;;  %v9851_v38 = vld [vmem:[%s11293_s6 + $0x88] ss:$16 sps:$4 sm:$0xff]  }
 0x169   :  { %8075 = vpow2.f32 %v6729_v46  ;;  %11400 = vst [vmem:[#allocation60_spill] sm:$0xff] %v9719_v57  ;;  %vm8243_vm14 = vmpackc.low %vm9728_vm1, %vm9728_vm1  ;;  %v9862_v57 = vld [vmem:[%s11293_s6 + $0x64] ss:$16 sps:$4 sm:$0xff]  }
 0x16a   :  { %11407 = vst [vmem:[#allocation63_spill] sm:$0xff] %v9851_v38  ;;  %11409 = vst [vmem:[#allocation65_spill] sm:$0xff] %v9862_v57 }
 0x16c   :  { %v1285_v61 = vpop.permute.xlu1 %1284 }
 0x16d   :  { %vm1286_vm4 = vcmp.eq.s32.totalorder %v1285_v61, 1  ;;  %v9822_v61 = vld [vmem:[%s11293_s6 + $0xa0] ss:$16 sps:$4 sm:$0xff]  }
 0x171   :  { %v11434_v31 = vld [vmem:[#allocation63_spill] sm:$0xff]  ;;  %v11435_v52 = vld [vmem:[#allocation65_spill] sm:$0xff] }
 0x173   :  { %v8072_v62 = vpop.eup %8071 }
 0x174   :  { %v1242_v40 = vadd.f32 1.0, %v8072_v62 }
 0x175   :  { %v8074_v12 = vpop.eup %8073 }
 0x176   :  { %8077 = vrcp.f32 %v1242_v40  ;;  %v1248_v13 = vadd.f32 1.0, %v8074_v12  ;;  %v8076_v9 = vpop.eup %8075  ;;  %v9767_v40 = vld [vmem:[%s11293_s6 + $0xec] ss:$16 sps:$4 sm:$0xff]   ;;  %v9772_v12 = vld [vmem:[%s11293_s6 + $0xe0] ss:$16 sps:$4 sm:$0xff]  }
 0x177   :  { %8079 = vtanh.f32 %v1237_v6  ;;  %v1255_v42 = vadd.f32 1.0, %v8076_v9  ;;  %v9762_v6 = vld [vmem:[%s11293_s6 + $0xe4] ss:$16 sps:$4 sm:$0xff]   ;;  %11406 = vst [vmem:[#allocation62_spill] sm:$0xff] %v9767_v40  ;;  %2279 = vmatprep.subr.bf16.mxu1 %v9767_v40 }
 0x178   :  { %8081 = vrcp.f32 %v1248_v13  ;;  %11405 = vst [vmem:[#allocation61_spill] sm:$0xff] %v9762_v6  ;;  %v9777_v13 = vld [vmem:[%s11293_s6 + $0xe8] ss:$16 sps:$4 sm:$0xff]   ;;  %2238 = vmatprep.subr.bf16.mxu0 %v9762_v6  ;;  %v9786_v9 = vld [vmem:[%s11293_s6 + $0xc4] ss:$16 sps:$4 sm:$0xff]  }
 0x179   :  { %8083 = vrcp.f32 %v1255_v42  ;;  %v9807_v42 = vpop.permute.xlu1 %1826 }
 0x17a   :  { %vm1828_vm6 = vcmp.eq.s32.totalorder %v9807_v42, 1 }
 0x17d   :  { %v9853_v60 = vpop.permute.xlu1 %2369 }
 0x17e   :  { %11408 = vst [vmem:[#allocation64_spill] sm:$0xff] %v9853_v60 }
 0x181   :  { %v9883_v60 = vpop.permute.xlu1 %2912 }
 0x182   :  { %11413 = vst [vmem:[#allocation69_spill] sm:$0xff] %v9883_v60  ;;  %v9912_v60 = vld [vmem:[%s11293_s6 + $0x24] ss:$16 sps:$4 sm:$0xff]  }
 0x183   :  { %v8078_v23 = vpop.eup %8077  ;;  %11418 = vst [vmem:[#allocation74_spill] sm:$0xff] %v9912_v60 }
 0x184   :  { %v8080_v43 = vpop.eup %8079 }
 0x185   :  { %v8082_v41 = vpop.eup %8081  ;;  %v1260_v10 = vmul.f32 %v8080_v43, %v8078_v23  ;;  %v9791_v23 = vld [vmem:[%s11293_s6 + $0xcc] ss:$16 sps:$4 sm:$0xff]   ;;  %v9796_v43 = vld [vmem:[%s11293_s6 + $0xc0] ss:$16 sps:$4 sm:$0xff]  }
 0x186   :  { %v1259_v36 = vmul.f32 0.0, %v8082_v41  ;;  %v8084_v30 = vpop.eup %8083  ;;  %v9801_v41 = vld [vmem:[%s11293_s6 + $0xc8] ss:$16 sps:$4 sm:$0xff]  }
 0x188   :  { %v9714_v49 = vadd.f32 %v1260_v10, %v1259_v36  ;;  %v9812_v36 = vld [vmem:[%s11293_s6 + $0xa4] ss:$16 sps:$4 sm:$0xff]   ;;  %v9817_v10 = vld [vmem:[%s11293_s6 + $0xac] ss:$16 sps:$4 sm:$0xff]  }
 0x18a   :  { %8085 = vtanh.f32 %v9714_v49 }
 0x197   :  { %v8086_v18 = vpop.eup %8085 }
 0x198   :  { %v9740_v59 = vmul.f32 %v8086_v18, %v8084_v30  ;;  %v9827_v30 = vld [vmem:[%s11293_s6 + $0xa8] ss:$16 sps:$4 sm:$0xff]   ;;  %v9836_v18 = vld [vmem:[%s11293_s6 + $0x84] ss:$16 sps:$4 sm:$0xff]  }
 0x19a   :  { %v1287_v46 = vsel %vm1286_vm4, %v9740_v59, 0.0  ;;  %1289 = vrot.lane.b32.xlu1 %v9740_v59, %s8365_s1  ;;  %v8238_v62 = vpack.c.bf16 %v9740_v59, %v9740_v59  ;;  %v11433_v19 = vsel %vm9736_vm3, %v9740_v59, 0.0 }
 0x19b   :  { %1288 = vst [vmem:[#allocation5] sm:$0xff] %v1287_v46  ;;  %v9841_v46 = vld [vmem:[%s11293_s6 + $0x8c] ss:$16 sps:$4 sm:$0xff]  }
 0x19c   :  { %8239 = vmatprep.mubr.msk.bf16.mxu0 %vm8237_vm10, %v8238_v62  ;;  %8242 = vmatprep.mubr.msk.bf16.mxu1 %vm8237_vm10, %v8238_v62 }
 0x19d   :  { %8245 = vmatmul.mubr.msk.bf16.vlgmr.msra.gmra.mxu0 %vm8243_vm14, %v8238_v62  ;;  %8248 = vmatmul.mubr.msk.bf16.vlgmr.msra.gmra.mxu1 %vm8243_vm14, %v8238_v62  ;;  %v9846_v62 = vld [vmem:[%s11293_s6 + $0x80] ss:$16 sps:$4 sm:$0xff]  }
 0x19e   :  { %2239 = vmatpush1.bf16.msra.mxu0 %v9772_v12  ;;  %2280 = vmatpush1.bf16.msra.mxu1 %v9777_v13 }
 0x19f   :  { %2240 = vmatprep.subr.bf16.mxu0 %v9786_v9  ;;  %2281 = vmatprep.subr.bf16.mxu1 %v9791_v23 }
 0x1a2   :  { %2241 = vmatpush1.bf16.msra.mxu0 %v9796_v43  ;;  %2282 = vmatpush1.bf16.msra.mxu1 %v9801_v41 }
 0x1a3   :  { %2242 = vmatprep.subr.bf16.mxu0 %v9812_v36  ;;  %2283 = vmatprep.subr.bf16.mxu1 %v9817_v10 }
 0x1a6   :  { %2243 = vmatpush1.bf16.msra.mxu0 %v9822_v61  ;;  %2284 = vmatpush1.bf16.msra.mxu1 %v9827_v30 }
 0x1a7   :  { %2244 = vmatprep.subr.bf16.mxu0 %v9836_v18  ;;  %2285 = vmatprep.subr.bf16.mxu1 %v9841_v46 }
 0x1aa   :  { %2245 = vmatpush1.bf16.msra.mxu0 %v9846_v62  ;;  %2286 = vmatpush1.bf16.msra.mxu1 %v9851_v38  ;;  %v9973_v38 = vld [vmem:[%s11293_s6 + $0x1ec] ss:$16 sps:$4 sm:$0xff]  }
 0x1ab   :  { %2246 = vmatprep.subr.bf16.mxu0 %v9862_v57  ;;  %2287 = vmatprep.subr.bf16.mxu1 %v9867_v0  ;;  %v9919_v0 = vpop.permute.xlu0 %1810  ;;  %v9945_v57 = vld [vmem:[%s11293_s6 + $0xc] ss:$16 sps:$4 sm:$0xff]   ;;  %11427 = vst [vmem:[#allocation83_spill] sm:$0xff] %v9973_v38 }
 0x1ac   :  { %vm1812_vm5 = vcmp.eq.s32.totalorder %v9919_v0, 1 }
 0x1ad   :  { %vm1815_vm8 = vmand %vm1812_vm5, %vm740_vm0 }
 0x1ae   :  { %2247 = vmatpush1.bf16.msra.mxu0 %v9872_v63  ;;  %2288 = vmatpush1.bf16.msra.mxu1 %v9877_v54  ;;  %v9903_v54 = vld [vmem:[%s11293_s6 + $0x48] ss:$16 sps:$4 sm:$0xff]   ;;  %v9917_v63 = vld [vmem:[%s11293_s6 + $0x2c] ss:$16 sps:$4 sm:$0xff]   ;;  %vm1816_vm9 = vmand %vm1812_vm5, %vm8844_vm7 }
 0x1af   :  { %11417 = vst [vmem:[#allocation73_spill] sm:$0xff] %v9903_v54  ;;  %2248 = vmatprep.subr.bf16.mxu0 %v9888_v28  ;;  %2289 = vmatprep.subr.bf16.mxu1 %v9893_v50  ;;  %11419 = vst [vmem:[#allocation75_spill] sm:$0xff] %v9917_v63  ;;  %v9924_v50 = vld [vmem:[%s11293_s6 + $0x20] ss:$16 sps:$4 sm:$0xff]   ;;  %v9940_v28 = vld [vmem:[%s11293_s6 + $0x4] ss:$16 sps:$4 sm:$0xff]  }
 0x1b0   :  { %11420 = vst [vmem:[#allocation76_spill] sm:$0xff] %v9924_v50 }
 0x1b2   :  { %2249 = vmatpush1.bf16.msra.mxu0 %v9898_v58  ;;  %2290 = vmatpush1.bf16.msra.mxu1 %v9903_v54  ;;  %v9929_v54 = vld [vmem:[%s11293_s6 + $0x28] ss:$16 sps:$4 sm:$0xff]   ;;  %v9931_v58 = vpop.permute.xlu1 %3455 }
 0x1b3   :  { %11421 = vst [vmem:[#allocation77_spill] sm:$0xff] %v9929_v54  ;;  %11422 = vst [vmem:[#allocation78_spill] sm:$0xff] %v9931_v58  ;;  %2250 = vmatprep.subr.bf16.mxu0 %v9912_v60  ;;  %2291 = vmatprep.subr.bf16.mxu1 %v9917_v63  ;;  %v9950_v58 = vld [vmem:[%s11293_s6] ss:$16 sps:$4 sm:$0xff]   ;;  %v9968_v60 = vld [vmem:[%s11293_s6 + $0x1e4] ss:$16 sps:$4 sm:$0xff]  }
 0x1b4   :  { %11423 = vst [vmem:[#allocation79_spill] sm:$0xff] %v9950_v58 }
 0x1b6   :  { %2251 = vmatpush1.bf16.msra.mxu0 %v9924_v50  ;;  %2292 = vmatpush1.bf16.msra.mxu1 %v9929_v54  ;;  %v9955_v50 = vld [vmem:[%s11293_s6 + $0x8] ss:$16 sps:$4 sm:$0xff]   ;;  %v9959_v54 = vpop.permute.xlu0 %3439  ;;  %v9963_v63 = vpop.permute.xlu1 %3998 }
 0x1b7   :  { %11424 = vst [vmem:[#allocation80_spill] sm:$0xff] %v9955_v50  ;;  %2252 = vmatprep.subr.bf16.mxu0 %v9940_v28  ;;  %2293 = vmatprep.subr.bf16.mxu1 %v9945_v57  ;;  %11425 = vst [vmem:[#allocation81_spill] sm:$0xff] %v9959_v54  ;;  %v9978_v54 = vld [vmem:[%s11293_s6 + $0x1e0] ss:$16 sps:$4 sm:$0xff]  }
 0x1b8   :  { %11426 = vst [vmem:[#allocation82_spill] sm:$0xff] %v9963_v63 }
 0x1ba   :  { %2253 = vmatpush1.bf16.msra.mxu0 %v9950_v58  ;;  %2294 = vmatpush1.bf16.msra.mxu1 %v9955_v50  ;;  %v9983_v50 = vld [vmem:[%s11293_s6 + $0x1e8] ss:$16 sps:$4 sm:$0xff]   ;;  %v9991_v63 = vpop.permute.xlu0 %4525  ;;  %v9993_v58 = vpop.permute.xlu1 %4541 }
 0x1bb   :  { %2254 = vmatprep.subr.bf16.mxu0 %v9968_v60  ;;  %2295 = vmatprep.subr.bf16.mxu1 %v9973_v38  ;;  %11428 = vst [vmem:[#allocation84_spill] sm:$0xff] %v9991_v63  ;;  %11429 = vst [vmem:[#allocation85_spill] sm:$0xff] %v9993_v58 }
 0x1be   :  { %2255 = vmatpush2.bf16.msra.mxu0 %v9978_v54  ;;  %2296 = vmatpush2.bf16.msra.mxu1 %v9983_v50  ;;  %v9999_v38 = vpop.permute.xlu0 %5292 }
 0x1bf   :  { %2256 = vmatprep.subr.bf16.mxu0 %v9298_v26  ;;  %2297 = vmatprep.subr.bf16.mxu1 %v9303_v32  ;;  %11430 = vst [vmem:[#allocation86_spill] sm:$0xff] %v9999_v38  ;;  %v10003_v26 = vpop.permute.xlu1 %5084 }
 0x1c0   :  { %11431 = vst [vmem:[#allocation87_spill] sm:$0xff] %v10003_v26 }
 0x1c2   :  { %2257 = vmatpush2.bf16.msra.mxu0 %v9308_v39  ;;  %2298 = vmatpush2.bf16.msra.mxu1 %v9313_v20  ;;  %v1295_v32 = vpop.permute.xlu0 %1294 }
 0x1c3   :  { %2258 = vmatprep.subr.bf16.mxu0 %v9328_v15  ;;  %2299 = vmatprep.subr.bf16.mxu1 %v9333_v33  ;;  %vm1296_vm2 = vcmp.eq.s32.totalorder %v1295_v32, 1 }
 0x1c6   :  { %2259 = vmatpush2.bf16.msra.mxu0 %v9338_v24  ;;  %2300 = vmatpush2.bf16.msra.mxu1 %v9343_v34 }
 0x1c7   :  { %2260 = vmatprep.subr.bf16.mxu0 %v9358_v22  ;;  %2301 = vmatprep.subr.bf16.mxu1 %v9363_v21 }
 0x1ca   :  { %2261 = vmatpush2.bf16.msra.mxu0 %v9368_v14  ;;  %2302 = vmatpush2.bf16.msra.mxu1 %v9373_v55 }
 0x1cb   :  { %2262 = vmatprep.subr.bf16.mxu0 %v9388_v48  ;;  %2303 = vmatprep.subr.bf16.mxu1 %v9393_v51 }
 0x1ce   :  { %2263 = vmatpush2.bf16.msra.mxu0 %v9398_v25  ;;  %2304 = vmatpush2.bf16.msra.mxu1 %v9403_v29 }
 0x1cf   :  { %2264 = vmatprep.subr.bf16.mxu0 %v9412_v17  ;;  %2305 = vmatprep.subr.bf16.mxu1 %v9417_v2 }
 0x1d2   :  { %2265 = vmatpush2.bf16.msra.mxu0 %v9422_v27  ;;  %2306 = vmatpush2.bf16.msra.mxu1 %v9427_v47 }
 0x1d3   :  { %2266 = vmatprep.subr.bf16.mxu0 %v9436_v8  ;;  %2307 = vmatprep.subr.bf16.mxu1 %v9441_v11 }
 0x1d6   :  { %2267 = vmatpush2.bf16.msra.mxu0 %v9446_v7  ;;  %2308 = vmatpush2.bf16.msra.mxu1 %v9451_v45 }
 0x1d7   :  { %2268 = vmatprep.subr.bf16.mxu0 %v9460_v3  ;;  %2309 = vmatprep.subr.bf16.mxu1 %v9476_v4 }
 0x1da   :  { %2269 = vmatpush2.bf16.msra.mxu0 %v9465_v35  ;;  %2310 = vmatpush2.bf16.msra.mxu1 %v9471_v1 }
 0x1db   :  { %2781 = vmatprep.subr.bf16.mxu0 %v9762_v6  ;;  %2822 = vmatprep.subr.bf16.mxu1 %v9767_v40 }
 0x20c   :  { %v1290_v39 = vpop.permute.xlu1 %1289 }
 0x20d   :  { %v1297_v20 = vsel %vm1296_vm2, %v1290_v39, 0.0 }
 0x20e   :  { %1299 = vst [vmem:[#allocation6 + $0x38] sm:$0xff] %v1297_v20 }
 0x25d   :  { %v1729_v32 = vpop.f32.mrf.mxu0  ;;  %v1770_v39 = vpop.f32.mrf.mxu1 }
 0x25e   :  { %v1777_v20 = vadd.f32 %v1729_v32, %v9494_v53  ;;  %v1779_v40 = vadd.f32 %v1770_v39, %v9501_v56  ;;  %v11438_v39 = vld [vmem:[#allocation68_spill] sm:$0xff] }
 0x25f   :  { %v1731_v38 = vpop.f32.mrf.mxu0  ;;  %v1772_v26 = vpop.f32.mrf.mxu1 }
 0x260   :  { %v6794_v58 = vmul.f32 -1.442695, %v1777_v20  ;;  %v1778_v63 = vadd.f32 %v1731_v38, %v9508_v44  ;;  %v1780_v6 = vadd.f32 %v1772_v26, %v9515_v37  ;;  %v11437_v26 = vld [vmem:[#allocation67_spill] sm:$0xff]  ;;  %v11439_v20 = vld [vmem:[#allocation70_spill] sm:$0xff] }
 0x261   :  { %v1733_v3 = vpop.f32.mrf.mxu0  ;;  %v1774_v45 = vpop.f32.mrf.mxu1 }
 0x262   :  { %8087 = vpow2.f32 %v6794_v58  ;;  %v6795_v4 = vmul.f32 -1.442695, %v1778_v63  ;;  %v6796_v1 = vmul.f32 -1.442695, %v1780_v6 }
 0x263   :  { %v1734_v35 = vpop.f32.mrf.mxu0  ;;  %v1775_v7 = vpop.f32.mrf.mxu1 }
 0x264   :  { %8089 = vpow2.f32 %v6795_v4  ;;  %v1271_v4 = vsel %vm1270_vm15, %v9714_v49, 0.0  ;;  %v11432_v49 = vsel %vm9728_vm1, %v9740_v59, 0.0  ;;  %v11436_v59 = vld [vmem:[#allocation66_spill] sm:$0xff] }
 0x265   :  { %8091 = vtanh.f32 %v1779_v40 }
 0x266   :  { %8093 = vpow2.f32 %v6796_v1 }
 0x26f   :  { %v8088_v11 = vpop.eup %8087 }
 0x270   :  { %v1784_v8 = vadd.f32 1.0, %v8088_v11 }
 0x271   :  { %v8090_v53 = vpop.eup %8089 }
 0x272   :  { %8095 = vrcp.f32 %v1784_v8  ;;  %v1790_v32 = vadd.f32 1.0, %v8090_v53  ;;  %v8092_v44 = vpop.eup %8091  ;;  %v11440_v53 = vld [vmem:[#allocation71_spill] sm:$0xff] }
 0x273   :  { %v8094_v3 = vpop.eup %8093 }
 0x274   :  { %8097 = vrcp.f32 %v1790_v32  ;;  %v1797_v7 = vadd.f32 1.0, %v8094_v3  ;;  %v11441_v32 = vld [vmem:[#allocation72_spill] sm:$0xff]  ;;  %v11443_v3 = vld [vmem:[#allocation74_spill] sm:$0xff] }
 0x276   :  { %8099 = vrcp.f32 %v1797_v7  ;;  %v11448_v7 = vld [vmem:[#allocation80_spill] sm:$0xff] }
 0x27f   :  { %v8096_v45 = vpop.eup %8095 }
 0x280   :  { %v1802_v58 = vmul.f32 %v8096_v45, %v8092_v44  ;;  %v11442_v44 = vld [vmem:[#allocation73_spill] sm:$0xff]  ;;  %v11444_v45 = vld [vmem:[#allocation75_spill] sm:$0xff] }
 0x281   :  { %v8098_v35 = vpop.eup %8097 }
 0x282   :  { %v1801_v56 = vmul.f32 %v8098_v35, %v1271_v4  ;;  %v11446_v35 = vld [vmem:[#allocation77_spill] sm:$0xff] }
 0x283   :  { %v8100_v8 = vpop.eup %8099 }
 0x284   :  { %v1803_v37 = vadd.f32 %v1802_v58, %v1801_v56  ;;  %v11445_v58 = vld [vmem:[#allocation76_spill] sm:$0xff]  ;;  %v11449_v56 = vld [vmem:[#allocation83_spill] sm:$0xff] }
 0x286   :  { %8101 = vtanh.f32 %v1803_v37  ;;  %v10035_v1 = vsel %vm1812_vm5, %v1803_v37, %v1271_v4  ;;  %v11447_v4 = vld [vmem:[#allocation79_spill] sm:$0xff]  ;;  %v1838_v37 = vpop.permute.xlu0 %1837 }
 0x287   :  { %vm1839_vm11 = vcmp.eq.s32.totalorder %v1838_v37, 1 }
 0x293   :  { %v8102_v11 = vpop.eup %8101 }
 0x294   :  { %v1805_v63 = vmul.f32 %v8102_v11, %v8100_v8  ;;  %v10093_v8 = vpop.permute.xlu0 %2380 }
 0x295   :  { %11450 = vst [vmem:[#allocation63_spill] sm:$0xff] %v10093_v8 }
 0x296   :  { %1832 = vrot.lane.b32.xlu0 %v1805_v63, %s8365_s1  ;;  %v10047_v0 = vsel %vm1815_vm8, %v1805_v63, %v11432_v49  ;;  %v10053_v38 = vsel %vm1816_vm9, %v1805_v63, %v11433_v19  ;;  %v1829_v6 = vsel %vm1828_vm6, %v1805_v63, 0.0  ;;  %v10104_v19 = vld [vmem:[%s11293_s6 + $0x1c4] ss:$16 sps:$4 sm:$0xff]  }
 0x297   :  { %1831 = vst [vmem:[#allocation5 + $0x8] sm:$0xff] %v1829_v6  ;;  %v1853_v40 = vpack.c.bf16 %v10053_v38, %v10053_v38  ;;  %v1852_v42 = vpack.c.bf16 %v10047_v0, %v10047_v0  ;;  %v10109_v6 = vld [vmem:[%s11293_s6 + $0x1cc] ss:$16 sps:$4 sm:$0xff]  }
 0x298   :  { %v10095_v11 = vpop.permute.xlu0 %2923 }
 0x299   :  { %2270 = vmatprep.mubr.bf16.mxu0 %v1853_v40  ;;  %2311 = vmatprep.mubr.bf16.mxu1 %v1853_v40  ;;  %11451 = vst [vmem:[#allocation65_spill] sm:$0xff] %v10095_v11  ;;  %v10114_v40 = vld [vmem:[%s11293_s6 + $0x1c0] ss:$16 sps:$4 sm:$0xff]  }
 0x29a   :  { %2271 = vmatmul.mubr.bf16.vlgmr.msra.gmra.mxu0 %v1852_v42  ;;  %2312 = vmatmul.mubr.bf16.vlgmr.msra.gmra.mxu1 %v1852_v42  ;;  %v10119_v42 = vld [vmem:[%s11293_s6 + $0x1c8] ss:$16 sps:$4 sm:$0xff]  }
 0x29b   :  { %2782 = vmatpush1.bf16.msra.mxu0 %v9772_v12  ;;  %2823 = vmatpush1.bf16.msra.mxu1 %v9777_v13 }
 0x29c   :  { %2783 = vmatprep.subr.bf16.mxu0 %v9786_v9  ;;  %2824 = vmatprep.subr.bf16.mxu1 %v9791_v23  ;;  %v10097_v63 = vpop.permute.xlu0 %3466 }
 0x29d   :  { %11452 = vst [vmem:[#allocation66_spill] sm:$0xff] %v10097_v63 }
 0x29f   :  { %2784 = vmatpush1.bf16.msra.mxu0 %v9796_v43  ;;  %2825 = vmatpush1.bf16.msra.mxu1 %v9801_v41 }
 0x2a0   :  { %2785 = vmatprep.subr.bf16.mxu0 %v9812_v36  ;;  %2826 = vmatprep.subr.bf16.mxu1 %v9817_v10  ;;  %v10099_v49 = vpop.permute.xlu0 %4009 }
 0x2a1   :  { %11453 = vst [vmem:[#allocation67_spill] sm:$0xff] %v10099_v49 }
 0x2a3   :  { %2786 = vmatpush1.bf16.msra.mxu0 %v9822_v61  ;;  %2827 = vmatpush1.bf16.msra.mxu1 %v9827_v30 }
 0x2a4   :  { %2787 = vmatprep.subr.bf16.mxu0 %v9836_v18  ;;  %2828 = vmatprep.subr.bf16.mxu1 %v9841_v46  ;;  %v10125_v49 = vpop.permute.xlu0 %4552 }
 0x2a5   :  { %11454 = vst [vmem:[#allocation68_spill] sm:$0xff] %v10125_v49 }
 0x2a7   :  { %2788 = vmatpush1.bf16.msra.mxu0 %v9846_v62  ;;  %2829 = vmatpush1.bf16.msra.mxu1 %v11434_v31 }
 0x2a8   :  { %2789 = vmatprep.subr.bf16.mxu0 %v11435_v52  ;;  %2830 = vmatprep.subr.bf16.mxu1 %v11436_v59  ;;  %v10133_v63 = vpop.permute.xlu0 %5095 }
 0x2a9   :  { %11455 = vst [vmem:[#allocation70_spill] sm:$0xff] %v10133_v63  ;;  %v11469_v63 = vld [vmem:[#allocation34_spill] sm:$0xff] }
 0x2ab   :  { %2790 = vmatpush1.bf16.msra.mxu0 %v11437_v26  ;;  %2831 = vmatpush1.bf16.msra.mxu1 %v11438_v39 }
 0x2ac   :  { %2791 = vmatprep.subr.bf16.mxu0 %v11439_v20  ;;  %2832 = vmatprep.subr.bf16.mxu1 %v11440_v53 }
 0x2af   :  { %2792 = vmatpush1.bf16.msra.mxu0 %v11441_v32  ;;  %2833 = vmatpush1.bf16.msra.mxu1 %v11442_v44 }
 0x2b0   :  { %2793 = vmatprep.subr.bf16.mxu0 %v11443_v3  ;;  %2834 = vmatprep.subr.bf16.mxu1 %v11444_v45 }
 0x2b3   :  { %2794 = vmatpush1.bf16.msra.mxu0 %v11445_v58  ;;  %2835 = vmatpush1.bf16.msra.mxu1 %v11446_v35 }
 0x2b4   :  { %2795 = vmatprep.subr.bf16.mxu0 %v9940_v28  ;;  %2836 = vmatprep.subr.bf16.mxu1 %v9945_v57 }
 0x2b7   :  { %2796 = vmatpush1.bf16.msra.mxu0 %v11447_v4  ;;  %2837 = vmatpush1.bf16.msra.mxu1 %v11448_v7 }
 0x2b8   :  { %2797 = vmatprep.subr.bf16.mxu0 %v9968_v60  ;;  %2838 = vmatprep.subr.bf16.mxu1 %v11449_v56 }
 0x2bb   :  { %2798 = vmatpush2.bf16.msra.mxu0 %v9978_v54  ;;  %2839 = vmatpush2.bf16.msra.mxu1 %v9983_v50 }
 0x2bc   :  { %2799 = vmatprep.subr.bf16.mxu0 %v10104_v19  ;;  %2840 = vmatprep.subr.bf16.mxu1 %v10109_v6 }
 0x2bf   :  { %2800 = vmatpush2.bf16.msra.mxu0 %v10114_v40  ;;  %2841 = vmatpush2.bf16.msra.mxu1 %v10119_v42 }
 0x2c0   :  { %2801 = vmatprep.subr.bf16.mxu0 %v9328_v15  ;;  %2842 = vmatprep.subr.bf16.mxu1 %v9333_v33 }
 0x2c3   :  { %2802 = vmatpush2.bf16.msra.mxu0 %v9338_v24  ;;  %2843 = vmatpush2.bf16.msra.mxu1 %v9343_v34  ;;  %v11459_v24 = vld [vmem:[#allocation28_spill] sm:$0xff]  ;;  %v11460_v34 = vld [vmem:[#allocation29_spill] sm:$0xff] }
 0x2c4   :  { %2803 = vmatprep.subr.bf16.mxu0 %v9358_v22  ;;  %2844 = vmatprep.subr.bf16.mxu1 %v9363_v21  ;;  %v11461_v22 = vld [vmem:[#allocation32_spill] sm:$0xff]  ;;  %v11462_v21 = vld [vmem:[#allocation30_spill] sm:$0xff] }
 0x2c7   :  { %2804 = vmatpush2.bf16.msra.mxu0 %v9368_v14  ;;  %2845 = vmatpush2.bf16.msra.mxu1 %v9373_v55  ;;  %v11456_v55 = vld [vmem:[#allocation25_spill] sm:$0xff]  ;;  %v11463_v14 = vld [vmem:[#allocation31_spill] sm:$0xff] }
 0x2c8   :  { %2805 = vmatprep.subr.bf16.mxu0 %v9388_v48  ;;  %2846 = vmatprep.subr.bf16.mxu1 %v9393_v51  ;;  %v11457_v48 = vld [vmem:[#allocation26_spill] sm:$0xff]  ;;  %v11458_v51 = vld [vmem:[#allocation27_spill] sm:$0xff] }
 0x2cb   :  { %2806 = vmatpush2.bf16.msra.mxu0 %v9398_v25  ;;  %2847 = vmatpush2.bf16.msra.mxu1 %v9403_v29  ;;  %v11466_v29 = vld [vmem:[#allocation33_spill] sm:$0xff] }
 0x2cc   :  { %2807 = vmatprep.subr.bf16.mxu0 %v9412_v17  ;;  %2848 = vmatprep.subr.bf16.mxu1 %v9417_v2  ;;  %v11464_v2 = vld [vmem:[#allocation61_spill] sm:$0xff] }
 0x2cf   :  { %2808 = vmatpush2.bf16.msra.mxu0 %v9422_v27  ;;  %2849 = vmatpush2.bf16.msra.mxu1 %v9427_v47  ;;  %v11465_v27 = vld [vmem:[#allocation62_spill] sm:$0xff] }
 0x2d0   :  { %2809 = vmatprep.subr.bf16.mxu0 %v11456_v55  ;;  %2850 = vmatprep.subr.bf16.mxu1 %v11457_v48  ;;  %v11467_v55 = vld [vmem:[#allocation35_spill] sm:$0xff] }
 0x2d3   :  { %2810 = vmatpush2.bf16.msra.mxu0 %v11458_v51  ;;  %2851 = vmatpush2.bf16.msra.mxu1 %v11459_v24 }
 0x2d4   :  { %2811 = vmatprep.subr.bf16.mxu0 %v11460_v34  ;;  %2852 = vmatprep.subr.bf16.mxu1 %v11461_v22 }
 0x2d7   :  { %2812 = vmatpush2.bf16.msra.mxu0 %v11462_v21  ;;  %2853 = vmatpush2.bf16.msra.mxu1 %v11463_v14  ;;  %v11468_v14 = vld [vmem:[#allocation36_spill] sm:$0xff] }
 0x2d8   :  { %3324 = vmatprep.subr.bf16.mxu0 %v11464_v2  ;;  %3365 = vmatprep.subr.bf16.mxu1 %v11465_v27 }
 0x308   :  { %v1833_v15 = vpop.permute.xlu0 %1832 }
 0x309   :  { %v1840_v33 = vsel %vm1839_vm11, %v1833_v15, 0.0 }
 0x30a   :  { %1842 = vst [vmem:[#allocation6 + $0x30] sm:$0xff] %v1840_v33 }
 0x35a   :  { %v2272_v47 = vpop.f32.mrf.mxu0  ;;  %v2313_v25 = vpop.f32.mrf.mxu1 }
 0x35b   :  { %v2320_v17 = vadd.f32 %v2272_v47, %v11466_v29  ;;  %v2322_v27 = vadd.f32 %v2313_v25, %v11469_v63  ;;  %v11471_v25 = vld [vmem:[#allocation64_spill] sm:$0xff] }
 0x35c   :  { %v2274_v37 = vpop.f32.mrf.mxu0  ;;  %v2315_v15 = vpop.f32.mrf.mxu1  ;;  %vm2371_vm1 = vcmp.eq.s32.totalorder %v11471_v25, 1 }
 0x35d   :  { %v6861_v33 = vmul.f32 -1.442695, %v2320_v17  ;;  %v2321_v48 = vadd.f32 %v2274_v37, %v11467_v55  ;;  %v2323_v2 = vadd.f32 %v2315_v15, %v11468_v14  ;;  %v11470_v15 = vld [vmem:[#allocation57_spill] sm:$0xff] }
 0x35e   :  { %v2276_v51 = vpop.f32.mrf.mxu0  ;;  %v2317_v24 = vpop.f32.mrf.mxu1  ;;  %vm2355_vm13 = vcmp.eq.s32.totalorder %v11470_v15, 1 }
 0x35f   :  { %8103 = vpow2.f32 %v6861_v33  ;;  %v6862_v34 = vmul.f32 -1.442695, %v2321_v48  ;;  %v6863_v49 = vmul.f32 -1.442695, %v2323_v2  ;;  %vm2358_vm12 = vmand %vm2355_vm13, %vm740_vm0 }
 0x360   :  { %v2277_v22 = vpop.f32.mrf.mxu0  ;;  %v2318_v21 = vpop.f32.mrf.mxu1  ;;  %vm2359_vm15 = vmand %vm2355_vm13, %vm8844_vm7 }
 0x361   :  { %8105 = vpow2.f32 %v6862_v34 }
 0x362   :  { %8107 = vtanh.f32 %v2322_v27 }
 0x363   :  { %8109 = vpow2.f32 %v6863_v49 }
 0x36c   :  { %v8104_v11 = vpop.eup %8103 }
 0x36d   :  { %v2327_v8 = vadd.f32 1.0, %v8104_v11 }
 0x36e   :  { %v8106_v47 = vpop.eup %8105 }
 0x36f   :  { %8111 = vrcp.f32 %v2327_v8  ;;  %v2333_v29 = vadd.f32 1.0, %v8106_v47  ;;  %v8108_v17 = vpop.eup %8107 }
 0x370   :  { %v8110_v37 = vpop.eup %8109 }
 0x371   :  { %8113 = vrcp.f32 %v2333_v29  ;;  %v2340_v51 = vadd.f32 1.0, %v8110_v37 }
 0x373   :  { %8115 = vrcp.f32 %v2340_v51 }
 0x37c   :  { %v8112_v33 = vpop.eup %8111 }
 0x37d   :  { %v2345_v55 = vmul.f32 %v8112_v33, %v8108_v17  ;;  %v11490_v33 = vld [vmem:[#allocation40_spill] sm:$0xff] }
 0x37e   :  { %v8114_v48 = vpop.eup %8113 }
 0x37f   :  { %v2344_v24 = vmul.f32 %v8114_v48, %v10035_v1  ;;  %v11491_v48 = vld [vmem:[#allocation38_spill] sm:$0xff] }
 0x380   :  { %v8116_v49 = vpop.eup %8115 }
 0x381   :  { %v2346_v63 = vadd.f32 %v2345_v55, %v2344_v24 }
 0x383   :  { %8117 = vtanh.f32 %v2346_v63  ;;  %v10162_v11 = vsel %vm2355_vm13, %v2346_v63, %v10035_v1 }
 0x390   :  { %v8118_v8 = vpop.eup %8117 }
 0x391   :  { %v2348_v34 = vmul.f32 %v8118_v8, %v8116_v49 }
 0x393   :  { %2375 = vrot.lane.b32.xlu1 %v2348_v34, %s8365_s1  ;;  %v10171_v22 = vsel %vm2358_vm12, %v2348_v34, %v10047_v0  ;;  %v10174_v21 = vsel %vm2359_vm15, %v2348_v34, %v10053_v38  ;;  %v2372_v1 = vsel %vm2371_vm1, %v2348_v34, 0.0  ;;  %v10309_v0 = vld [vmem:[%s11293_s6 + $0x148] ss:$16 sps:$4 sm:$0xff]   ;;  %v10318_v38 = vld [vmem:[%s11293_s6 + $0x124] ss:$16 sps:$4 sm:$0xff]  }
 0x394   :  { %2374 = vst [vmem:[#allocation5 + $0x10] sm:$0xff] %v2372_v1  ;;  %v2396_v14 = vpack.c.bf16 %v10174_v21, %v10174_v21  ;;  %v2395_v2 = vpack.c.bf16 %v10171_v22, %v10171_v22  ;;  %11479 = vst [vmem:[#allocation77_spill] sm:$0xff] %v10309_v0 }
 0x395   :  { %11480 = vst [vmem:[#allocation79_spill] sm:$0xff] %v10318_v38 }
 0x396   :  { %2813 = vmatprep.mubr.bf16.mxu0 %v2396_v14  ;;  %2854 = vmatprep.mubr.bf16.mxu1 %v2396_v14 }
 0x397   :  { %2814 = vmatmul.mubr.bf16.vlgmr.msra.gmra.mxu0 %v2395_v2  ;;  %2855 = vmatmul.mubr.bf16.vlgmr.msra.gmra.mxu1 %v2395_v2 }
 0x398   :  { %3325 = vmatpush1.bf16.msra.mxu0 %v9772_v12  ;;  %3366 = vmatpush1.bf16.msra.mxu1 %v9777_v13  ;;  %v10250_v12 = vld [vmem:[%s11293_s6 + $0x184] ss:$16 sps:$4 sm:$0xff]   ;;  %v10255_v13 = vld [vmem:[%s11293_s6 + $0x188] ss:$16 sps:$4 sm:$0xff]  }
 0x399   :  { %3326 = vmatprep.subr.bf16.mxu0 %v9786_v9  ;;  %3367 = vmatprep.subr.bf16.mxu1 %v9791_v23  ;;  %v10260_v9 = vld [vmem:[%s11293_s6 + $0x18c] ss:$16 sps:$4 sm:$0xff]   ;;  %v10265_v23 = vld [vmem:[%s11293_s6 + $0x164] ss:$16 sps:$4 sm:$0xff]  }
 0x39c   :  { %3327 = vmatpush1.bf16.msra.mxu0 %v9796_v43  ;;  %3368 = vmatpush1.bf16.msra.mxu1 %v9801_v41  ;;  %v10271_v43 = vld [vmem:[%s11293_s6 + $0x16c] ss:$16 sps:$4 sm:$0xff]   ;;  %v10279_v41 = vld [vmem:[%s11293_s6 + $0x160] ss:$16 sps:$4 sm:$0xff]  }
 0x39d   :  { %3328 = vmatprep.subr.bf16.mxu0 %v9812_v36  ;;  %3369 = vmatprep.subr.bf16.mxu1 %v9817_v10  ;;  %11472 = vst [vmem:[#allocation71_spill] sm:$0xff] %v10271_v43  ;;  %11473 = vst [vmem:[#allocation72_spill] sm:$0xff] %v10279_v41  ;;  %v10284_v36 = vld [vmem:[%s11293_s6 + $0x168] ss:$16 sps:$4 sm:$0xff]   ;;  %v10291_v10 = vld [vmem:[%s11293_s6 + $0x144] ss:$16 sps:$4 sm:$0xff]  }
 0x39e   :  { %11474 = vst [vmem:[#allocation73_spill] sm:$0xff] %v10284_v36  ;;  %11475 = vst [vmem:[#allocation74_spill] sm:$0xff] %v10291_v10 }
 0x3a0   :  { %3329 = vmatpush1.bf16.msra.mxu0 %v9822_v61  ;;  %3370 = vmatpush1.bf16.msra.mxu1 %v9827_v30  ;;  %v10296_v61 = vld [vmem:[%s11293_s6 + $0x14c] ss:$16 sps:$4 sm:$0xff]   ;;  %v11477_v30 = vld [vmem:[#allocation63_spill] sm:$0xff] }
 0x3a1   :  { %3330 = vmatprep.subr.bf16.mxu0 %v9836_v18  ;;  %3371 = vmatprep.subr.bf16.mxu1 %v9841_v46  ;;  %11476 = vst [vmem:[#allocation75_spill] sm:$0xff] %v10296_v61  ;;  %vm2382_vm3 = vcmp.eq.s32.totalorder %v11477_v30, 1 }
 0x3a4   :  { %3331 = vmatpush1.bf16.msra.mxu0 %v9846_v62  ;;  %3372 = vmatpush1.bf16.msra.mxu1 %v11434_v31  ;;  %v10304_v62 = vld [vmem:[%s11293_s6 + $0x140] ss:$16 sps:$4 sm:$0xff]   ;;  %v10323_v31 = vld [vmem:[%s11293_s6 + $0x12c] ss:$16 sps:$4 sm:$0xff]  }
 0x3a5   :  { %3332 = vmatprep.subr.bf16.mxu0 %v11435_v52  ;;  %3373 = vmatprep.subr.bf16.mxu1 %v11436_v59  ;;  %11478 = vst [vmem:[#allocation76_spill] sm:$0xff] %v10304_v62  ;;  %11481 = vst [vmem:[#allocation80_spill] sm:$0xff] %v10323_v31  ;;  %v10328_v52 = vld [vmem:[%s11293_s6 + $0x120] ss:$16 sps:$4 sm:$0xff]   ;;  %v10333_v59 = vld [vmem:[%s11293_s6 + $0x128] ss:$16 sps:$4 sm:$0xff]  }
 0x3a6   :  { %11482 = vst [vmem:[#allocation83_spill] sm:$0xff] %v10328_v52  ;;  %11483 = vst [vmem:[#allocation25_spill] sm:$0xff] %v10333_v59 }
 0x3a8   :  { %3333 = vmatpush1.bf16.msra.mxu0 %v11437_v26  ;;  %3374 = vmatpush1.bf16.msra.mxu1 %v11438_v39  ;;  %v10342_v26 = vld [vmem:[%s11293_s6 + $0x104] ss:$16 sps:$4 sm:$0xff]   ;;  %v10347_v39 = vld [vmem:[%s11293_s6 + $0x10c] ss:$16 sps:$4 sm:$0xff]  }
 0x3a9   :  { %3334 = vmatprep.subr.bf16.mxu0 %v11439_v20  ;;  %3375 = vmatprep.subr.bf16.mxu1 %v11440_v53  ;;  %11484 = vst [vmem:[#allocation26_spill] sm:$0xff] %v10342_v26  ;;  %11485 = vst [vmem:[#allocation27_spill] sm:$0xff] %v10347_v39  ;;  %v10352_v20 = vld [vmem:[%s11293_s6 + $0x100] ss:$16 sps:$4 sm:$0xff]   ;;  %v10357_v53 = vld [vmem:[%s11293_s6 + $0x108] ss:$16 sps:$4 sm:$0xff]  }
 0x3aa   :  { %11486 = vst [vmem:[#allocation28_spill] sm:$0xff] %v10352_v20  ;;  %11487 = vst [vmem:[#allocation29_spill] sm:$0xff] %v10357_v53 }
 0x3ac   :  { %3335 = vmatpush1.bf16.msra.mxu0 %v11441_v32  ;;  %3376 = vmatpush1.bf16.msra.mxu1 %v11442_v44 }
 0x3ad   :  { %3336 = vmatprep.subr.bf16.mxu0 %v11443_v3  ;;  %3377 = vmatprep.subr.bf16.mxu1 %v11444_v45  ;;  %v11488_v3 = vld [vmem:[#allocation37_spill] sm:$0xff] }
 0x3b0   :  { %3337 = vmatpush1.bf16.msra.mxu0 %v11445_v58  ;;  %3378 = vmatpush1.bf16.msra.mxu1 %v11446_v35 }
 0x3b1   :  { %3338 = vmatprep.subr.bf16.mxu0 %v9940_v28  ;;  %3379 = vmatprep.subr.bf16.mxu1 %v9945_v57  ;;  %v10221_v28 = vld [vmem:[%s11293_s6 + $0x1a4] ss:$16 sps:$4 sm:$0xff]   ;;  %v10226_v57 = vld [vmem:[%s11293_s6 + $0x1ac] ss:$16 sps:$4 sm:$0xff]  }
 0x3b4   :  { %3339 = vmatpush1.bf16.msra.mxu0 %v11447_v4  ;;  %3380 = vmatpush1.bf16.msra.mxu1 %v11448_v7  ;;  %v11489_v7 = vld [vmem:[#allocation39_spill] sm:$0xff] }
 0x3b5   :  { %3340 = vmatprep.subr.bf16.mxu0 %v9968_v60  ;;  %3381 = vmatprep.subr.bf16.mxu1 %v11449_v56  ;;  %v10245_v60 = vld [vmem:[%s11293_s6 + $0x180] ss:$16 sps:$4 sm:$0xff]  }
 0x3b8   :  { %3341 = vmatpush2.bf16.msra.mxu0 %v9978_v54  ;;  %3382 = vmatpush2.bf16.msra.mxu1 %v9983_v50  ;;  %v10231_v50 = vld [vmem:[%s11293_s6 + $0x1a0] ss:$16 sps:$4 sm:$0xff]   ;;  %v10236_v54 = vld [vmem:[%s11293_s6 + $0x1a8] ss:$16 sps:$4 sm:$0xff]  }
 0x3b9   :  { %3342 = vmatprep.subr.bf16.mxu0 %v10104_v19  ;;  %3383 = vmatprep.subr.bf16.mxu1 %v10109_v6 }
 0x3bc   :  { %3343 = vmatpush2.bf16.msra.mxu0 %v10114_v40  ;;  %3384 = vmatpush2.bf16.msra.mxu1 %v10119_v42 }
 0x3bd   :  { %3344 = vmatprep.subr.bf16.mxu0 %v10221_v28  ;;  %3385 = vmatprep.subr.bf16.mxu1 %v10226_v57 }
 0x3c0   :  { %3345 = vmatpush2.bf16.msra.mxu0 %v10231_v50  ;;  %3386 = vmatpush2.bf16.msra.mxu1 %v10236_v54 }
 0x3c1   :  { %3346 = vmatprep.subr.bf16.mxu0 %v10250_v12  ;;  %3387 = vmatprep.subr.bf16.mxu1 %v10260_v9 }
 0x3c4   :  { %3347 = vmatpush2.bf16.msra.mxu0 %v10245_v60  ;;  %3388 = vmatpush2.bf16.msra.mxu1 %v10255_v13 }
 0x3c5   :  { %3348 = vmatprep.subr.bf16.mxu0 %v10265_v23  ;;  %3389 = vmatprep.subr.bf16.mxu1 %v10271_v43 }
 0x3c8   :  { %3349 = vmatpush2.bf16.msra.mxu0 %v10279_v41  ;;  %3390 = vmatpush2.bf16.msra.mxu1 %v10284_v36 }
 0x3c9   :  { %3350 = vmatprep.subr.bf16.mxu0 %v10291_v10  ;;  %3391 = vmatprep.subr.bf16.mxu1 %v10296_v61 }
 0x3cc   :  { %3351 = vmatpush2.bf16.msra.mxu0 %v10304_v62  ;;  %3392 = vmatpush2.bf16.msra.mxu1 %v10309_v0 }
 0x3cd   :  { %3352 = vmatprep.subr.bf16.mxu0 %v10318_v38  ;;  %3393 = vmatprep.subr.bf16.mxu1 %v10323_v31 }
 0x3d0   :  { %3353 = vmatpush2.bf16.msra.mxu0 %v10328_v52  ;;  %3394 = vmatpush2.bf16.msra.mxu1 %v10333_v59 }
 0x3d1   :  { %3354 = vmatprep.subr.bf16.mxu0 %v10342_v26  ;;  %3395 = vmatprep.subr.bf16.mxu1 %v10347_v39 }
 0x3d4   :  { %3355 = vmatpush2.bf16.msra.mxu0 %v10352_v20  ;;  %3396 = vmatpush2.bf16.msra.mxu1 %v10357_v53 }
 0x405   :  { %v2376_v18 = vpop.permute.xlu1 %2375 }
 0x406   :  { %v2383_v46 = vsel %vm2382_vm3, %v2376_v18, 0.0 }
 0x407   :  { %2385 = vst [vmem:[#allocation6 + $0x28] sm:$0xff] %v2383_v46 }
 0x457   :  { %v2815_v32 = vpop.f32.mrf.mxu0  ;;  %v2856_v44 = vpop.f32.mrf.mxu1 }
 0x458   :  { %v2863_v45 = vadd.f32 %v2815_v32, %v11488_v3  ;;  %v2865_v51 = vadd.f32 %v2856_v44, %v11491_v48  ;;  %v11492_v32 = vld [vmem:[#allocation58_spill] sm:$0xff]  ;;  %v10439_v48 = vld [vmem:[%s11293_s6 + $0xa4] ss:$16 sps:$4 sm:$0xff]  }
 0x459   :  { %v2817_v58 = vpop.f32.mrf.mxu0  ;;  %v2858_v35 = vpop.f32.mrf.mxu1  ;;  %vm2898_vm4 = vcmp.eq.s32.totalorder %v11492_v32, 1  ;;  %v10526_v32 = vld [vmem:[%s11293_s6 + $0x48] ss:$16 sps:$4 sm:$0xff]  }
 0x45a   :  { %v6928_v4 = vmul.f32 -1.442695, %v2863_v45  ;;  %v2864_v56 = vadd.f32 %v2817_v58, %v11489_v7  ;;  %v2866_v55 = vadd.f32 %v2858_v35, %v11490_v33  ;;  %vm2901_vm10 = vmand %vm2898_vm4, %vm740_vm0  ;;  %v11493_v35 = vld [vmem:[#allocation69_spill] sm:$0xff] }
 0x45b   :  { %v2819_v27 = vpop.f32.mrf.mxu0  ;;  %v2860_v47 = vpop.f32.mrf.mxu1  ;;  %vm2902_vm14 = vmand %vm2898_vm4, %vm8844_vm7  ;;  %vm2914_vm2 = vcmp.eq.s32.totalorder %v11493_v35, 1  ;;  %v10425_v33 = vld [vmem:[%s11293_s6 + $0xc0] ss:$16 sps:$4 sm:$0xff]   ;;  %v10550_v35 = vld [vmem:[%s11293_s6 + $0x28] ss:$16 sps:$4 sm:$0xff]  }
 0x45c   :  { %8119 = vpow2.f32 %v6928_v4  ;;  %v6929_v29 = vmul.f32 -1.442695, %v2864_v56  ;;  %v6930_v24 = vmul.f32 -1.442695, %v2866_v55  ;;  %v10401_v47 = vld [vmem:[%s11293_s6 + $0xe0] ss:$16 sps:$4 sm:$0xff]  }
 0x45d   :  { %v2820_v17 = vpop.f32.mrf.mxu0  ;;  %v2861_v37 = vpop.f32.mrf.mxu1  ;;  %v10430_v55 = vld [vmem:[%s11293_s6 + $0xc8] ss:$16 sps:$4 sm:$0xff]   ;;  %11498 = vst [vmem:[#allocation62_spill] sm:$0xff] %v10550_v35 }
 0x45e   :  { %8121 = vpow2.f32 %v6929_v29  ;;  %v10406_v29 = vld [vmem:[%s11293_s6 + $0xe8] ss:$16 sps:$4 sm:$0xff]   ;;  %v10415_v17 = vld [vmem:[%s11293_s6 + $0xc4] ss:$16 sps:$4 sm:$0xff]   ;;  %v10420_v37 = vld [vmem:[%s11293_s6 + $0xcc] ss:$16 sps:$4 sm:$0xff]  }
 0x45f   :  { %8123 = vtanh.f32 %v2865_v51  ;;  %v10444_v51 = vld [vmem:[%s11293_s6 + $0xac] ss:$16 sps:$4 sm:$0xff]  }
 0x460   :  { %8125 = vpow2.f32 %v6930_v24  ;;  %v10449_v24 = vld [vmem:[%s11293_s6 + $0xa0] ss:$16 sps:$4 sm:$0xff]  }
 0x469   :  { %v8120_v15 = vpop.eup %8119 }
 0x46a   :  { %v2870_v63 = vadd.f32 1.0, %v8120_v15  ;;  %v10454_v15 = vld [vmem:[%s11293_s6 + $0xa8] ss:$16 sps:$4 sm:$0xff]  }
 0x46b   :  { %v8122_v49 = vpop.eup %8121 }
 0x46c   :  { %8127 = vrcp.f32 %v2870_v63  ;;  %v2876_v8 = vadd.f32 1.0, %v8122_v49  ;;  %v8124_v25 = vpop.eup %8123  ;;  %v10463_v63 = vld [vmem:[%s11293_s6 + $0x84] ss:$16 sps:$4 sm:$0xff]   ;;  %v10468_v49 = vld [vmem:[%s11293_s6 + $0x8c] ss:$16 sps:$4 sm:$0xff]  }
 0x46d   :  { %v8126_v34 = vpop.eup %8125 }
 0x46e   :  { %8129 = vrcp.f32 %v2876_v8  ;;  %v2883_v30 = vadd.f32 1.0, %v8126_v34  ;;  %v10473_v8 = vld [vmem:[%s11293_s6 + $0x80] ss:$16 sps:$4 sm:$0xff]   ;;  %v10487_v34 = vld [vmem:[%s11293_s6 + $0x64] ss:$16 sps:$4 sm:$0xff]  }
 0x470   :  { %8131 = vrcp.f32 %v2883_v30  ;;  %v10511_v30 = vld [vmem:[%s11293_s6 + $0x44] ss:$16 sps:$4 sm:$0xff]  }
 0x479   :  { %v8128_v1 = vpop.eup %8127 }
 0x47a   :  { %v2888_v14 = vmul.f32 %v8128_v1, %v8124_v25  ;;  %v10478_v25 = vld [vmem:[%s11293_s6 + $0x88] ss:$16 sps:$4 sm:$0xff]   ;;  %v10492_v1 = vld [vmem:[%s11293_s6 + $0x6c] ss:$16 sps:$4 sm:$0xff]  }
 0x47b   :  { %v8130_v2 = vpop.eup %8129 }
 0x47c   :  { %v2887_v18 = vmul.f32 %v8130_v2, %v10162_v11  ;;  %v10502_v2 = vld [vmem:[%s11293_s6 + $0x68] ss:$16 sps:$4 sm:$0xff]  }
 0x47d   :  { %v8132_v3 = vpop.eup %8131 }
 0x47e   :  { %v2889_v46 = vadd.f32 %v2888_v14, %v2887_v18  ;;  %v10497_v14 = vld [vmem:[%s11293_s6 + $0x60] ss:$16 sps:$4 sm:$0xff]   ;;  %v10516_v18 = vld [vmem:[%s11293_s6 + $0x4c] ss:$16 sps:$4 sm:$0xff]  }
 0x480   :  { %8133 = vtanh.f32 %v2889_v46  ;;  %v10370_v44 = vsel %vm2898_vm4, %v2889_v46, %v10162_v11  ;;  %v10521_v46 = vld [vmem:[%s11293_s6 + $0x40] ss:$16 sps:$4 sm:$0xff]  }
 0x48d   :  { %v8134_v45 = vpop.eup %8133 }
 0x48e   :  { %v2891_v58 = vmul.f32 %v8134_v45, %v8132_v3  ;;  %v10535_v3 = vld [vmem:[%s11293_s6 + $0x24] ss:$16 sps:$4 sm:$0xff]   ;;  %v10540_v45 = vld [vmem:[%s11293_s6 + $0x2c] ss:$16 sps:$4 sm:$0xff]  }
 0x48f   :  { %11496 = vst [vmem:[#allocation31_spill] sm:$0xff] %v10540_v45 }
 0x490   :  { %2918 = vrot.lane.b32.xlu0 %v2891_v58, %s8365_s1  ;;  %v10379_v4 = vsel %vm2901_vm10, %v2891_v58, %v10171_v22  ;;  %v10382_v7 = vsel %vm2902_vm14, %v2891_v58, %v10174_v21  ;;  %v2915_v11 = vsel %vm2914_vm2, %v2891_v58, 0.0  ;;  %v10391_v22 = vld [vmem:[%s11293_s6 + $0xe4] ss:$16 sps:$4 sm:$0xff]   ;;  %v10396_v21 = vld [vmem:[%s11293_s6 + $0xec] ss:$16 sps:$4 sm:$0xff]  }
 0x491   :  { %2917 = vst [vmem:[#allocation5 + $0x18] sm:$0xff] %v2915_v11  ;;  %v2939_v56 = vpack.c.bf16 %v10382_v7, %v10382_v7  ;;  %v2938_v27 = vpack.c.bf16 %v10379_v4, %v10379_v4  ;;  %11494 = vst [vmem:[#allocation32_spill] sm:$0xff] %v10391_v22  ;;  %3867 = vmatprep.subr.bf16.mxu0 %v10391_v22  ;;  %3908 = vmatprep.subr.bf16.mxu1 %v10396_v21  ;;  %v10545_v58 = vld [vmem:[%s11293_s6 + $0x20] ss:$16 sps:$4 sm:$0xff]   ;;  %v10559_v11 = vld [vmem:[%s11293_s6 + $0x4] ss:$16 sps:$4 sm:$0xff]  }
 0x492   :  { %11495 = vst [vmem:[#allocation30_spill] sm:$0xff] %v10396_v21  ;;  %11497 = vst [vmem:[#allocation61_spill] sm:$0xff] %v10545_v58 }
 0x493   :  { %3356 = vmatprep.mubr.bf16.mxu0 %v2939_v56  ;;  %3397 = vmatprep.mubr.bf16.mxu1 %v2939_v56  ;;  %11499 = vst [vmem:[#allocation33_spill] sm:$0xff] %v10559_v11  ;;  %v10564_v56 = vld [vmem:[%s11293_s6 + $0xc] ss:$16 sps:$4 sm:$0xff]  }
 0x494   :  { %3357 = vmatmul.mubr.bf16.vlgmr.msra.gmra.mxu0 %v2938_v27  ;;  %3398 = vmatmul.mubr.bf16.vlgmr.msra.gmra.mxu1 %v2938_v27  ;;  %v10569_v27 = vld [vmem:[%s11293_s6] ss:$16 sps:$4 sm:$0xff]  }
 0x495   :  { %3868 = vmatpush1.bf16.msra.mxu0 %v10401_v47  ;;  %3909 = vmatpush1.bf16.msra.mxu1 %v10406_v29  ;;  %11500 = vst [vmem:[#allocation35_spill] sm:$0xff] %v10569_v27 }
 0x496   :  { %3869 = vmatprep.subr.bf16.mxu0 %v10415_v17  ;;  %3910 = vmatprep.subr.bf16.mxu1 %v10420_v37 }
 0x499   :  { %3870 = vmatpush1.bf16.msra.mxu0 %v10425_v33  ;;  %3911 = vmatpush1.bf16.msra.mxu1 %v10430_v55 }
 0x49a   :  { %3871 = vmatprep.subr.bf16.mxu0 %v10439_v48  ;;  %3912 = vmatprep.subr.bf16.mxu1 %v10444_v51 }
 0x49d   :  { %3872 = vmatpush1.bf16.msra.mxu0 %v10449_v24  ;;  %3913 = vmatpush1.bf16.msra.mxu1 %v10454_v15 }
 0x49e   :  { %3873 = vmatprep.subr.bf16.mxu0 %v10463_v63  ;;  %3914 = vmatprep.subr.bf16.mxu1 %v10468_v49 }
 0x4a1   :  { %3874 = vmatpush1.bf16.msra.mxu0 %v10473_v8  ;;  %3915 = vmatpush1.bf16.msra.mxu1 %v10478_v25 }
 0x4a2   :  { %3875 = vmatprep.subr.bf16.mxu0 %v10487_v34  ;;  %3916 = vmatprep.subr.bf16.mxu1 %v10492_v1 }
 0x4a5   :  { %3876 = vmatpush1.bf16.msra.mxu0 %v10497_v14  ;;  %3917 = vmatpush1.bf16.msra.mxu1 %v10502_v2 }
 0x4a6   :  { %3877 = vmatprep.subr.bf16.mxu0 %v10511_v30  ;;  %3918 = vmatprep.subr.bf16.mxu1 %v10516_v18 }
 0x4a9   :  { %3878 = vmatpush1.bf16.msra.mxu0 %v10521_v46  ;;  %3919 = vmatpush1.bf16.msra.mxu1 %v10526_v32 }
 0x4aa   :  { %3879 = vmatprep.subr.bf16.mxu0 %v10535_v3  ;;  %3920 = vmatprep.subr.bf16.mxu1 %v10540_v45  ;;  %v10588_v45 = vld [vmem:[%s11293_s6 + $0x1ec] ss:$16 sps:$4 sm:$0xff]  }
 0x4ad   :  { %3880 = vmatpush1.bf16.msra.mxu0 %v10545_v58  ;;  %3921 = vmatpush1.bf16.msra.mxu1 %v10550_v35  ;;  %v10574_v58 = vld [vmem:[%s11293_s6 + $0x8] ss:$16 sps:$4 sm:$0xff]   ;;  %v10583_v35 = vld [vmem:[%s11293_s6 + $0x1e4] ss:$16 sps:$4 sm:$0xff]  }
 0x4ae   :  { %3881 = vmatprep.subr.bf16.mxu0 %v10559_v11  ;;  %3922 = vmatprep.subr.bf16.mxu1 %v10564_v56  ;;  %v10593_v11 = vld [vmem:[%s11293_s6 + $0x1e0] ss:$16 sps:$4 sm:$0xff]  }
 0x4b1   :  { %3882 = vmatpush1.bf16.msra.mxu0 %v10569_v27  ;;  %3923 = vmatpush1.bf16.msra.mxu1 %v10574_v58  ;;  %v10598_v27 = vld [vmem:[%s11293_s6 + $0x1e8] ss:$16 sps:$4 sm:$0xff]  }
 0x4b2   :  { %3883 = vmatprep.subr.bf16.mxu0 %v10583_v35  ;;  %3924 = vmatprep.subr.bf16.mxu1 %v10588_v45 }
 0x4b5   :  { %3884 = vmatpush2.bf16.msra.mxu0 %v10593_v11  ;;  %3925 = vmatpush2.bf16.msra.mxu1 %v10598_v27 }
 0x4b6   :  { %3885 = vmatprep.subr.bf16.mxu0 %v10104_v19  ;;  %3926 = vmatprep.subr.bf16.mxu1 %v10109_v6  ;;  %v11501_v19 = vld [vmem:[#allocation65_spill] sm:$0xff] }
 0x4b7   :  { %vm2925_vm5 = vcmp.eq.s32.totalorder %v11501_v19, 1 }
 0x4b9   :  { %3886 = vmatpush2.bf16.msra.mxu0 %v10114_v40  ;;  %3927 = vmatpush2.bf16.msra.mxu1 %v10119_v42 }
 0x4ba   :  { %3887 = vmatprep.subr.bf16.mxu0 %v10221_v28  ;;  %3928 = vmatprep.subr.bf16.mxu1 %v10226_v57 }
 0x4bd   :  { %3888 = vmatpush2.bf16.msra.mxu0 %v10231_v50  ;;  %3929 = vmatpush2.bf16.msra.mxu1 %v10236_v54 }
 0x4be   :  { %3889 = vmatprep.subr.bf16.mxu0 %v10250_v12  ;;  %3930 = vmatprep.subr.bf16.mxu1 %v10260_v9 }
 0x4c1   :  { %3890 = vmatpush2.bf16.msra.mxu0 %v10245_v60  ;;  %3931 = vmatpush2.bf16.msra.mxu1 %v10255_v13 }
 0x4c2   :  { %3891 = vmatprep.subr.bf16.mxu0 %v10265_v23  ;;  %3932 = vmatprep.subr.bf16.mxu1 %v10271_v43 }
 0x4c5   :  { %3892 = vmatpush2.bf16.msra.mxu0 %v10279_v41  ;;  %3933 = vmatpush2.bf16.msra.mxu1 %v10284_v36 }
 0x4c6   :  { %3893 = vmatprep.subr.bf16.mxu0 %v10291_v10  ;;  %3934 = vmatprep.subr.bf16.mxu1 %v10296_v61  ;;  %v11505_v10 = vld [vmem:[#allocation42_spill] sm:$0xff] }
 0x4c9   :  { %3894 = vmatpush2.bf16.msra.mxu0 %v10304_v62  ;;  %3935 = vmatpush2.bf16.msra.mxu1 %v10309_v0 }
 0x4ca   :  { %3895 = vmatprep.subr.bf16.mxu0 %v10318_v38  ;;  %3936 = vmatprep.subr.bf16.mxu1 %v10323_v31 }
 0x4cd   :  { %3896 = vmatpush2.bf16.msra.mxu0 %v10328_v52  ;;  %3937 = vmatpush2.bf16.msra.mxu1 %v10333_v59  ;;  %v11503_v59 = vld [vmem:[#allocation43_spill] sm:$0xff] }
 0x4ce   :  { %3897 = vmatprep.subr.bf16.mxu0 %v10342_v26  ;;  %3938 = vmatprep.subr.bf16.mxu1 %v10347_v39 }
 0x4d1   :  { %3898 = vmatpush2.bf16.msra.mxu0 %v10352_v20  ;;  %3939 = vmatpush2.bf16.msra.mxu1 %v10357_v53  ;;  %v11504_v53 = vld [vmem:[#allocation44_spill] sm:$0xff] }
 0x4d2   :  { %4410 = vmatprep.subr.bf16.mxu0 %v10391_v22  ;;  %4451 = vmatprep.subr.bf16.mxu1 %v10396_v21 }
 0x502   :  { %v2919_v6 = vpop.permute.xlu0 %2918 }
 0x503   :  { %v2926_v40 = vsel %vm2925_vm5, %v2919_v6, 0.0  ;;  %v11502_v6 = vld [vmem:[#allocation41_spill] sm:$0xff] }
 0x504   :  { %2928 = vst [vmem:[#allocation6 + $0x20] sm:$0xff] %v2926_v40 }
 0x554   :  { %v3358_v42 = vpop.f32.mrf.mxu0  ;;  %v3399_v19 = vpop.f32.mrf.mxu1 }
 0x555   :  { %v3406_v40 = vadd.f32 %v3358_v42, %v11502_v6  ;;  %v3408_v21 = vadd.f32 %v3399_v19, %v11505_v10 }
 0x556   :  { %v3360_v31 = vpop.f32.mrf.mxu0  ;;  %v3401_v52 = vpop.f32.mrf.mxu1 }
 0x557   :  { %v6995_v38 = vmul.f32 -1.442695, %v3406_v40  ;;  %v3407_v0 = vadd.f32 %v3360_v31, %v11503_v59  ;;  %v3409_v22 = vadd.f32 %v3401_v52, %v11504_v53  ;;  %v11510_v40 = vld [vmem:[#allocation62_spill] sm:$0xff] }
 0x558   :  { %v3362_v26 = vpop.f32.mrf.mxu0  ;;  %v3403_v62 = vpop.f32.mrf.mxu1 }
 0x559   :  { %8135 = vpow2.f32 %v6995_v38  ;;  %v6996_v39 = vmul.f32 -1.442695, %v3407_v0  ;;  %v6997_v36 = vmul.f32 -1.442695, %v3409_v22 }
 0x55a   :  { %v3363_v20 = vpop.f32.mrf.mxu0  ;;  %v3404_v61 = vpop.f32.mrf.mxu1 }
 0x55b   :  { %8137 = vpow2.f32 %v6996_v39  ;;  %v11506_v39 = vld [vmem:[#allocation81_spill] sm:$0xff]  ;;  %v11507_v20 = vld [vmem:[#allocation78_spill] sm:$0xff] }
 0x55c   :  { %8139 = vtanh.f32 %v3408_v21  ;;  %vm3441_vm6 = vcmp.eq.s32.totalorder %v11506_v39, 1  ;;  %vm3457_vm11 = vcmp.eq.s32.totalorder %v11507_v20, 1  ;;  %v11524_v39 = vld [vmem:[#allocation25_spill] sm:$0xff] }
 0x55d   :  { %8141 = vpow2.f32 %v6997_v36  ;;  %vm3444_vm8 = vmand %vm3441_vm6, %vm740_vm0  ;;  %v11528_v20 = vld [vmem:[#allocation29_spill] sm:$0xff] }
 0x55e   :  { %vm3445_vm9 = vmand %vm3441_vm6, %vm8844_vm7 }
 0x566   :  { %v8136_v41 = vpop.eup %8135 }
 0x567   :  { %v3413_v43 = vadd.f32 1.0, %v8136_v41 }
 0x568   :  { %v8138_v42 = vpop.eup %8137 }
 0x569   :  { %8143 = vrcp.f32 %v3413_v43  ;;  %v3419_v6 = vadd.f32 1.0, %v8138_v42  ;;  %v8140_v31 = vpop.eup %8139  ;;  %v11511_v42 = vld [vmem:[#allocation33_spill] sm:$0xff] }
 0x56a   :  { %v8142_v62 = vpop.eup %8141 }
 0x56b   :  { %8145 = vrcp.f32 %v3419_v6  ;;  %v3426_v61 = vadd.f32 1.0, %v8142_v62  ;;  %v11512_v6 = vld [vmem:[#allocation35_spill] sm:$0xff]  ;;  %v10702_v62 = vld [vmem:[%s11293_s6 + $0x1cc] ss:$16 sps:$4 sm:$0xff]  }
 0x56d   :  { %8147 = vrcp.f32 %v3426_v61  ;;  %v11514_v61 = vld [vmem:[#allocation66_spill] sm:$0xff] }
 0x56e   :  { %vm3468_vm13 = vcmp.eq.s32.totalorder %v11514_v61, 1  ;;  %v11531_v61 = vld [vmem:[#allocation45_spill] sm:$0xff] }
 0x576   :  { %v8144_v38 = vpop.eup %8143 }
 0x577   :  { %v3431_v0 = vmul.f32 %v8144_v38, %v8140_v31  ;;  %v10697_v31 = vld [vmem:[%s11293_s6 + $0x1c4] ss:$16 sps:$4 sm:$0xff]   ;;  %v10707_v38 = vld [vmem:[%s11293_s6 + $0x1c0] ss:$16 sps:$4 sm:$0xff]  }
 0x578   :  { %v8146_v59 = vpop.eup %8145 }
 0x579   :  { %v3430_v26 = vmul.f32 %v8146_v59, %v10370_v44  ;;  %v11513_v59 = vld [vmem:[#allocation71_spill] sm:$0xff] }
 0x57a   :  { %v8148_v36 = vpop.eup %8147 }
 0x57b   :  { %v3432_v52 = vadd.f32 %v3431_v0, %v3430_v26  ;;  %v10712_v0 = vld [vmem:[%s11293_s6 + $0x1c8] ss:$16 sps:$4 sm:$0xff]  }
 0x57c   :  { %v11515_v26 = vld [vmem:[#allocation72_spill] sm:$0xff] }
 0x57d   :  { %8149 = vtanh.f32 %v3432_v52  ;;  %v10642_v41 = vsel %vm3441_vm6, %v3432_v52, %v10370_v44  ;;  %v11523_v52 = vld [vmem:[#allocation83_spill] sm:$0xff] }
 0x58a   :  { %v8150_v43 = vpop.eup %8149 }
 0x58b   :  { %v3434_v10 = vmul.f32 %v8150_v43, %v8148_v36  ;;  %v11525_v36 = vld [vmem:[#allocation26_spill] sm:$0xff]  ;;  %v11526_v43 = vld [vmem:[#allocation27_spill] sm:$0xff] }
 0x58d   :  { %3461 = vrot.lane.b32.xlu1 %v3434_v10, %s8365_s1  ;;  %v10651_v53 = vsel %vm3444_vm8, %v3434_v10, %v10379_v4  ;;  %v10654_v22 = vsel %vm3445_vm9, %v3434_v10, %v10382_v7  ;;  %v3458_v44 = vsel %vm3457_vm11, %v3434_v10, 0.0  ;;  %v11508_v4 = vld [vmem:[#allocation31_spill] sm:$0xff]  ;;  %v11509_v7 = vld [vmem:[#allocation61_spill] sm:$0xff]  ;;  %v11527_v10 = vld [vmem:[#allocation28_spill] sm:$0xff] }
 0x58e   :  { %3460 = vst [vmem:[#allocation5 + $0x20] sm:$0xff] %v3458_v44  ;;  %v3482_v21 = vpack.c.bf16 %v10654_v22, %v10654_v22  ;;  %v3481_v19 = vpack.c.bf16 %v10651_v53, %v10651_v53  ;;  %v11529_v44 = vld [vmem:[#allocation32_spill] sm:$0xff] }
 0x590   :  { %3899 = vmatprep.mubr.bf16.mxu0 %v3482_v21  ;;  %3940 = vmatprep.mubr.bf16.mxu1 %v3482_v21  ;;  %v11530_v21 = vld [vmem:[#allocation30_spill] sm:$0xff] }
 0x591   :  { %3900 = vmatmul.mubr.bf16.vlgmr.msra.gmra.mxu0 %v3481_v19  ;;  %3941 = vmatmul.mubr.bf16.vlgmr.msra.gmra.mxu1 %v3481_v19 }
 0x592   :  { %4411 = vmatpush1.bf16.msra.mxu0 %v10401_v47  ;;  %4452 = vmatpush1.bf16.msra.mxu1 %v10406_v29 }
 0x593   :  { %4412 = vmatprep.subr.bf16.mxu0 %v10415_v17  ;;  %4453 = vmatprep.subr.bf16.mxu1 %v10420_v37 }
 0x596   :  { %4413 = vmatpush1.bf16.msra.mxu0 %v10425_v33  ;;  %4454 = vmatpush1.bf16.msra.mxu1 %v10430_v55 }
 0x597   :  { %4414 = vmatprep.subr.bf16.mxu0 %v10439_v48  ;;  %4455 = vmatprep.subr.bf16.mxu1 %v10444_v51 }
 0x59a   :  { %4415 = vmatpush1.bf16.msra.mxu0 %v10449_v24  ;;  %4456 = vmatpush1.bf16.msra.mxu1 %v10454_v15 }
 0x59b   :  { %4416 = vmatprep.subr.bf16.mxu0 %v10463_v63  ;;  %4457 = vmatprep.subr.bf16.mxu1 %v10468_v49 }
 0x59e   :  { %4417 = vmatpush1.bf16.msra.mxu0 %v10473_v8  ;;  %4458 = vmatpush1.bf16.msra.mxu1 %v10478_v25 }
 0x59f   :  { %4418 = vmatprep.subr.bf16.mxu0 %v10487_v34  ;;  %4459 = vmatprep.subr.bf16.mxu1 %v10492_v1 }
 0x5a2   :  { %4419 = vmatpush1.bf16.msra.mxu0 %v10497_v14  ;;  %4460 = vmatpush1.bf16.msra.mxu1 %v10502_v2 }
 0x5a3   :  { %4420 = vmatprep.subr.bf16.mxu0 %v10511_v30  ;;  %4461 = vmatprep.subr.bf16.mxu1 %v10516_v18 }
 0x5a6   :  { %4421 = vmatpush1.bf16.msra.mxu0 %v10521_v46  ;;  %4462 = vmatpush1.bf16.msra.mxu1 %v10526_v32 }
 0x5a7   :  { %4422 = vmatprep.subr.bf16.mxu0 %v10535_v3  ;;  %4463 = vmatprep.subr.bf16.mxu1 %v11508_v4 }
 0x5aa   :  { %4423 = vmatpush1.bf16.msra.mxu0 %v11509_v7  ;;  %4464 = vmatpush1.bf16.msra.mxu1 %v11510_v40 }
 0x5ab   :  { %4424 = vmatprep.subr.bf16.mxu0 %v11511_v42  ;;  %4465 = vmatprep.subr.bf16.mxu1 %v10564_v56 }
 0x5ae   :  { %4425 = vmatpush1.bf16.msra.mxu0 %v11512_v6  ;;  %4466 = vmatpush1.bf16.msra.mxu1 %v10574_v58 }
 0x5af   :  { %4426 = vmatprep.subr.bf16.mxu0 %v10583_v35  ;;  %4467 = vmatprep.subr.bf16.mxu1 %v10588_v45 }
 0x5b2   :  { %4427 = vmatpush2.bf16.msra.mxu0 %v10593_v11  ;;  %4468 = vmatpush2.bf16.msra.mxu1 %v10598_v27 }
 0x5b3   :  { %4428 = vmatprep.subr.bf16.mxu0 %v10697_v31  ;;  %4469 = vmatprep.subr.bf16.mxu1 %v10702_v62 }
 0x5b6   :  { %4429 = vmatpush2.bf16.msra.mxu0 %v10707_v38  ;;  %4470 = vmatpush2.bf16.msra.mxu1 %v10712_v0 }
 0x5b7   :  { %4430 = vmatprep.subr.bf16.mxu0 %v10221_v28  ;;  %4471 = vmatprep.subr.bf16.mxu1 %v10226_v57 }
 0x5ba   :  { %4431 = vmatpush2.bf16.msra.mxu0 %v10231_v50  ;;  %4472 = vmatpush2.bf16.msra.mxu1 %v10236_v54  ;;  %v11516_v50 = vld [vmem:[#allocation73_spill] sm:$0xff]  ;;  %v11517_v54 = vld [vmem:[#allocation74_spill] sm:$0xff] }
 0x5bb   :  { %4432 = vmatprep.subr.bf16.mxu0 %v10250_v12  ;;  %4473 = vmatprep.subr.bf16.mxu1 %v10260_v9  ;;  %v11518_v12 = vld [vmem:[#allocation75_spill] sm:$0xff] }
 0x5bc   :  { %v11521_v9 = vld [vmem:[#allocation79_spill] sm:$0xff] }
 0x5be   :  { %4433 = vmatpush2.bf16.msra.mxu0 %v10245_v60  ;;  %4474 = vmatpush2.bf16.msra.mxu1 %v10255_v13  ;;  %v11519_v60 = vld [vmem:[#allocation76_spill] sm:$0xff]  ;;  %v11520_v13 = vld [vmem:[#allocation77_spill] sm:$0xff] }
 0x5bf   :  { %4434 = vmatprep.subr.bf16.mxu0 %v10265_v23  ;;  %4475 = vmatprep.subr.bf16.mxu1 %v11513_v59  ;;  %v11522_v23 = vld [vmem:[#allocation80_spill] sm:$0xff] }
 0x5c2   :  { %4435 = vmatpush2.bf16.msra.mxu0 %v11515_v26  ;;  %4476 = vmatpush2.bf16.msra.mxu1 %v11516_v50 }
 0x5c3   :  { %4436 = vmatprep.subr.bf16.mxu0 %v11517_v54  ;;  %4477 = vmatprep.subr.bf16.mxu1 %v11518_v12  ;;  %v11532_v54 = vld [vmem:[#allocation47_spill] sm:$0xff] }
 0x5c6   :  { %4437 = vmatpush2.bf16.msra.mxu0 %v11519_v60  ;;  %4478 = vmatpush2.bf16.msra.mxu1 %v11520_v13 }
 0x5c7   :  { %4438 = vmatprep.subr.bf16.mxu0 %v11521_v9  ;;  %4479 = vmatprep.subr.bf16.mxu1 %v11522_v23 }
 0x5ca   :  { %4439 = vmatpush2.bf16.msra.mxu0 %v11523_v52  ;;  %4480 = vmatpush2.bf16.msra.mxu1 %v11524_v39  ;;  %v11533_v39 = vld [vmem:[#allocation48_spill] sm:$0xff] }
 0x5cb   :  { %4440 = vmatprep.subr.bf16.mxu0 %v11525_v36  ;;  %4481 = vmatprep.subr.bf16.mxu1 %v11526_v43  ;;  %v11534_v43 = vld [vmem:[#allocation46_spill] sm:$0xff] }
 0x5ce   :  { %4441 = vmatpush2.bf16.msra.mxu0 %v11527_v10  ;;  %4482 = vmatpush2.bf16.msra.mxu1 %v11528_v20 }
 0x5cf   :  { %4953 = vmatprep.subr.bf16.mxu0 %v11529_v44  ;;  %4994 = vmatprep.subr.bf16.mxu1 %v11530_v21 }
 0x5ff   :  { %v3462_v28 = vpop.permute.xlu1 %3461 }
 0x600   :  { %v3469_v57 = vsel %vm3468_vm13, %v3462_v28, 0.0 }
 0x601   :  { %3471 = vst [vmem:[#allocation6 + $0x18] sm:$0xff] %v3469_v57 }
 0x651   :  { %v3901_v19 = vpop.f32.mrf.mxu0  ;;  %v3942_v59 = vpop.f32.mrf.mxu1 }
 0x652   :  { %v3949_v28 = vadd.f32 %v3901_v19, %v11531_v61  ;;  %v3951_v10 = vadd.f32 %v3942_v59, %v11534_v43 }
 0x653   :  { %v3903_v57 = vpop.f32.mrf.mxu0  ;;  %v3944_v26 = vpop.f32.mrf.mxu1 }
 0x654   :  { %v7062_v50 = vmul.f32 -1.442695, %v3949_v28  ;;  %v3950_v12 = vadd.f32 %v3903_v57, %v11532_v54  ;;  %v3952_v36 = vadd.f32 %v3944_v26, %v11533_v39 }
 0x655   :  { %v3905_v60 = vpop.f32.mrf.mxu0  ;;  %v3946_v13 = vpop.f32.mrf.mxu1 }
 0x656   :  { %8151 = vpow2.f32 %v7062_v50  ;;  %v7063_v9 = vmul.f32 -1.442695, %v3950_v12  ;;  %v7064_v20 = vmul.f32 -1.442695, %v3952_v36  ;;  %v11536_v36 = vld [vmem:[#allocation82_spill] sm:$0xff] }
 0x657   :  { %v3906_v23 = vpop.f32.mrf.mxu0  ;;  %v3947_v52 = vpop.f32.mrf.mxu1  ;;  %vm4000_vm3 = vcmp.eq.s32.totalorder %v11536_v36, 1 }
 0x658   :  { %8153 = vpow2.f32 %v7063_v9  ;;  %v11535_v9 = vld [vmem:[#allocation59_spill] sm:$0xff] }
 0x659   :  { %8155 = vtanh.f32 %v3951_v10  ;;  %vm3984_vm12 = vcmp.eq.s32.totalorder %v11535_v9, 1 }
 0x65a   :  { %8157 = vpow2.f32 %v7064_v20  ;;  %vm3987_vm15 = vmand %vm3984_vm12, %vm740_vm0 }
 0x65b   :  { %vm3988_vm1 = vmand %vm3984_vm12, %vm8844_vm7 }
 0x663   :  { %v8152_v44 = vpop.eup %8151 }
 0x664   :  { %v3956_v21 = vadd.f32 1.0, %v8152_v44 }
 0x665   :  { %v8154_v19 = vpop.eup %8153 }
 0x666   :  { %8159 = vrcp.f32 %v3956_v21  ;;  %v3962_v61 = vadd.f32 1.0, %v8154_v19  ;;  %v8156_v28 = vpop.eup %8155  ;;  %v11540_v19 = vld [vmem:[#allocation52_spill] sm:$0xff] }
 0x667   :  { %v8158_v57 = vpop.eup %8157 }
 0x668   :  { %8161 = vrcp.f32 %v3962_v61  ;;  %v3969_v60 = vadd.f32 1.0, %v8158_v57 }
 0x66a   :  { %8163 = vrcp.f32 %v3969_v60 }
 0x673   :  { %v8160_v50 = vpop.eup %8159 }
 0x674   :  { %v3974_v54 = vmul.f32 %v8160_v50, %v8156_v28  ;;  %v11541_v28 = vld [vmem:[#allocation50_spill] sm:$0xff] }
 0x675   :  { %v8162_v12 = vpop.eup %8161 }
 0x676   :  { %v3973_v13 = vmul.f32 %v8162_v12, %v10642_v41 }
 0x677   :  { %v8164_v23 = vpop.eup %8163 }
 0x678   :  { %v3975_v26 = vadd.f32 %v3974_v54, %v3973_v13 }
 0x67a   :  { %8165 = vtanh.f32 %v3975_v26  ;;  %v10752_v59 = vsel %vm3984_vm12, %v3975_v26, %v10642_v41  ;;  %vm8367_vm12 = vmmov 0  }
 0x687   :  { %v8166_v52 = vpop.eup %8165 }
 0x688   :  { %v3977_v39 = vmul.f32 %v8166_v52, %v8164_v23 }
 0x68a   :  { %4004 = vrot.lane.b32.xlu0 %v3977_v39, %s8365_s1  ;;  %v10761_v43 = vsel %vm3987_vm15, %v3977_v39, %v10651_v53  ;;  %v10764_v10 = vsel %vm3988_vm1, %v3977_v39, %v10654_v22  ;;  %v4001_v41 = vsel %vm4000_vm3, %v3977_v39, 0.0  ;;  %v11538_v53 = vld [vmem:[#allocation49_spill] sm:$0xff]  ;;  %vm5973_vm3 = vcmask 1040384  }
 0x68b   :  { %4003 = vst [vmem:[#allocation5 + $0x28] sm:$0xff] %v4001_v41  ;;  %v4025_v20 = vpack.c.bf16 %v10764_v10, %v10764_v10  ;;  %v4024_v44 = vpack.c.bf16 %v10761_v43, %v10761_v43 }
 0x68d   :  { %4442 = vmatprep.mubr.bf16.mxu0 %v4025_v20  ;;  %4483 = vmatprep.mubr.bf16.mxu1 %v4025_v20 }
 0x68e   :  { %4443 = vmatmul.mubr.bf16.vlgmr.msra.gmra.mxu0 %v4024_v44  ;;  %4484 = vmatmul.mubr.bf16.vlgmr.msra.gmra.mxu1 %v4024_v44  ;;  %v11542_v44 = vld [vmem:[#allocation84_spill] sm:$0xff] }
 0x68f   :  { %4954 = vmatpush1.bf16.msra.mxu0 %v10401_v47  ;;  %4995 = vmatpush1.bf16.msra.mxu1 %v10406_v29  ;;  %v7853_v47 = vld [vmem:[%s11293_s6 + $0x1a4] ss:$16 sps:$4 sm:$0xff]   ;;  %v7856_v29 = vld [vmem:[%s11293_s6 + $0x1ac] ss:$16 sps:$4 sm:$0xff]   ;;  %vm4527_vm10 = vcmp.eq.s32.totalorder %v11542_v44, 1 }
 0x690   :  { %4955 = vmatprep.subr.bf16.mxu0 %v10415_v17  ;;  %4996 = vmatprep.subr.bf16.mxu1 %v10420_v37  ;;  %v7851_v17 = vld [vmem:[%s11293_s6 + $0x1a0] ss:$16 sps:$4 sm:$0xff]   ;;  %v7854_v37 = vld [vmem:[%s11293_s6 + $0x1a8] ss:$16 sps:$4 sm:$0xff]   ;;  %vm4530_vm14 = vmand %vm4527_vm10, %vm740_vm0 }
 0x691   :  { %vm4531_vm2 = vmand %vm4527_vm10, %vm8844_vm7  ;;  %v7905_v44 = vld [vmem:[#allocation13 + $0xec] ss:$16 sps:$4 sm:$0xff]  }
 0x693   :  { %4956 = vmatpush1.bf16.msra.mxu0 %v10425_v33  ;;  %4997 = vmatpush1.bf16.msra.mxu1 %v10430_v55  ;;  %v7857_v33 = vld [vmem:[%s11293_s6 + $0x180] ss:$16 sps:$4 sm:$0xff]   ;;  %v7859_v55 = vld [vmem:[%s11293_s6 + $0x184] ss:$16 sps:$4 sm:$0xff]  }
 0x694   :  { %4957 = vmatprep.subr.bf16.mxu0 %v10439_v48  ;;  %4998 = vmatprep.subr.bf16.mxu1 %v10444_v51  ;;  %v7860_v48 = vld [vmem:[%s11293_s6 + $0x188] ss:$16 sps:$4 sm:$0xff]   ;;  %v7862_v51 = vld [vmem:[%s11293_s6 + $0x18c] ss:$16 sps:$4 sm:$0xff]  }
 0x697   :  { %4958 = vmatpush1.bf16.msra.mxu0 %v10449_v24  ;;  %4999 = vmatpush1.bf16.msra.mxu1 %v10454_v15  ;;  %v7865_v24 = vld [vmem:[%s11293_s6 + $0x164] ss:$16 sps:$4 sm:$0xff]   ;;  %v7868_v15 = vld [vmem:[%s11293_s6 + $0x16c] ss:$16 sps:$4 sm:$0xff]  }
 0x698   :  { %4959 = vmatprep.subr.bf16.mxu0 %v10463_v63  ;;  %5000 = vmatprep.subr.bf16.mxu1 %v10468_v49  ;;  %v7863_v63 = vld [vmem:[%s11293_s6 + $0x160] ss:$16 sps:$4 sm:$0xff]   ;;  %v7866_v49 = vld [vmem:[%s11293_s6 + $0x168] ss:$16 sps:$4 sm:$0xff]  }
 0x69b   :  { %4960 = vmatpush1.bf16.msra.mxu0 %v10473_v8  ;;  %5001 = vmatpush1.bf16.msra.mxu1 %v10478_v25  ;;  %v7871_v8 = vld [vmem:[%s11293_s6 + $0x144] ss:$16 sps:$4 sm:$0xff]   ;;  %v7874_v25 = vld [vmem:[%s11293_s6 + $0x14c] ss:$16 sps:$4 sm:$0xff]  }
 0x69c   :  { %4961 = vmatprep.subr.bf16.mxu0 %v10487_v34  ;;  %5002 = vmatprep.subr.bf16.mxu1 %v10492_v1  ;;  %v11537_v34 = vld [vmem:[#allocation67_spill] sm:$0xff] }
 0x69d   :  { %vm4011_vm4 = vcmp.eq.s32.totalorder %v11537_v34, 1 }
 0x69f   :  { %4962 = vmatpush1.bf16.msra.mxu0 %v10497_v14  ;;  %5003 = vmatpush1.bf16.msra.mxu1 %v10502_v2  ;;  %v7869_v2 = vld [vmem:[%s11293_s6 + $0x140] ss:$16 sps:$4 sm:$0xff]  }
 0x6a0   :  { %4963 = vmatprep.subr.bf16.mxu0 %v10511_v30  ;;  %5004 = vmatprep.subr.bf16.mxu1 %v10516_v18  ;;  %v7872_v30 = vld [vmem:[%s11293_s6 + $0x148] ss:$16 sps:$4 sm:$0xff]   ;;  %v7877_v18 = vld [vmem:[%s11293_s6 + $0x124] ss:$16 sps:$4 sm:$0xff]  }
 0x6a3   :  { %4964 = vmatpush1.bf16.msra.mxu0 %v10521_v46  ;;  %5005 = vmatpush1.bf16.msra.mxu1 %v10526_v32  ;;  %v7880_v46 = vld [vmem:[%s11293_s6 + $0x12c] ss:$16 sps:$4 sm:$0xff]   ;;  %v7875_v32 = vld [vmem:[%s11293_s6 + $0x120] ss:$16 sps:$4 sm:$0xff]  }
 0x6a4   :  { %4965 = vmatprep.subr.bf16.mxu0 %v10535_v3  ;;  %5006 = vmatprep.subr.bf16.mxu1 %v11508_v4  ;;  %v7878_v3 = vld [vmem:[%s11293_s6 + $0x128] ss:$16 sps:$4 sm:$0xff]  }
 0x6a7   :  { %4966 = vmatpush1.bf16.msra.mxu0 %v11509_v7  ;;  %5007 = vmatpush1.bf16.msra.mxu1 %v11510_v40 }
 0x6a8   :  { %4967 = vmatprep.subr.bf16.mxu0 %v11511_v42  ;;  %5008 = vmatprep.subr.bf16.mxu1 %v10564_v56  ;;  %v11539_v42 = vld [vmem:[#allocation51_spill] sm:$0xff] }
 0x6ab   :  { %4968 = vmatpush1.bf16.msra.mxu0 %v11512_v6  ;;  %5009 = vmatpush1.bf16.msra.mxu1 %v10574_v58  ;;  %v7886_v58 = vld [vmem:[%s11293_s6 + $0x10c] ss:$16 sps:$4 sm:$0xff]  }
 0x6ac   :  { %4969 = vmatprep.subr.bf16.mxu0 %v10583_v35  ;;  %5010 = vmatprep.subr.bf16.mxu1 %v10588_v45  ;;  %v7883_v45 = vld [vmem:[%s11293_s6 + $0x104] ss:$16 sps:$4 sm:$0xff]   ;;  %v7881_v35 = vld [vmem:[%s11293_s6 + $0x100] ss:$16 sps:$4 sm:$0xff]  }
 0x6af   :  { %4970 = vmatpush2.bf16.msra.mxu0 %v10593_v11  ;;  %5011 = vmatpush2.bf16.msra.mxu1 %v10598_v27  ;;  %v7884_v11 = vld [vmem:[%s11293_s6 + $0x108] ss:$16 sps:$4 sm:$0xff]  }
 0x6b0   :  { %4971 = vmatprep.subr.bf16.mxu0 %v10697_v31  ;;  %5012 = vmatprep.subr.bf16.mxu1 %v10702_v62 }
 0x6b3   :  { %4972 = vmatpush2.bf16.msra.mxu0 %v10707_v38  ;;  %5013 = vmatpush2.bf16.msra.mxu1 %v10712_v0 }
 0x6b4   :  { %4973 = vmatprep.subr.bf16.mxu0 %v7853_v47  ;;  %5014 = vmatprep.subr.bf16.mxu1 %v7856_v29 }
 0x6b7   :  { %4974 = vmatpush2.bf16.msra.mxu0 %v7851_v17  ;;  %5015 = vmatpush2.bf16.msra.mxu1 %v7854_v37 }
 0x6b8   :  { %4975 = vmatprep.subr.bf16.mxu0 %v7859_v55  ;;  %5016 = vmatprep.subr.bf16.mxu1 %v7862_v51 }
 0x6bb   :  { %4976 = vmatpush2.bf16.msra.mxu0 %v7857_v33  ;;  %5017 = vmatpush2.bf16.msra.mxu1 %v7860_v48  ;;  %v11543_v33 = vld [vmem:[#allocation85_spill] sm:$0xff] }
 0x6bc   :  { %4977 = vmatprep.subr.bf16.mxu0 %v7865_v24  ;;  %5018 = vmatprep.subr.bf16.mxu1 %v7868_v15  ;;  %vm4543_vm5 = vcmp.eq.s32.totalorder %v11543_v33, 1  ;;  %v11544_v15 = vmov 0   ;;  %v7912_v33 = vld [vmem:[#allocation13 + $0xc0] ss:$16 sps:$4 sm:$0xff]  }
 0x6bf   :  { %4978 = vmatpush2.bf16.msra.mxu0 %v7863_v63  ;;  %5019 = vmatpush2.bf16.msra.mxu1 %v7866_v49  ;;  %v7889_v63 = vld [vmem:[%s11545_s26 + $0x70] sm:$0xff]  }
 0x6c0   :  { %4979 = vmatprep.subr.bf16.mxu0 %v7871_v8  ;;  %5020 = vmatprep.subr.bf16.mxu1 %v7874_v25  ;;  %v7890_v49 = vld [vmem:[%s11545_s26 + $0x30] sm:$0xff]   ;;  %v7891_v8 = vld [vmem:[%s11545_s26 + $0x68] sm:$0xff]  }
 0x6c1   :  { %v11546_v25 = vld [vmem:[#allocation68_spill] sm:$0xff] }
 0x6c2   :  { %vm4554_vm6 = vcmp.eq.s32.totalorder %v11546_v25, 1 }
 0x6c3   :  { %4980 = vmatpush2.bf16.msra.mxu0 %v7869_v2  ;;  %5021 = vmatpush2.bf16.msra.mxu1 %v7872_v30  ;;  %v7893_v2 = vld [vmem:[%s11545_s26 + $0x60] sm:$0xff]  }
 0x6c4   :  { %4981 = vmatprep.subr.bf16.mxu0 %v7877_v18  ;;  %5022 = vmatprep.subr.bf16.mxu1 %v7880_v46  ;;  %v7894_v30 = vld [vmem:[%s11545_s26 + $0x20] sm:$0xff]   ;;  %v7895_v18 = vld [vmem:[%s11545_s26 + $0x58] sm:$0xff]  }
 0x6c5   :  { %v7896_v46 = vld [vmem:[%s11545_s26 + $0x18] sm:$0xff]  }
 0x6c7   :  { %4982 = vmatpush2.bf16.msra.mxu0 %v7875_v32  ;;  %5023 = vmatpush2.bf16.msra.mxu1 %v7878_v3  ;;  %v7897_v32 = vld [vmem:[%s11545_s26 + $0x50] sm:$0xff]  }
 0x6c8   :  { %4983 = vmatprep.subr.bf16.mxu0 %v7883_v45  ;;  %5024 = vmatprep.subr.bf16.mxu1 %v7886_v58  ;;  %v7898_v3 = vld [vmem:[%s11545_s26 + $0x10] sm:$0xff]   ;;  %v7899_v45 = vld [vmem:[%s11545_s26 + $0x48] sm:$0xff]  }
 0x6c9   :  { %v7900_v58 = vld [vmem:[%s11545_s26 + $0x8] sm:$0xff]  }
 0x6cb   :  { %4984 = vmatpush2.bf16.msra.mxu0 %v7881_v35  ;;  %5025 = vmatpush2.bf16.msra.mxu1 %v7884_v11  ;;  %v7901_v35 = vld [vmem:[%s11545_s26 + $0x40] sm:$0xff]  }
 0x6cc   :  { %v7902_v11 = vld [vmem:[%s11545_s26] sm:$0xff]  }
 0x6fc   :  { %v4005_v1 = vpop.permute.xlu0 %4004 }
 0x6fd   :  { %v4012_v14 = vsel %vm4011_vm4, %v4005_v1, 0.0  ;;  %v7892_v1 = vld [vmem:[%s11545_s26 + $0x28] sm:$0xff]  }
 0x6fe   :  { %4014 = vst [vmem:[#allocation6 + $0x10] sm:$0xff] %v4012_v14 }
 0x74e   :  { %v4444_v56 = vpop.f32.mrf.mxu0  ;;  %v4485_v27 = vpop.f32.mrf.mxu1 }
 0x74f   :  { %v4492_v22 = vadd.f32 %v4444_v56, %v11538_v53  ;;  %v4494_v57 = vadd.f32 %v4485_v27, %v11541_v28  ;;  %v11547_v53 = vld [vmem:[#allocation53_spill] sm:$0xff]  ;;  %v11550_v28 = vld [vmem:[#allocation54_spill] sm:$0xff] }
 0x750   :  { %v4446_v4 = vpop.f32.mrf.mxu0  ;;  %v4487_v7 = vpop.f32.mrf.mxu1 }
 0x751   :  { %v7129_v40 = vmul.f32 -1.442695, %v4492_v22  ;;  %v4493_v6 = vadd.f32 %v4446_v4, %v11539_v42  ;;  %v4495_v61 = vadd.f32 %v4487_v7, %v11540_v19  ;;  %v11548_v42 = vld [vmem:[#allocation55_spill] sm:$0xff]  ;;  %v11549_v19 = vld [vmem:[#allocation56_spill] sm:$0xff] }
 0x752   :  { %v4448_v31 = vpop.f32.mrf.mxu0  ;;  %v4489_v62 = vpop.f32.mrf.mxu1 }
 0x753   :  { %8167 = vpow2.f32 %v7129_v40  ;;  %v7130_v38 = vmul.f32 -1.442695, %v4493_v6  ;;  %v7131_v50 = vmul.f32 -1.442695, %v4495_v61 }
 0x754   :  { %v4449_v0 = vpop.f32.mrf.mxu0  ;;  %v4490_v21 = vpop.f32.mrf.mxu1 }
 0x755   :  { %8169 = vpow2.f32 %v7130_v38 }
 0x756   :  { %8171 = vtanh.f32 %v4494_v57 }
 0x757   :  { %8173 = vpow2.f32 %v7131_v50 }
 0x760   :  { %v8168_v54 = vpop.eup %8167 }
 0x761   :  { %v4499_v12 = vadd.f32 1.0, %v8168_v54 }
 0x762   :  { %v8170_v60 = vpop.eup %8169 }
 0x763   :  { %8175 = vrcp.f32 %v4499_v12  ;;  %v4505_v13 = vadd.f32 1.0, %v8170_v60  ;;  %v8172_v26 = vpop.eup %8171 }
 0x764   :  { %v8174_v9 = vpop.eup %8173 }
 0x765   :  { %8177 = vrcp.f32 %v4505_v13  ;;  %v4512_v36 = vadd.f32 1.0, %v8174_v9 }
 0x767   :  { %8179 = vrcp.f32 %v4512_v36 }
 0x770   :  { %v8176_v23 = vpop.eup %8175 }
 0x771   :  { %v4517_v52 = vmul.f32 %v8176_v23, %v8172_v26 }
 0x772   :  { %v8178_v39 = vpop.eup %8177 }
 0x773   :  { %v4516_v41 = vmul.f32 %v8178_v39, %v10752_v59 }
 0x774   :  { %v8180_v29 = vpop.eup %8179 }
 0x775   :  { %v4518_v20 = vadd.f32 %v4517_v52, %v4516_v41 }
 0x777   :  { %8181 = vtanh.f32 %v4518_v20  ;;  %v10888_v47 = vsel %vm4527_vm10, %v4518_v20, %v10752_v59 }
 0x784   :  { %v8182_v17 = vpop.eup %8181 }
 0x785   :  { %v4520_v37 = vmul.f32 %v8182_v17, %v8180_v29  ;;  %v7906_v29 = vld [vmem:[#allocation13 + $0xe0] ss:$16 sps:$4 sm:$0xff]   ;;  %v7908_v17 = vld [vmem:[#allocation13 + $0xe4] ss:$16 sps:$4 sm:$0xff]  }
 0x786   :  { %5507 = vmatprep.subr.bf16.mxu1 %v7908_v17 }
 0x787   :  { %4547 = vrot.lane.b32.xlu1 %v4520_v37, %s8365_s1  ;;  %v10897_v55 = vsel %vm4530_vm14, %v4520_v37, %v10761_v43  ;;  %v10900_v48 = vsel %vm4531_vm2, %v4520_v37, %v10764_v10  ;;  %v4544_v59 = vsel %vm4543_vm5, %v4520_v37, 0.0  ;;  %v7887_v43 = vld [vmem:[%s11545_s26 + $0x78] sm:$0xff]   ;;  %v7914_v37 = vld [vmem:[#allocation13 + $0xc4] ss:$16 sps:$4 sm:$0xff]  }
 0x788   :  { %4546 = vst [vmem:[#allocation5 + $0x30] sm:$0xff] %v4544_v59  ;;  %v4568_v51 = vpack.c.bf16 %v10900_v48, %v10900_v48  ;;  %v4567_v24 = vpack.c.bf16 %v10897_v55, %v10897_v55  ;;  %v7888_v10 = vld [vmem:[%s11545_s26 + $0x38] sm:$0xff]   ;;  %7346 = vmatprep.subr.bf16.mxu0 %v7887_v43  ;;  %v11551_v59 = vld [vmem:[#allocation60_spill] sm:$0xff]  ;;  %v11552_v43 = vld [vmem:[#allocation87_spill] sm:$0xff]  ;;  %s7269_s26 = sld [smem:[#allocation8 + $0x1]] }
 0x789   :  { %vm5070_vm8 = vcmp.eq.s32.totalorder %v11551_v59, 1  ;;  %vm5086_vm13 = vcmp.eq.s32.totalorder %v11552_v43, 1  ;;  %v11006_v59 = vld [vmem:[%s11187_s12 + $0x20] sm:$0xff]  }
 0x78a   :  { %4985 = vmatprep.mubr.bf16.mxu0 %v4568_v51  ;;  %5026 = vmatprep.mubr.bf16.mxu1 %v4568_v51  ;;  %vm5073_vm9 = vmand %vm5070_vm8, %vm740_vm0  ;;  %v5721_v43 = vld [vmem:[#allocation6 + $0x2] ss:$8 sm:$0xf0] }
 0x78b   :  { %4986 = vmatmul.mubr.bf16.vlgmr.msra.gmra.mxu0 %v4567_v24  ;;  %5027 = vmatmul.mubr.bf16.vlgmr.msra.gmra.mxu1 %v4567_v24  ;;  %vm5074_vm11 = vmand %vm5070_vm8, %vm8844_vm7  ;;  %vm5295_vm7 = vcmask 523264  }
 0x78c   :  { %5539 = vmatprep.mubr.bf16.mxu1 %v11544_v15  ;;  %7347 = vmatpush3.bf16.msra.mxu0 %v7888_v10 }
 0x78d   :  { %7348 = vmatprep.subr.bf16.mxu0 %v7889_v63  ;;  %5508 = vmatpush1.bf16.msra.mxu1 %v7906_v29  ;;  %v10982_v29 = vld [vmem:[%s11187_s12 + $0x38] sm:$0xff]  }
 0x78e   :  { %5509 = vmatprep.subr.bf16.mxu1 %v7914_v37  ;;  %v10988_v37 = vld [vmem:[%s11187_s12 + $0x30] sm:$0xff]  }
 0x790   :  { %7349 = vmatpush3.bf16.msra.mxu0 %v7890_v49 }
 0x791   :  { %7350 = vmatprep.subr.bf16.mxu0 %v7891_v8  ;;  %5510 = vmatpush1.bf16.msra.mxu1 %v7912_v33  ;;  %v10999_v33 = vld [vmem:[%s11187_s12 + $0x28] sm:$0xff]  }
 0x794   :  { %7351 = vmatpush3.bf16.msra.mxu0 %v7892_v1 }
 0x795   :  { %7352 = vmatprep.subr.bf16.mxu0 %v7893_v2 }
 0x798   :  { %7353 = vmatpush3.bf16.msra.mxu0 %v7894_v30 }
 0x799   :  { %7354 = vmatprep.subr.bf16.mxu0 %v7895_v18 }
 0x79c   :  { %7355 = vmatpush3.bf16.msra.mxu0 %v7896_v46  ;;  %v7903_v46 = vld [vmem:[#allocation13 + $0xe8] ss:$16 sps:$4 sm:$0xff]  }
 0x79d   :  { %7356 = vmatprep.subr.bf16.mxu0 %v7897_v32 }
 0x7a0   :  { %7357 = vmatpush3.bf16.msra.mxu0 %v7898_v3  ;;  %v7911_v3 = vld [vmem:[#allocation13 + $0xcc] ss:$16 sps:$4 sm:$0xff]  }
 0x7a1   :  { %7358 = vmatprep.subr.bf16.mxu0 %v7899_v45  ;;  %v7915_v45 = vld [vmem:[#allocation13 + $0xa8] ss:$16 sps:$4 sm:$0xff]  }
 0x7a4   :  { %7359 = vmatpush3.bf16.msra.mxu0 %v7900_v58  ;;  %v7920_v58 = vld [vmem:[#allocation13 + $0xa4] ss:$16 sps:$4 sm:$0xff]  }
 0x7a5   :  { %7360 = vmatprep.subr.bf16.mxu0 %v7901_v35  ;;  %v7918_v35 = vld [vmem:[#allocation13 + $0xa0] ss:$16 sps:$4 sm:$0xff]   ;;  %5511 = vmatprep.subr.bf16.mxu1 %v7920_v58 }
 0x7a6   :  { %5512 = vmatpush1.bf16.msra.mxu1 %v7918_v35 }
 0x7a8   :  { %7361 = vmatpush3.bf16.msra.mxu0 %v7902_v11  ;;  %v7923_v11 = vld [vmem:[#allocation13 + $0x8c] ss:$16 sps:$4 sm:$0xff]  }
 0x7a9   :  { %5547 = vmatprep.subr.bf16.mxu0 %v7905_v44 }
 0x7f9   :  { %v4548_v34 = vpop.permute.xlu1 %4547 }
 0x7fa   :  { %v4555_v14 = vsel %vm4554_vm6, %v4548_v34, 0.0 }
 0x7fb   :  { %4557 = vst [vmem:[#allocation6 + $0x8] sm:$0xff] %v4555_v14 }
 0x84b   :  { %v4987_v56 = vpop.f32.mrf.mxu0  ;;  %v5028_v27 = vpop.f32.mrf.mxu1 }
 0x84c   :  { %v5035_v22 = vadd.f32 %v4987_v56, %v11547_v53  ;;  %v5037_v57 = vadd.f32 %v5028_v27, %v11550_v28  ;;  %v7921_v56 = vld [vmem:[#allocation13 + $0x88] ss:$16 sps:$4 sm:$0xff]   ;;  %v7926_v27 = vld [vmem:[#allocation13 + $0x84] ss:$16 sps:$4 sm:$0xff]   ;;  %v7924_v53 = vld [vmem:[#allocation13 + $0x80] ss:$16 sps:$4 sm:$0xff]  }
 0x84d   :  { %v4989_v4 = vpop.f32.mrf.mxu0  ;;  %v5030_v7 = vpop.f32.mrf.mxu1  ;;  %5513 = vmatprep.subr.bf16.mxu1 %v7926_v27  ;;  %v7945_v28 = vld [vmem:[#allocation13 + $0x8] ss:$16 sps:$4 sm:$0xff]  }
 0x84e   :  { %v7196_v40 = vmul.f32 -1.442695, %v5035_v22  ;;  %v5036_v6 = vadd.f32 %v4989_v4, %v11548_v42  ;;  %v5038_v61 = vadd.f32 %v5030_v7, %v11549_v19  ;;  %5514 = vmatpush1.bf16.msra.mxu1 %v7924_v53  ;;  %v7929_v22 = vld [vmem:[#allocation13 + $0x6c] ss:$16 sps:$4 sm:$0xff]   ;;  %v7930_v4 = vld [vmem:[#allocation13 + $0x60] ss:$16 sps:$4 sm:$0xff]  }
 0x84f   :  { %v4991_v31 = vpop.f32.mrf.mxu0  ;;  %v5032_v62 = vpop.f32.mrf.mxu1  ;;  %v7932_v7 = vld [vmem:[#allocation13 + $0x64] ss:$16 sps:$4 sm:$0xff]   ;;  %v7933_v42 = vld [vmem:[#allocation13 + $0x48] ss:$16 sps:$4 sm:$0xff]   ;;  %v7947_v19 = vld [vmem:[#allocation13 + $0xc] ss:$16 sps:$4 sm:$0xff]  }
 0x850   :  { %8183 = vpow2.f32 %v7196_v40  ;;  %v7197_v38 = vmul.f32 -1.442695, %v5036_v6  ;;  %v7198_v50 = vmul.f32 -1.442695, %v5038_v61  ;;  %v7935_v40 = vld [vmem:[#allocation13 + $0x4c] ss:$16 sps:$4 sm:$0xff]   ;;  %5515 = vmatprep.subr.bf16.mxu1 %v7932_v7 }
 0x851   :  { %v4992_v0 = vpop.f32.mrf.mxu0  ;;  %v5033_v21 = vpop.f32.mrf.mxu1  ;;  %v7938_v6 = vld [vmem:[#allocation13 + $0x44] ss:$16 sps:$4 sm:$0xff]   ;;  %v7936_v31 = vld [vmem:[#allocation13 + $0x40] ss:$16 sps:$4 sm:$0xff]   ;;  %v7941_v62 = vld [vmem:[#allocation13 + $0x2c] ss:$16 sps:$4 sm:$0xff]  }
 0x852   :  { %8185 = vpow2.f32 %v7197_v38  ;;  %5516 = vmatpush1.bf16.msra.mxu1 %v7930_v4  ;;  %v7944_v38 = vld [vmem:[#allocation13 + $0x24] ss:$16 sps:$4 sm:$0xff]   ;;  %v7939_v0 = vld [vmem:[#allocation13 + $0x28] ss:$16 sps:$4 sm:$0xff]   ;;  %v7942_v21 = vld [vmem:[#allocation13 + $0x20] ss:$16 sps:$4 sm:$0xff]  }
 0x853   :  { %8187 = vtanh.f32 %v5037_v57  ;;  %5517 = vmatprep.subr.bf16.mxu1 %v7938_v6  ;;  %v7950_v61 = vld [vmem:[#allocation13 + $0x4] ss:$16 sps:$4 sm:$0xff]   ;;  %v7948_v57 = vld [vmem:[#allocation13] ss:$16 sps:$4 sm:$0xff]  }
 0x854   :  { %8189 = vpow2.f32 %v7198_v50  ;;  %v8366_v50 = vmov 0.0  }
 0x856   :  { %5518 = vmatpush1.bf16.msra.mxu1 %v7936_v31 }
 0x857   :  { %5519 = vmatprep.subr.bf16.mxu1 %v7944_v38 }
 0x85a   :  { %5520 = vmatpush1.bf16.msra.mxu1 %v7942_v21 }
 0x85b   :  { %5521 = vmatprep.subr.bf16.mxu1 %v7950_v61 }
 0x85d   :  { %v8184_v54 = vpop.eup %8183 }
 0x85e   :  { %v5042_v12 = vadd.f32 1.0, %v8184_v54  ;;  %5522 = vmatpush1.bf16.msra.mxu1 %v7948_v57  ;;  %v11553_v54 = vld [vmem:[#allocation70_spill] sm:$0xff] }
 0x85f   :  { %v8186_v60 = vpop.eup %8185  ;;  %7404 = vmatprep.subr.bf16.mxu1 %v8366_v50  ;;  %vm5097_vm0 = vcmp.eq.s32.totalorder %v11553_v54, 1 }
 0x860   :  { %8191 = vrcp.f32 %v5042_v12  ;;  %v5048_v13 = vadd.f32 1.0, %v8186_v60  ;;  %v8188_v26 = vpop.eup %8187 }
 0x861   :  { %v8190_v9 = vpop.eup %8189 }
 0x862   :  { %8193 = vrcp.f32 %v5048_v13  ;;  %v5055_v36 = vadd.f32 1.0, %v8190_v9 }
 0x864   :  { %8195 = vrcp.f32 %v5055_v36 }
 0x86d   :  { %v8192_v23 = vpop.eup %8191 }
 0x86e   :  { %v5060_v52 = vmul.f32 %v8192_v23, %v8188_v26  ;;  %v7199_v26 = vld [vmem:[%s11183_s8] ss:$0 sm:$0xff] }
 0x86f   :  { %v8194_v39 = vpop.eup %8193 }
 0x870   :  { %v5059_v41 = vmul.f32 %v8194_v39, %v10888_v47 }
 0x871   :  { %v8196_v51 = vpop.eup %8195 }
 0x872   :  { %v5061_v20 = vadd.f32 %v5060_v52, %v5059_v41 }
 0x874   :  { %8197 = vtanh.f32 %v5061_v20  ;;  %v11554_v20 = vld [vmem:[#allocation86_spill] sm:$0xff] }
 0x881   :  { %v8198_v24 = vpop.eup %8197 }
 0x882   :  { %v5063_v47 = vmul.f32 %v8198_v24, %v8196_v51  ;;  %v11013_v51 = vld [vmem:[%s11187_s12 + $0x18] sm:$0xff]   ;;  %v11020_v24 = vld [vmem:[%s11187_s12 + $0x10] sm:$0xff]  }
 0x884   :  { %5090 = vrot.lane.b32.xlu0 %v5063_v47, %s8365_s1  ;;  %v5077_v10 = vsel %vm5073_vm9, %v5063_v47, %v10897_v55  ;;  %v5078_v63 = vsel %vm5074_vm11, %v5063_v47, %v10900_v48  ;;  %v5087_v49 = vsel %vm5086_vm13, %v5063_v47, 0.0  ;;  %v7909_v55 = vld [vmem:[#allocation13 + $0xc8] ss:$16 sps:$4 sm:$0xff]   ;;  %v7917_v48 = vld [vmem:[#allocation13 + $0xac] ss:$16 sps:$4 sm:$0xff]   ;;  %s6605_s1 = sshll.u32 %s8368_s5, 4  ;;  %s6606_s1 = int_to_ptr.vmem [resolvable:$true] %s6605_s1 }
 0x885   :  { %5079 = vst [vmem:[#allocation3] sm:$0xff] %v5077_v10  ;;  %5080 = vst [vmem:[#allocation3 + $0x8] sm:$0xff] %v5078_v63  ;;  %v11027_v10 = vld [vmem:[%s11187_s12 + $0x8] sm:$0xff]   ;;  %p8326_p7 = scmp.lt.s32.totalorder %s6606_s1, %s6606_s1 }
 0x886   :  { %5089 = vst [vmem:[#allocation5 + $0x38] sm:$0xff] %v5087_v49 }
 0x88c   :  { %v5103_v8 = vld [vmem:[#allocation3 + $0x8] sm:$0xc]  ;;  %v5102_v34 = vld [vmem:[#allocation3] sm:$0xc]  ;;  %v5101_v1 = vld [vmem:[#allocation3 + $0x8] sm:$0x3] }
 0x88d   :  { %v5107_v25 = vrot.slane %v5103_v8, 2  ;;  %v5106_v14 = vrot.slane %v5102_v34, 2  ;;  %v5100_v16 = vld [vmem:[#allocation3] sm:$0x3] }
 0x88e   :  { %v5717_v63 = vld [vmem:[#allocation5] ss:$8 sm:$0xf0] }
 0x88f   :  { %v5111_v2 = vadd.f32 %v5107_v25, %v5101_v1  ;;  %v5110_v30 = vadd.f32 %v5106_v14, %v5100_v16  ;;  %v5716_v8 = vld [vmem:[#allocation5] ss:$8 sm:$0xf] }
 0x890   :  { %v5718_v25 = vor.u32 %v5717_v63, %v5716_v8  ;;  %v11034_v34 = vld [vmem:[%s11187_s12] sm:$0xff]   ;;  %v7960_v16 = vld [vmem:[%s11189_s14 + $0x30] sm:$0xff]  }
 0x891   :  { %v5113_v18 = vpack.c.bf16 %v5111_v2, %v5111_v2  ;;  %v5112_v32 = vpack.c.bf16 %v5110_v30, %v5110_v30  ;;  %v7959_v2 = vld [vmem:[%s11189_s14 + $0x38] sm:$0xff]   ;;  %v7961_v30 = vld [vmem:[%s11189_s14 + $0x28] sm:$0xff]  }
 0x893   :  { %5281 = vmatprep.mubr.bf16.mxu0 %v5113_v18  ;;  %v7962_v18 = vld [vmem:[%s11189_s14 + $0x20] sm:$0xff]  }
 0x894   :  { %5282 = vmatmul.mubr.bf16.vlgmr.msra.gmra.mxu0 %v5112_v32  ;;  %v7964_v32 = vld [vmem:[%s11189_s14 + $0x10] sm:$0xff]  }
 0x895   :  { %5548 = vmatpush1.bf16.msra.mxu0 %v7903_v46  ;;  %5579 = vmatprep.mubr.bf16.mxu0 %v11544_v15  ;;  %v7927_v15 = vld [vmem:[#allocation13 + $0x68] ss:$16 sps:$4 sm:$0xff]  }
 0x896   :  { %5549 = vmatprep.subr.bf16.mxu0 %v7911_v3  ;;  %v7963_v46 = vld [vmem:[%s11189_s14 + $0x18] sm:$0xff]   ;;  %v7965_v3 = vld [vmem:[%s11189_s14 + $0x8] sm:$0xff]  }
 0x899   :  { %5550 = vmatpush1.bf16.msra.mxu0 %v7909_v55  ;;  %v7966_v55 = vld [vmem:[%s11189_s14] sm:$0xff]  }
 0x89a   :  { %5551 = vmatprep.subr.bf16.mxu0 %v7917_v48  ;;  %v5330_v48 = vld [vmem:[%s11186_s11] sm:$0xf] }
 0x89d   :  { %5552 = vmatpush1.bf16.msra.mxu0 %v7915_v45  ;;  %v11555_v45 = vld [vmem:[#allocation21_spill] sm:$0xff] }
 0x89e   :  { %5553 = vmatprep.subr.bf16.mxu0 %v7923_v11  ;;  %v5335_v58 = vrot.slane %v5330_v48, %v11555_v45 }
 0x8a1   :  { %5554 = vmatpush1.bf16.msra.mxu0 %v7921_v56 }
 0x8a2   :  { %5555 = vmatprep.subr.bf16.mxu0 %v7929_v22 }
 0x8a5   :  { %5556 = vmatpush1.bf16.msra.mxu0 %v7927_v15  ;;  %v11556_v15 = vld [vmem:[#allocation24_spill] sm:$0xff] }
 0x8a6   :  { %5557 = vmatprep.subr.bf16.mxu0 %v7935_v40  ;;  %v5343_v4 = vrot.slane %v5330_v48, %v11556_v15 }
 0x8a9   :  { %5558 = vmatpush1.bf16.msra.mxu0 %v7933_v42 }
 0x8aa   :  { %5559 = vmatprep.subr.bf16.mxu0 %v7941_v62  ;;  %v11557_v62 = vld [vmem:[#allocation23_spill] sm:$0xff] }
 0x8ab   :  { %v5339_v38 = vrot.slane %v5330_v48, %v11557_v62 }
 0x8ad   :  { %5560 = vmatpush1.bf16.msra.mxu0 %v7939_v0 }
 0x8ae   :  { %5561 = vmatprep.subr.bf16.mxu0 %v7947_v19 }
 0x8b1   :  { %5562 = vmatpush1.bf16.msra.mxu0 %v7945_v28 }
 0x8b2   :  { %7424 = vmatprep.subr.bf16.mxu0 %v8366_v50 }
 0x8f6   :  { %v5091_v12 = vpop.permute.xlu0 %5090 }
 0x8f7   :  { %v5098_v60 = vsel %vm5097_vm0, %v5091_v12, 0.0 }
 0x8f8   :  { %5099 = vst [vmem:[#allocation6] sm:$0xff] %v5098_v60 }
 0x8ff   :  { %v5720_v47 = vld [vmem:[#allocation6 + $0x2] ss:$8 sm:$0xf] }
 0x900   :  { %v5722_v49 = vor.u32 %v5721_v43, %v5720_v47  ;;  %v7259_v47 = vld [vmem:[%s11188_s13] ss:$0 sm:$0xff]  ;;  %s5856_s13 = sld [smem:[#allocation8]] }
 0x902   :  { %v11037_v1 = vadd.f32 %v5722_v49, %v5718_v25 }
 0x904   :  { %v5724_v14 = vpack.c.bf16 %v11037_v1, %v11037_v1 }
 0x954   :  { %v7362_v13 = vpop.f32.mrf.mxu0 }
 0x956   :  { %v7363_v9 = vpop.f32.mrf.mxu0 }
 0x957   :  { %v7364_v23 = vadd.f32 %v7363_v9, %v7362_v13 }
 0x958   :  { %v7365_v52 = vpop.f32.mrf.mxu0 }
 0x959   :  { %v5284_v39 = vadd.f32 %v7364_v23, %v7199_v26 }
 0x95a   :  { %v7366_v36 = vpop.f32.mrf.mxu0 }
 0x95b   :  { %8199 = vtanh.f32 %v5284_v39 }
 0x968   :  { %v8200_v41 = vpop.eup %8199 }
 0x969   :  { %v5296_v44 = vsel %vm5295_vm7, %v8200_v41, %v11554_v20  ;;  %v5889_v20 = vld [vmem:[#allocation6 + $0x3] ss:$8 sm:$0xf] }
 0x96a   :  { %v5297_v17 = vpack.c.bf16 %v5296_v44, %v5296_v44  ;;  %v5886_v44 = vld [vmem:[#allocation5 + $0x1] ss:$8 sm:$0xf0] }
 0x96c   :  { %5540 = vmatmul.mubr.bf16.vlgmr.msra.gmra.mxu1 %v5297_v17  ;;  %5580 = vmatmul.mubr.bf16.vlgmr.msra.gmra.mxu0 %v5297_v17 }
 0x96d   :  { %7425 = vmatpush3.bf16.msra.mxu0 %v10982_v29  ;;  %7440 = vmatprep.mubr.msk.bf16.mxu0 %vm8367_vm12, %v8366_v50 }
 0x96e   :  { %7426 = vmatprep.subr.bf16.mxu0 %v8366_v50  ;;  %7420 = vmatprep.mubr.msk.bf16.mxu1 %vm8367_vm12, %v8366_v50 }
 0x96f   :  { %7405 = vmatpush3.bf16.msra.mxu1 %v7959_v2  ;;  %v7268_v2 = vld [vmem:[%s11191_s16] ss:$0 sm:$0xff] }
 0x970   :  { %7406 = vmatprep.subr.bf16.mxu1 %v8366_v50 }
 0x971   :  { %7427 = vmatpush3.bf16.msra.mxu0 %v10988_v37 }
 0x972   :  { %7428 = vmatprep.subr.bf16.mxu0 %v8366_v50 }
 0x973   :  { %7407 = vmatpush3.bf16.msra.mxu1 %v7960_v16 }
 0x974   :  { %7408 = vmatprep.subr.bf16.mxu1 %v8366_v50 }
 0x975   :  { %7429 = vmatpush3.bf16.msra.mxu0 %v10999_v33 }
 0x976   :  { %7430 = vmatprep.subr.bf16.mxu0 %v8366_v50 }
 0x977   :  { %7409 = vmatpush3.bf16.msra.mxu1 %v7961_v30 }
 0x978   :  { %7410 = vmatprep.subr.bf16.mxu1 %v8366_v50 }
 0x979   :  { %7431 = vmatpush3.bf16.msra.mxu0 %v11006_v59 }
 0x97a   :  { %7432 = vmatprep.subr.bf16.mxu0 %v8366_v50 }
 0x97b   :  { %7411 = vmatpush3.bf16.msra.mxu1 %v7962_v18 }
 0x97c   :  { %7412 = vmatprep.subr.bf16.mxu1 %v8366_v50 }
 0x97d   :  { %7433 = vmatpush3.bf16.msra.mxu0 %v11013_v51 }
 0x97e   :  { %7434 = vmatprep.subr.bf16.mxu0 %v8366_v50 }
 0x97f   :  { %7413 = vmatpush3.bf16.msra.mxu1 %v7963_v46 }
 0x980   :  { %7414 = vmatprep.subr.bf16.mxu1 %v8366_v50 }
 0x981   :  { %7435 = vmatpush3.bf16.msra.mxu0 %v11020_v24 }
 0x982   :  { %7436 = vmatprep.subr.bf16.mxu0 %v8366_v50 }
 0x983   :  { %7415 = vmatpush3.bf16.msra.mxu1 %v7964_v32  ;;  %v11558_v32 = vld [vmem:[#allocation22_spill] sm:$0xff] }
 0x984   :  { %7416 = vmatprep.subr.bf16.mxu1 %v8366_v50 }
 0x985   :  { %7437 = vmatpush3.bf16.msra.mxu0 %v11027_v10 }
 0x986   :  { %7438 = vmatprep.subr.bf16.mxu0 %v8366_v50 }
 0x987   :  { %7417 = vmatpush3.bf16.msra.mxu1 %v7965_v3 }
 0x988   :  { %7418 = vmatprep.subr.bf16.mxu1 %v8366_v50 }
 0x989   :  { %7439 = vmatpush3.bf16.msra.mxu0 %v11034_v34 }
 0x98b   :  { %7419 = vmatpush3.bf16.msra.mxu1 %v7966_v55 }
 0x98c   :  { %7441 = vmatmul.mubr.bf16.vlgmr.msra.gmra.mxu0 %v5724_v14  ;;  %7444 = vmatprep.subr.bf16.mxu1 %v8366_v50 }
 0xa2c   :  { %v5541_v35 = vpop.f32.mrf.mxu1  ;;  %v5581_v11 = vpop.f32.mrf.mxu0 }
 0xa2d   :  { %v5542_v56 = vadd.f32 %v5541_v35, %v5335_v58  ;;  %v5582_v21 = vadd.f32 %v5581_v11, %v5339_v38  ;;  %v7976_v38 = vld [vmem:[#allocation15 + $0xc8] ss:$16 sps:$4 sm:$0xff]  }
 0xa2e   :  { %v5543_v27 = vpop.f32.mrf.mxu1  ;;  %v5583_v53 = vpop.f32.mrf.mxu0 }
 0xa2f   :  { %v7248_v22 = vmul.f32 -1.442695, %v5542_v56  ;;  %v5584_v31 = vadd.f32 %v5583_v53, %v5343_v4  ;;  %v7972_v4 = vld [vmem:[#allocation15 + $0xec] ss:$16 sps:$4 sm:$0xff]  }
 0xa30   :  { %v5544_v7 = vpop.f32.mrf.mxu1  ;;  %v5585_v40 = vpop.f32.mrf.mxu0 }
 0xa31   :  { %8201 = vpow2.f32 %v7248_v22  ;;  %v7249_v0 = vmul.f32 -1.442695, %v5584_v31  ;;  %v7969_v22 = vld [vmem:[#allocation15 + $0xe4] ss:$16 sps:$4 sm:$0xff]   ;;  %v7967_v7 = vld [vmem:[#allocation15 + $0xe0] ss:$16 sps:$4 sm:$0xff]  }
 0xa32   :  { %v5545_v42 = vpop.f32.mrf.mxu1  ;;  %v5586_v6 = vpop.f32.mrf.mxu0  ;;  %v7970_v40 = vld [vmem:[#allocation15 + $0xe8] ss:$16 sps:$4 sm:$0xff]   ;;  %6377 = vmatprep.subr.bf16.mxu0 %v7969_v22  ;;  %v7973_v31 = vld [vmem:[#allocation15 + $0xc0] ss:$16 sps:$4 sm:$0xff]   ;;  %v8056_v22 = vld [vmem:[#allocation15 + $0x12c] ss:$16 sps:$4 sm:$0xff]  }
 0xa33   :  { %8203 = vpow2.f32 %v7249_v0  ;;  %6378 = vmatpush1.bf16.msra.mxu0 %v7967_v7  ;;  %v7975_v42 = vld [vmem:[#allocation15 + $0xc4] ss:$16 sps:$4 sm:$0xff]   ;;  %v7978_v6 = vld [vmem:[#allocation15 + $0xcc] ss:$16 sps:$4 sm:$0xff]   ;;  %v8054_v7 = vld [vmem:[#allocation15 + $0x128] ss:$16 sps:$4 sm:$0xff]  }
 0xa34   :  { %8205 = vtanh.f32 %v5582_v21  ;;  %6379 = vmatprep.subr.bf16.mxu0 %v7975_v42  ;;  %v7981_v0 = vld [vmem:[#allocation15 + $0xa4] ss:$16 sps:$4 sm:$0xff]   ;;  %v7984_v21 = vld [vmem:[#allocation15 + $0xac] ss:$16 sps:$4 sm:$0xff]  }
 0xa35   :  { %v8062_v42 = vld [vmem:[#allocation15 + $0x10c] ss:$16 sps:$4 sm:$0xff]  }
 0xa37   :  { %6380 = vmatpush1.bf16.msra.mxu0 %v7973_v31  ;;  %v8060_v31 = vld [vmem:[#allocation15 + $0x108] ss:$16 sps:$4 sm:$0xff]  }
 0xa38   :  { %6381 = vmatprep.subr.bf16.mxu0 %v7981_v0  ;;  %v5854_v0 = vstv %s11192_s17 }
 0xa3e   :  { %v8202_v19 = vpop.eup %8201 }
 0xa3f   :  { %v5591_v61 = vadd.f32 1.0, %v8202_v19  ;;  %v7979_v19 = vld [vmem:[#allocation15 + $0xa0] ss:$16 sps:$4 sm:$0xff]  }
 0xa40   :  { %v8204_v28 = vpop.eup %8203  ;;  %6382 = vmatpush1.bf16.msra.mxu0 %v7979_v19 }
 0xa41   :  { %8207 = vrcp.f32 %v5591_v61  ;;  %v5598_v57 = vadd.f32 1.0, %v8204_v28  ;;  %v8206_v12 = vpop.eup %8205  ;;  %v7982_v61 = vld [vmem:[#allocation15 + $0xa8] ss:$16 sps:$4 sm:$0xff]   ;;  %v7987_v28 = vld [vmem:[#allocation15 + $0x84] ss:$16 sps:$4 sm:$0xff]  }
 0xa42   :  { %6383 = vmatprep.subr.bf16.mxu0 %v7987_v28 }
 0xa43   :  { %8209 = vrcp.f32 %v5598_v57  ;;  %v7990_v57 = vld [vmem:[#allocation15 + $0x8c] ss:$16 sps:$4 sm:$0xff]  }
 0xa4c   :  { %v5830_v54 = vpop.f32.mrf.mxu0 }
 0xa4d   :  { %v5831_v49 = vadd.f32 %v7259_v47, %v5830_v54  ;;  %v7985_v54 = vld [vmem:[#allocation15 + $0x80] ss:$16 sps:$4 sm:$0xff]  }
 0xa4e   :  { %v8208_v60 = vpop.eup %8207  ;;  %v7442_v13 = vpop.f32.mrf.mxu0  ;;  %6384 = vmatpush1.bf16.msra.mxu0 %v7985_v54 }
 0xa4f   :  { %v5601_v26 = vmul.f32 %v8208_v60, %v8206_v12  ;;  %v7988_v12 = vld [vmem:[#allocation15 + $0x88] ss:$16 sps:$4 sm:$0xff]   ;;  %v7993_v60 = vld [vmem:[#allocation15 + $0x64] ss:$16 sps:$4 sm:$0xff]   ;;  %v7996_v13 = vld [vmem:[#allocation15 + $0x6c] ss:$16 sps:$4 sm:$0xff]  }
 0xa50   :  { %v5833_v9 = vpop.f32.mrf.mxu0  ;;  %v8210_v52 = vpop.eup %8209  ;;  %6385 = vmatprep.subr.bf16.mxu0 %v7993_v60 }
 0xa51   :  { %8211 = vtanh.f32 %v5601_v26  ;;  %v7991_v26 = vld [vmem:[#allocation15 + $0x60] ss:$16 sps:$4 sm:$0xff]   ;;  %v7994_v9 = vld [vmem:[#allocation15 + $0x68] ss:$16 sps:$4 sm:$0xff]  }
 0xa52   :  { %v7443_v23 = vpop.f32.mrf.mxu0  ;;  %6386 = vmatpush1.bf16.msra.mxu0 %v7991_v26 }
 0xa53   :  { %v7999_v23 = vld [vmem:[#allocation15 + $0x44] ss:$16 sps:$4 sm:$0xff]  }
 0xa54   :  { %6387 = vmatprep.subr.bf16.mxu0 %v7999_v23  ;;  %v5946_v23 = vstv %s7269_s26 }
 0xa55   :  { %vm5947_vm1 = vcmp.lt.s32.totalorder %v8708_v5, %v5946_v23 }
 0xa5e   :  { %v8212_v39 = vpop.eup %8211 }
 0xa5f   :  { %v5603_v36 = vmul.f32 %v8212_v39, %v8210_v52  ;;  %v8002_v52 = vld [vmem:[#allocation15 + $0x4c] ss:$16 sps:$4 sm:$0xff]   ;;  %v7997_v39 = vld [vmem:[#allocation15 + $0x40] ss:$16 sps:$4 sm:$0xff]  }
 0xa60   :  { %6388 = vmatpush1.bf16.msra.mxu0 %v7997_v39 }
 0xa61   :  { %v5604_v41 = vpack.c.bf16 %v5603_v36, %v5603_v36  ;;  %v8000_v36 = vld [vmem:[#allocation15 + $0x48] ss:$16 sps:$4 sm:$0xff]  }
 0xa63   :  { %7421 = vmatmul.mubr.bf16.vlgmr.msra.gmra.mxu1 %v5604_v41  ;;  %6409 = vmatprep.mubr.bf16.mxu0 %v5604_v41 }
 0xa64   :  { %7445 = vmatpush3.bf16.msra.mxu1 %v10982_v29  ;;  %7460 = vmatprep.mubr.msk.bf16.mxu1 %vm8367_vm12, %v8366_v50  ;;  %v5890_v29 = vld [vmem:[#allocation6 + $0x3] ss:$8 sm:$0xf0] }
 0xa65   :  { %7446 = vmatprep.subr.bf16.mxu1 %v8366_v50  ;;  %v5891_v17 = vor.u32 %v5890_v29, %v5889_v20  ;;  %v8005_v20 = vld [vmem:[#allocation15 + $0x24] ss:$16 sps:$4 sm:$0xff]   ;;  %v8008_v29 = vld [vmem:[#allocation15 + $0x2c] ss:$16 sps:$4 sm:$0xff]  }
 0xa66   :  { %6389 = vmatprep.subr.bf16.mxu0 %v8005_v20 }
 0xa68   :  { %7447 = vmatpush3.bf16.msra.mxu1 %v10988_v37  ;;  %v5885_v37 = vld [vmem:[#allocation5 + $0x1] ss:$8 sm:$0xf] }
 0xa69   :  { %7448 = vmatprep.subr.bf16.mxu1 %v8366_v50 }
 0xa6c   :  { %7449 = vmatpush3.bf16.msra.mxu1 %v10999_v33  ;;  %v5887_v33 = vor.u32 %v5886_v44, %v5885_v37  ;;  %v8006_v44 = vld [vmem:[#allocation15 + $0x28] ss:$16 sps:$4 sm:$0xff]   ;;  %v8014_v37 = vld [vmem:[#allocation15 + $0xc] ss:$16 sps:$4 sm:$0xff]  }
 0xa6d   :  { %7450 = vmatprep.subr.bf16.mxu1 %v8366_v50 }
 0xa70   :  { %7451 = vmatpush3.bf16.msra.mxu1 %v11006_v59  ;;  %v11096_v59 = vadd.f32 %v5891_v17, %v5887_v33  ;;  %v8011_v17 = vld [vmem:[#allocation15 + $0x4] ss:$16 sps:$4 sm:$0xff]   ;;  %v8009_v33 = vld [vmem:[#allocation15] ss:$16 sps:$4 sm:$0xff]  }
 0xa71   :  { %7452 = vmatprep.subr.bf16.mxu1 %v8366_v50 }
 0xa74   :  { %7453 = vmatpush3.bf16.msra.mxu1 %v11013_v51  ;;  %v5893_v51 = vpack.c.bf16 %v11096_v59, %v11096_v59 }
 0xa75   :  { %7454 = vmatprep.subr.bf16.mxu1 %v8366_v50 }
 0xa78   :  { %7455 = vmatpush3.bf16.msra.mxu1 %v11020_v24  ;;  %v7250_v24 = vld [vmem:[%s11190_s15] ss:$0 sm:$0xff] }
 0xa79   :  { %7456 = vmatprep.subr.bf16.mxu1 %v8366_v50 }
 0xa7c   :  { %7457 = vmatpush3.bf16.msra.mxu1 %v11027_v10 }
 0xa7d   :  { %7458 = vmatprep.subr.bf16.mxu1 %v8366_v50 }
 0xa80   :  { %7459 = vmatpush3.bf16.msra.mxu1 %v11034_v34 }
 0xa81   :  { %6417 = vmatprep.subr.bf16.mxu1 %v7972_v4  ;;  %v8051_v4 = vld [vmem:[#allocation15 + $0x120] ss:$16 sps:$4 sm:$0xff]  }
 0xa83   :  { %7461 = vmatmul.mubr.bf16.vlgmr.msra.gmra.mxu1 %v5893_v51  ;;  %v8012_v51 = vld [vmem:[#allocation15 + $0x8] ss:$16 sps:$4 sm:$0xff]  }
 0xa84   :  { %6449 = vmatprep.mubr.bf16.mxu1 %v5604_v41  ;;  %6418 = vmatpush1.bf16.msra.mxu1 %v7970_v40  ;;  %v8003_v41 = vld [vmem:[#allocation15 + $0x20] ss:$16 sps:$4 sm:$0xff]   ;;  %v8059_v40 = vld [vmem:[#allocation15 + $0x104] ss:$16 sps:$4 sm:$0xff]  }
 0xa85   :  { %6419 = vmatprep.subr.bf16.mxu1 %v7978_v6  ;;  %6390 = vmatpush1.bf16.msra.mxu0 %v8003_v41  ;;  %v8057_v6 = vld [vmem:[#allocation15 + $0x100] ss:$16 sps:$4 sm:$0xff]  }
 0xa86   :  { %6391 = vmatprep.subr.bf16.mxu0 %v8011_v17 }
 0xa88   :  { %6420 = vmatpush1.bf16.msra.mxu1 %v7976_v38  ;;  %v5857_v38 = vstv %s5856_s13  ;;  %s8321_s13 = scalar_lea.vmem %s6606_s1, 32 }
 0xa89   :  { %6421 = vmatprep.subr.bf16.mxu1 %v7984_v21  ;;  %6392 = vmatpush1.bf16.msra.mxu0 %v8009_v33  ;;  %vm5858_vm15 = vcmp.lt.s32.totalorder %v8708_v5, %v5857_v38  ;;  %v8064_v38 = vld [vmem:[%s11195_s20 + $0x30] sm:$0xff]   ;;  %p8322_p6 = scmp.ne.s32.totalorder %s6606_s1, %s8321_s13  ;;  %p8327_p8 = scmp.lt.s32.totalorder %s8321_s13, %s8321_s13 }
 0xa8b   :  { %p8328_p9 = por %p8327_p8, %p8326_p7 }
 0xa8c   :  { %6422 = vmatpush1.bf16.msra.mxu1 %v7982_v61 }
 0xa8d   :  { %6423 = vmatprep.subr.bf16.mxu1 %v7990_v57  ;;  %p8329_p10 = pnand %p8328_p9, %p8322_p6 }
 0xa90   :  { %6424 = vmatpush1.bf16.msra.mxu1 %v7988_v12 }
 0xa91   :  { %6425 = vmatprep.subr.bf16.mxu1 %v7996_v13 }
 0xa94   :  { %6426 = vmatpush1.bf16.msra.mxu1 %v7994_v9 }
 0xa95   :  { %6427 = vmatprep.subr.bf16.mxu1 %v8002_v52 }
 0xa98   :  { %6428 = vmatpush1.bf16.msra.mxu1 %v8000_v36 }
 0xa99   :  { %6429 = vmatprep.subr.bf16.mxu1 %v8008_v29 }
 0xa9c   :  { %6430 = vmatpush1.bf16.msra.mxu1 %v8006_v44 }
 0xa9d   :  { %6431 = vmatprep.subr.bf16.mxu1 %v8014_v37 }
 0xaa0   :  { %6432 = vmatpush1.bf16.msra.mxu1 %v8012_v51 }
 0xb23   :  { %v5710_v43 = vpop.f32.mrf.mxu1 }
 0xb24   :  { %v5711_v10 = vadd.f32 %v7250_v24, %v5710_v43  ;;  %v8017_v24 = vld [vmem:[#allocation15 + $0x1e4] ss:$16 sps:$4 sm:$0xff]   ;;  %v8015_v43 = vld [vmem:[#allocation15 + $0x1e0] ss:$16 sps:$4 sm:$0xff]  }
 0xb25   :  { %v7422_v63 = vpop.f32.mrf.mxu1  ;;  %6393 = vmatprep.subr.bf16.mxu0 %v8017_v24 }
 0xb26   :  { %v5839_v8 = vrot.slane %v5711_v10, %v11555_v45  ;;  %v5937_v3 = vrot.slane %v5711_v10, %v11558_v32  ;;  %v8018_v10 = vld [vmem:[#allocation15 + $0x1e8] ss:$16 sps:$4 sm:$0xff]   ;;  %v8023_v63 = vld [vmem:[#allocation15 + $0x1c4] ss:$16 sps:$4 sm:$0xff]   ;;  %6394 = vmatpush2.bf16.msra.mxu0 %v8015_v43 }
 0xb27   :  { %v5713_v25 = vpop.f32.mrf.mxu1  ;;  %6395 = vmatprep.subr.bf16.mxu0 %v8023_v63  ;;  %v8036_v32 = vld [vmem:[#allocation15 + $0x188] ss:$16 sps:$4 sm:$0xff]  }
 0xb28   :  { %v5840_v34 = vadd.f32 %v5839_v8, %v5831_v49  ;;  %v8026_v49 = vld [vmem:[#allocation15 + $0x1cc] ss:$16 sps:$4 sm:$0xff]   ;;  %v8021_v8 = vld [vmem:[#allocation15 + $0x1c0] ss:$16 sps:$4 sm:$0xff]   ;;  %v8024_v25 = vld [vmem:[#allocation15 + $0x1c8] ss:$16 sps:$4 sm:$0xff]  }
 0xb29   :  { %v7423_v14 = vpop.f32.mrf.mxu1 }
 0xb2a   :  { %8213 = vtanh.f32 %v5840_v34  ;;  %v8029_v34 = vld [vmem:[#allocation15 + $0x1a4] ss:$16 sps:$4 sm:$0xff]   ;;  %v8032_v14 = vld [vmem:[#allocation15 + $0x1ac] ss:$16 sps:$4 sm:$0xff]   ;;  %6396 = vmatpush2.bf16.msra.mxu0 %v8021_v8 }
 0xb2b   :  { %6397 = vmatprep.subr.bf16.mxu0 %v8029_v34 }
 0xb37   :  { %v8214_v16 = vpop.eup %8213 }
 0xb38   :  { %v5849_v30 = vmul.f32 %v8214_v16, %v7268_v2  ;;  %v8030_v16 = vld [vmem:[#allocation15 + $0x1a8] ss:$16 sps:$4 sm:$0xff]  }
 0xb3a   :  { %v5850_v18 = vsel %vm5295_vm7, %v5849_v30, 0.0  ;;  %v8035_v30 = vld [vmem:[#allocation15 + $0x184] ss:$16 sps:$4 sm:$0xff]  }
 0xb3b   :  { %5851 = vadd.xlane.f32.xlu1 %v5850_v18  ;;  %v8038_v18 = vld [vmem:[#allocation15 + $0x18c] ss:$16 sps:$4 sm:$0xff]  }
 0xb43   :  { %v5928_v46 = vpop.f32.mrf.mxu1 }
 0xb44   :  { %v5929_v55 = vadd.f32 %v7259_v47, %v5928_v46  ;;  %v8020_v47 = vld [vmem:[#allocation15 + $0x1ec] ss:$16 sps:$4 sm:$0xff]   ;;  %v8033_v46 = vld [vmem:[#allocation15 + $0x180] ss:$16 sps:$4 sm:$0xff]  }
 0xb45   :  { %v7462_v48 = vpop.f32.mrf.mxu1  ;;  %6433 = vmatprep.subr.bf16.mxu1 %v8020_v47 }
 0xb46   :  { %v5938_v58 = vadd.f32 %v5937_v3, %v5929_v55  ;;  %6434 = vmatpush2.bf16.msra.mxu1 %v8018_v10  ;;  %v8041_v3 = vld [vmem:[#allocation15 + $0x164] ss:$16 sps:$4 sm:$0xff]   ;;  %v8044_v55 = vld [vmem:[#allocation15 + $0x16c] ss:$16 sps:$4 sm:$0xff]   ;;  %v8039_v48 = vld [vmem:[#allocation15 + $0x160] ss:$16 sps:$4 sm:$0xff]  }
 0xb47   :  { %v5931_v35 = vpop.f32.mrf.mxu1  ;;  %6435 = vmatprep.subr.bf16.mxu1 %v8026_v49 }
 0xb48   :  { %8215 = vtanh.f32 %v5938_v58  ;;  %v8042_v58 = vld [vmem:[#allocation15 + $0x168] ss:$16 sps:$4 sm:$0xff]   ;;  %v8047_v35 = vld [vmem:[#allocation15 + $0x144] ss:$16 sps:$4 sm:$0xff]  }
 0xb49   :  { %v7463_v11 = vpop.f32.mrf.mxu1 }
 0xb4a   :  { %6436 = vmatpush2.bf16.msra.mxu1 %v8024_v25  ;;  %v8050_v11 = vld [vmem:[#allocation15 + $0x14c] ss:$16 sps:$4 sm:$0xff]  }
 0xb4b   :  { %6437 = vmatprep.subr.bf16.mxu1 %v8032_v14 }
 0xb4e   :  { %6438 = vmatpush2.bf16.msra.mxu1 %v8030_v16 }
 0xb4f   :  { %6439 = vmatprep.subr.bf16.mxu1 %v8038_v18 }
 0xb52   :  { %6440 = vmatpush2.bf16.msra.mxu1 %v8036_v32 }
 0xb53   :  { %6441 = vmatprep.subr.bf16.mxu1 %v8044_v55 }
 0xb55   :  { %v8216_v56 = vpop.eup %8215 }
 0xb56   :  { %v5940_v27 = vmul.f32 %v8216_v56, %v7268_v2  ;;  %v8027_v2 = vld [vmem:[#allocation15 + $0x1a0] ss:$16 sps:$4 sm:$0xff]   ;;  %6442 = vmatpush2.bf16.msra.mxu1 %v8042_v58 }
 0xb57   :  { %6398 = vmatpush2.bf16.msra.mxu0 %v8027_v2  ;;  %v8045_v56 = vld [vmem:[#allocation15 + $0x140] ss:$16 sps:$4 sm:$0xff]   ;;  %6443 = vmatprep.subr.bf16.mxu1 %v8050_v11 }
 0xb58   :  { %v5941_v53 = vsel %vm5295_vm7, %v5940_v27, 0.0  ;;  %6399 = vmatprep.subr.bf16.mxu0 %v8035_v30  ;;  %v8048_v27 = vld [vmem:[#allocation15 + $0x148] ss:$16 sps:$4 sm:$0xff]  }
 0xb59   :  { %5942 = vadd.xlane.f32.xlu0 %v5941_v53  ;;  %v8053_v53 = vld [vmem:[#allocation15 + $0x124] ss:$16 sps:$4 sm:$0xff]  }
 0xb5a   :  { %6444 = vmatpush2.bf16.msra.mxu1 %v8048_v27 }
 0xb5b   :  { %6400 = vmatpush2.bf16.msra.mxu0 %v8033_v46  ;;  %6445 = vmatprep.subr.bf16.mxu1 %v8056_v22 }
 0xb5c   :  { %6401 = vmatprep.subr.bf16.mxu0 %v8041_v3 }
 0xb5e   :  { %6446 = vmatpush2.bf16.msra.mxu1 %v8054_v7 }
 0xb5f   :  { %6402 = vmatpush2.bf16.msra.mxu0 %v8039_v48  ;;  %6447 = vmatprep.subr.bf16.mxu1 %v8062_v42 }
 0xb60   :  { %6403 = vmatprep.subr.bf16.mxu0 %v8047_v35 }
 0xb62   :  { %6448 = vmatpush2.bf16.msra.mxu1 %v8060_v31 }
 0xb63   :  { %6404 = vmatpush2.bf16.msra.mxu0 %v8045_v56 }
 0xb64   :  { %6405 = vmatprep.subr.bf16.mxu0 %v8053_v53 }
 0xb67   :  { %6406 = vmatpush2.bf16.msra.mxu0 %v8051_v4 }
 0xb68   :  { %6407 = vmatprep.subr.bf16.mxu0 %v8059_v40 }
 0xb6b   :  { %6408 = vmatpush2.bf16.msra.mxu0 %v8057_v6 }
 0xb6c   :  { %7464 = vmatprep.subr.bf16.mxu0 %v8366_v50 }
 0xbc4   :  { %v5852_v21 = vpop.xlane.xlu1 %5851 }
 0xbc5   :  { %v5855_v19 = vadd.f32 %v5854_v0, %v5852_v21  ;;  %v8066_v21 = vld [vmem:[%s11195_s20 + $0x20] sm:$0xff]  }
 0xbc7   :  { %v5859_v61 = vsel %vm5858_vm15, %v5855_v19, -1e+10  ;;  %v8067_v19 = vld [vmem:[%s11195_s20 + $0x18] sm:$0xff]  }
 0xbc8   :  { %v5860_v28 = vrot.slane %v5859_v61, 4 }
 0xbca   :  { %v5861_v57 = vmax.f32 %v5859_v61, %v5860_v28  ;;  %v8069_v28 = vld [vmem:[%s11195_s20 + $0x8] sm:$0xff]  }
 0xbcc   :  { %v5862_v54 = vrot.slane %v5861_v57, 2 }
 0xbce   :  { %v5863_v12 = vmax.f32 %v5861_v57, %v5862_v54  ;;  %v8070_v57 = vld [vmem:[%s11195_s20] sm:$0xff]  }
 0xbcf   :  { %v6040_v54 = vld [vmem:[%s11194_s19] sm:$0xf] }
 0xbd0   :  { %v5864_v60 = vrot.slane %v5863_v12, 1 }
 0xbd2   :  { %v5865_v13 = vmax.f32 %v5863_v12, %v5864_v60  ;;  %v6045_v12 = vrot.slane %v6040_v54, %v11555_v45 }
 0xbd4   :  { %v5866_v26 = vsub.f32 %v5859_v61, %v5865_v13  ;;  %v8068_v61 = vld [vmem:[%s11195_s20 + $0x10] sm:$0xff]  }
 0xbd6   :  { %v5867_v9 = vmul.f32 1.442695, %v5866_v26 }
 0xbd8   :  { %8217 = vpow2.f32 %v5867_v9 }
 0xbe2   :  { %v5943_v52 = vpop.xlane.xlu0 %5942 }
 0xbe3   :  { %v5944_v39 = vadd.f32 %v5943_v52, %v5854_v0  ;;  %v8065_v0 = vld [vmem:[%s11195_s20 + $0x28] sm:$0xff]  }
 0xbe5   :  { %v8218_v36 = vpop.eup %8217  ;;  %v5948_v41 = vsel %vm5947_vm1, %v5944_v39, -1e+10  ;;  %v6053_v39 = vrot.slane %v6040_v54, %v11556_v15 }
 0xbe6   :  { %v5949_v20 = vrot.slane %v5948_v41, 4  ;;  %v5869_v44 = vrot.slane %v8218_v36, 4 }
 0xbe8   :  { %v5950_v29 = vmax.f32 %v5948_v41, %v5949_v20  ;;  %v5870_v37 = vadd.f32 %v8218_v36, %v5869_v44 }
 0xbea   :  { %v5951_v17 = vrot.slane %v5950_v29, 2  ;;  %v5871_v24 = vrot.slane %v5870_v37, 2 }
 0xbec   :  { %v5952_v33 = vmax.f32 %v5950_v29, %v5951_v17  ;;  %v5872_v63 = vadd.f32 %v5871_v24, %v5870_v37  ;;  %v6049_v29 = vrot.slane %v6040_v54, %v11557_v62 }
 0xbee   :  { %v5953_v51 = vrot.slane %v5952_v33, 1  ;;  %v5873_v49 = vrot.slane %v5872_v63, 1 }
 0xbf0   :  { %v5954_v47 = vmax.f32 %v5952_v33, %v5953_v51  ;;  %v5874_v8 = vadd.f32 %v5873_v49, %v5872_v63 }
 0xbf2   :  { %v5955_v43 = vsub.f32 %v5948_v41, %v5954_v47 }
 0xbf4   :  { %v5956_v10 = vmul.f32 1.442695, %v5955_v43 }
 0xbf6   :  { %8219 = vpow2.f32 %v5956_v10 }
 0xbf7   :  { %8221 = vrcp.f32 %v5874_v8 }
 0xc03   :  { %v8220_v5 = vpop.eup %8219 }
 0xc04   :  { %v5958_v25 = vrot.slane %v8220_v5, 4  ;;  %v8222_v30 = vpop.eup %8221 }
 0xc05   :  { %v5876_v46 = vmul.f32 %v8222_v30, %v8218_v36 }
 0xc06   :  { %v5959_v34 = vadd.f32 %v8220_v5, %v5958_v25 }
 0xc07   :  { %v5877_v32 = vmul.f32 %v5876_v46, %v11037_v1 }
 0xc08   :  { %v5960_v14 = vrot.slane %v5959_v34, 2 }
 0xc09   :  { %v5878_v3 = vrot.slane %v5877_v32, 4 }
 0xc0a   :  { %v5961_v2 = vadd.f32 %v5960_v14, %v5959_v34 }
 0xc0b   :  { %v5879_v55 = vadd.f32 %v5878_v3, %v5877_v32 }
 0xc0c   :  { %v5962_v16 = vrot.slane %v5961_v2, 1 }
 0xc0d   :  { %v5880_v35 = vrot.slane %v5879_v55, 2 }
 0xc0e   :  { %v5963_v18 = vadd.f32 %v5962_v16, %v5961_v2 }
 0xc0f   :  { %v5881_v27 = vadd.f32 %v5880_v35, %v5879_v55 }
 0xc10   :  { %8223 = vrcp.f32 %v5963_v18 }
 0xc11   :  { %v5882_v4 = vrot.slane %v5881_v27, 1 }
 0xc13   :  { %v5883_v42 = vadd.f32 %v5882_v4, %v5881_v27 }
 0xc1d   :  { %v8224_v48 = vpop.eup %8223 }
 0xc1e   :  { %v5965_v58 = vmul.f32 %v8224_v48, %v8220_v5  ;;  %v7336_v5 = vld [vmem:[%s11196_s21] ss:$0 sm:$0xff] }
 0xc20   :  { %v5966_v11 = vmul.f32 %v5965_v58, %v11096_v59  ;;  %v8063_v59 = vld [vmem:[%s11195_s20 + $0x38] sm:$0xff]  }
 0xc22   :  { %v5967_v56 = vrot.slane %v5966_v11, 4 }
 0xc24   :  { %v5968_v53 = vadd.f32 %v5967_v56, %v5966_v11 }
 0xc26   :  { %v5969_v22 = vrot.slane %v5968_v53, 2 }
 0xc28   :  { %v5970_v7 = vadd.f32 %v5969_v22, %v5968_v53 }
 0xc2a   :  { %v5971_v40 = vrot.slane %v5970_v7, 1 }
 0xc2c   :  { %v5972_v6 = vadd.f32 %v5971_v40, %v5970_v7 }
 0xc2e   :  { %v11122_v31 = vsel %vm5973_vm3, %v5883_v42, %v5972_v6 }
 0xc2f   :  { %v5975_v1 = vpack.c.bf16 %v11122_v31, %v11122_v31 }
 0xc31   :  { %6410 = vmatmul.mubr.bf16.vlgmr.msra.gmra.mxu0 %v5975_v1  ;;  %6450 = vmatmul.mubr.bf16.vlgmr.msra.gmra.mxu1 %v5975_v1 }
 0xc32   :  { %7480 = vmatprep.mubr.msk.bf16.mxu0 %vm8367_vm12, %v8366_v50  ;;  %7465 = vmatpush3.bf16.msra.mxu0 %v8063_v59 }
 0xc33   :  { %7466 = vmatprep.subr.bf16.mxu0 %v8366_v50 }
 0xc36   :  { %7467 = vmatpush3.bf16.msra.mxu0 %v8064_v38 }
 0xc37   :  { %7468 = vmatprep.subr.bf16.mxu0 %v8366_v50 }
 0xc3a   :  { %7469 = vmatpush3.bf16.msra.mxu0 %v8065_v0 }
 0xc3b   :  { %7470 = vmatprep.subr.bf16.mxu0 %v8366_v50 }
 0xc3e   :  { %7471 = vmatpush3.bf16.msra.mxu0 %v8066_v21 }
 0xc3f   :  { %7472 = vmatprep.subr.bf16.mxu0 %v8366_v50 }
 0xc42   :  { %7473 = vmatpush3.bf16.msra.mxu0 %v8067_v19 }
 0xc43   :  { %7474 = vmatprep.subr.bf16.mxu0 %v8366_v50 }
 0xc46   :  { %7475 = vmatpush3.bf16.msra.mxu0 %v8068_v61 }
 0xc47   :  { %7476 = vmatprep.subr.bf16.mxu0 %v8366_v50 }
 0xc4a   :  { %7477 = vmatpush3.bf16.msra.mxu0 %v8069_v28 }
 0xc4b   :  { %7478 = vmatprep.subr.bf16.mxu0 %v8366_v50 }
 0xc4e   :  { %7479 = vmatpush3.bf16.msra.mxu0 %v8070_v57 }
 0xcf1   :  { %v6411_v60 = vpop.f32.mrf.mxu0  ;;  %v6451_v13 = vpop.f32.mrf.mxu1 }
 0xcf2   :  { %v6412_v26 = vadd.f32 %v6411_v60, %v6045_v12  ;;  %v6452_v37 = vadd.f32 %v6451_v13, %v6049_v29 }
 0xcf3   :  { %v6413_v9 = vpop.f32.mrf.mxu0  ;;  %v6453_v23 = vpop.f32.mrf.mxu1 }
 0xcf4   :  { %v7334_v52 = vmul.f32 -1.442695, %v6412_v26  ;;  %v6454_v44 = vadd.f32 %v6453_v23, %v6053_v39 }
 0xcf5   :  { %v6414_v36 = vpop.f32.mrf.mxu0  ;;  %v6455_v41 = vpop.f32.mrf.mxu1 }
 0xcf6   :  { %8225 = vpow2.f32 %v7334_v52  ;;  %v7335_v17 = vmul.f32 -1.442695, %v6454_v44 }
 0xcf7   :  { %v6415_v20 = vpop.f32.mrf.mxu0  ;;  %v6456_v50 = vpop.f32.mrf.mxu1 }
 0xcf8   :  { %8227 = vpow2.f32 %v7335_v17 }
 0xcf9   :  { %8229 = vtanh.f32 %v6452_v37 }
 0xd03   :  { %v8226_v45 = vpop.eup %8225 }
 0xd04   :  { %v6461_v33 = vadd.f32 1.0, %v8226_v45 }
 0xd05   :  { %v8228_v51 = vpop.eup %8227 }
 0xd06   :  { %8231 = vrcp.f32 %v6461_v33  ;;  %v6468_v24 = vadd.f32 1.0, %v8228_v51  ;;  %v8230_v47 = vpop.eup %8229 }
 0xd08   :  { %8233 = vrcp.f32 %v6468_v24 }
 0xd13   :  { %v8232_v43 = vpop.eup %8231 }
 0xd14   :  { %v6471_v15 = vmul.f32 %v8232_v43, %v8230_v47 }
 0xd15   :  { %v8234_v10 = vpop.eup %8233 }
 0xd16   :  { %8235 = vtanh.f32 %v6471_v15 }
 0xd23   :  { %v8236_v63 = vpop.eup %8235 }
 0xd24   :  { %v6473_v49 = vmul.f32 %v8236_v63, %v8234_v10 }
 0xd26   :  { %v6474_v8 = vpack.c.bf16 %v6473_v49, %v6473_v49  ;;  %v6589_v62 = vcombine.low %v11122_v31, %v6473_v49 }
 0xd28   :  { %7481 = vmatmul.mubr.bf16.vlgmr.msra.gmra.mxu0 %v6474_v8  ;;  %7345 = vst.sshfl [vmem:[%s11198_s23] sm:$0x33 pattern:$0x76325410] %v6589_v62 }
 0xde8   :  { %v6580_v25 = vpop.f32.mrf.mxu0 }
 0xde9   :  { %v6581_v34 = vadd.f32 %v7336_v5, %v6580_v25 }
 0xdea   :  { %v7482_v14 = vpop.f32.mrf.mxu0 }
 0xdeb   :  { %6586 = vst [vmem:[#allocation16] sm:$0x3] %v6581_v34 }
 0xdec   :  { %v6583_v2 = vpop.f32.mrf.mxu0 }
 0xded   :  { %8332 = shalt.err (!%p8329_p10)
}
 0xdee   :  { %6608 = dma.vmem_to_hbm [thread:$0]  %s6606_s1, 32, %s11197_s22, [#allocation10]   ;;  %v7483_v16 = vpop.f32.mrf.mxu0 }
 0xdef   :  { %8347 = dma.done.wait [#allocation10], 32  }
 0xdf0   :  { %8348 = vsyncadd [#allocation10], 4294967264 }
 0xdf1   :  { %6616 = vsyncpa [#allocation9], 1 }
 0xdf2   :  { %6617 = vsyncpa [#allocation14], 1 }
 0xdf3   :  { %6618 = vsyncpa [#allocation10], 1 }
 0xdf4   :  { %6619 = vsyncpa [#allocation11], 1 }

</bundles_post_ra>
